<compile_context>
chip_gen: v7x
topology: tpu7x:2x2x1
jax: 0.10.0
libtpu: 0.0.40
codegen_flags: <defaults>
</compile_context>

<pallas_src>
import functools

import jax
import jax.numpy as jnp
from jax import lax
from jax.experimental import pallas as pl
from jax.experimental.pallas import tpu as pltpu


# 40 MiB: comfortably under v7x's 64 MiB physical VMEM (leaves headroom for
# compiler scratch), and above the default scoped limit on v5e/v6e.  All
# kernel working sets below are sized to stay well under this.
_VMEM_LIMIT = 40 * 1024 * 1024


def _round_up(x, m):
    return ((x + m - 1) // m) * m


# -----------------------------------------------------------------------------
# Fused (LayerNorm) + matmul + bias + activation + residual kernel
# -----------------------------------------------------------------------------

def _fused_matmul_kernel(*refs, n_k, has_bias, has_ln, has_res, activation):
    it = iter(refs)
    x_ref = next(it)
    w_ref = next(it)
    b_ref = next(it) if has_bias else None
    g_ref = next(it) if has_ln else None
    bt_ref = next(it) if has_ln else None
    r_ref = next(it) if has_res else None
    o_ref = next(it)
    acc_ref = next(it)
    xln_ref = next(it) if has_ln else None

    j = pl.program_id(1)
    k = pl.program_id(2)

    @pl.when(k == 0)
    def _():
        acc_ref[...] = jnp.zeros_like(acc_ref)

    if has_ln:
        # LayerNorm fused into the matmul, computed once per row tile
        # (j == 0) and cached in a bf16 VMEM scratch for the remaining N
        # tiles; statistics in f32 over the full (resident) row.
        @pl.when(j == 0)
        def _():
            xf = x_ref[...].astype(jnp.float32)
            mean = jnp.mean(xf, axis=-1, keepdims=True)
            var = jnp.mean(jnp.square(xf - mean), axis=-1, keepdims=True)
            xf = (xf - mean) * lax.rsqrt(var + 1e-5)
            xln_ref[...] = (xf * g_ref[...] + bt_ref[...]).astype(xln_ref.dtype)
        x = xln_ref[...]
    else:
        x = x_ref[...]

    acc_ref[...] += jnp.dot(x, w_ref[...], preferred_element_type=jnp.float32)

    @pl.when(k == n_k - 1)
    def _():
        y = acc_ref[...]
        if has_bias:
            y = y + b_ref[...]
        if activation == "quick_gelu":            # CLIP QuickGELU, f32 on EUP
            y = y * jax.nn.sigmoid(1.702 * y)
        if has_res:
            y = y + r_ref[...].astype(jnp.float32)  # fused residual add
        o_ref[...] = y.astype(o_ref.dtype)


def fused_matmul(x, w, bias=None, *, ln=None, residual=None, activation=None,
                 out_dtype=jnp.bfloat16, tm_target=512, tn_target=512,
                 tk_target=1024):
    """y = act(LN(x) @ w + bias) + residual; tiled, bf16 MXU / f32 accumulate.

    Non-divisible M (= B*S) and large non-aligned N (= #classes) are handled
    by zero padding, so tiles never fall back to full-dimension blocks.
    """
    M, K = x.shape
    _, N = w.shape
    has_bias = bias is not None
    has_ln = ln is not None
    has_res = residual is not None

    # --- row tiling: pad M so tm always divides (no full-M fallback) ---
    if M >= tm_target:
        tm = tm_target
    else:
        tm = _round_up(M, 8)
    Mp = _round_up(M, tm)

    # --- column tiling: pad large, non-128-aligned N (e.g. open-vocab C) ---
    if N <= tn_target:
        tn, Np = N, N
    elif N % 128 == 0:
        tn = 128
        for cand in (tn_target, 384, 256):
            if N % cand == 0:
                tn = cand
                break
        Np = N
    else:
        tn = tn_target
        Np = _round_up(N, tn)

    # --- contraction tiling (LN needs the full row resident) ---
    if has_ln or K <= tk_target:
        tk = K
    elif K % 128 == 0:
        tk = 128
        for cand in (tk_target, 768, 512, 384, 256):
            if K % cand == 0:
                tk = cand
                break
    else:
        tk = K  # rare non-aligned K: full-K fallback (still legal blocks)

    gm, gn, gk = Mp // tm, Np // tn, K // tk

    xb = x.astype(jnp.bfloat16)
    if Mp != M:
        xb = jnp.pad(xb, ((0, Mp - M), (0, 0)))
    wb = w.astype(jnp.bfloat16)
    if Np != N:
        wb = jnp.pad(wb, ((0, 0), (0, Np - N)))

    in_specs = [
        pl.BlockSpec((tm, tk), lambda i, j, k: (i, k)),
        pl.BlockSpec((tk, tn), lambda i, j, k: (k, j)),
    ]
    args = [xb, wb]
    if has_bias:
        b2 = bias.astype(jnp.float32).reshape(1, N)
        if Np != N:
            b2 = jnp.pad(b2, ((0, 0), (0, Np - N)))
        in_specs.append(pl.BlockSpec((1, tn), lambda i, j, k: (0, j)))
        args.append(b2)
    if has_ln:
        gamma, beta = ln
        in_specs.append(pl.BlockSpec((1, tk), lambda i, j, k: (0, k)))
        in_specs.append(pl.BlockSpec((1, tk), lambda i, j, k: (0, k)))
        args.append(gamma.astype(jnp.float32).reshape(1, K))
        args.append(beta.astype(jnp.float32).reshape(1, K))
    if has_res:
        rb = residual.astype(jnp.bfloat16)
        if Mp != M or Np != N:
            rb = jnp.pad(rb, ((0, Mp - M), (0, Np - N)))
        in_specs.append(pl.BlockSpec((tm, tn), lambda i, j, k: (i, j)))
        args.append(rb)

    scratch = [pltpu.VMEM((tm, tn), jnp.float32)]
    if has_ln:
        scratch.append(pltpu.VMEM((tm, K), jnp.bfloat16))  # cached LN(x) tile

    # LN cache is (re)filled only at j == 0, so keep j un-sharded on megacore.
    dims = (("parallel", "arbitrary", "arbitrary") if has_ln
            else ("parallel", "parallel", "arbitrary"))

    kernel = functools.partial(
        _fused_matmul_kernel, n_k=gk, has_bias=has_bias, has_ln=has_ln,
        has_res=has_res, activation=activation)

    out = pl.pallas_call(
        kernel,
        out_shape=jax.ShapeDtypeStruct((Mp, Np), out_dtype),
        grid_spec=pltpu.PrefetchScalarGridSpec(
            num_scalar_prefetch=0,
            grid=(gm, gn, gk),
            in_specs=in_specs,
            out_specs=pl.BlockSpec((tm, tn), lambda i, j, k: (i, j)),
            scratch_shapes=scratch,
        ),
        compiler_params=pltpu.CompilerParams(
            dimension_semantics=dims, vmem_limit_bytes=_VMEM_LIMIT),
    )(*args)

    if Mp != M or Np != N:
        out = out[:M, :N]
    return out


# -----------------------------------------------------------------------------
# Fused positional-embedding add + ln_pre
# -----------------------------------------------------------------------------

def _ln_pre_kernel(x_ref, pos_ref, g_ref, b_ref, o_ref):
    x = x_ref[0].astype(jnp.float32) + pos_ref[...].astype(jnp.float32)
    mean = jnp.mean(x, axis=-1, keepdims=True)
    var = jnp.mean(jnp.square(x - mean), axis=-1, keepdims=True)
    y = (x - mean) * lax.rsqrt(var + 1e-5)
    o_ref[0] = (y * g_ref[...] + b_ref[...]).astype(o_ref.dtype)


def add_pos_layernorm(x, pos, gamma, beta):
    """x:[B,S,D] (+ pos[S,D]) -> LayerNorm over D -> bf16 [B,S,D]."""
    B, S, D = x.shape
    return pl.pallas_call(
        _ln_pre_kernel,
        out_shape=jax.ShapeDtypeStruct((B, S, D), jnp.bfloat16),
        grid_spec=pltpu.PrefetchScalarGridSpec(
            num_scalar_prefetch=0,
            grid=(B,),
            in_specs=[
                pl.BlockSpec((1, S, D), lambda b: (b, 0, 0)),
                pl.BlockSpec((S, D), lambda b: (0, 0)),
                pl.BlockSpec((1, D), lambda b: (0, 0)),
                pl.BlockSpec((1, D), lambda b: (0, 0)),
            ],
            out_specs=pl.BlockSpec((1, S, D), lambda b: (b, 0, 0)),
        ),
        compiler_params=pltpu.CompilerParams(
            dimension_semantics=("parallel",),
            vmem_limit_bytes=_VMEM_LIMIT),
    )(x, pos, gamma.reshape(1, D), beta.reshape(1, D))


# -----------------------------------------------------------------------------
# Multi-head attention over 128-lane-aligned head groups
# -----------------------------------------------------------------------------

def _attention_kernel(q_ref, k_ref, v_ref, o_ref, *, hpg, dh,
                      q_off, k_off, v_off):
    # 1/sqrt(d_head) is already folded into the q-projection weights.
    for hh in range(hpg):                       # small static loop (2-4 heads)
        q = q_ref[0, :, pl.ds(q_off + hh * dh, dh)]
        k = k_ref[0, :, pl.ds(k_off + hh * dh, dh)]
        v = v_ref[0, :, pl.ds(v_off + hh * dh, dh)]
        s = lax.dot_general(q, k, (((1,), (1,)), ((), ())),   # q @ k^T, no .T
                            preferred_element_type=jnp.float32)
        s = s - jnp.max(s, axis=-1, keepdims=True)
        p = jnp.exp(s)
        p = p * pl.reciprocal(jnp.sum(p, axis=-1, keepdims=True), approx=True)
        o = jnp.dot(p.astype(jnp.bfloat16), v,
                    preferred_element_type=jnp.float32)
        # write each head directly into its output slice (no end-of-kernel
        # concat, per-head liveness stays bounded)
        o_ref[0, :, pl.ds(hh * dh, dh)] = o.astype(o_ref.dtype)


def multihead_attention(qkv, n_heads):
    """qkv:[B,S,3D] bf16 -> softmax(q k^T) v, written as lane-dense [B,S,D]."""
    B, S, D3 = qkv.shape
    D = D3 // 3
    dh = D // n_heads

    if D % 128 == 0:
        # Head group = smallest multiple of d_head that is 128-lane aligned;
        # divides D because D is a common multiple of d_head and 128.
        gw = dh
        while gw % 128 != 0:
            gw += dh
        n_groups = D // gw
        hpg = gw // dh
        off_k = D // gw
        off_v = 2 * D // gw
        q_spec = pl.BlockSpec((1, S, gw), lambda b, g: (b, 0, g))
        k_spec = pl.BlockSpec((1, S, gw), lambda b, g: (b, 0, off_k + g))
        v_spec = pl.BlockSpec((1, S, gw), lambda b, g: (b, 0, off_v + g))
        q_off = k_off = v_off = 0
    else:
        # tiny-width fallback: one group over all heads, full [S, 3D] slab
        gw, n_groups, hpg = D, 1, n_heads
        slab = pl.BlockSpec((1, S, D3), lambda b, g: (b, 0, 0))
        q_spec = k_spec = v_spec = slab
        q_off, k_off, v_off = 0, D, 2 * D

    return pl.pallas_call(
        functools.partial(_attention_kernel, hpg=hpg, dh=dh,
                          q_off=q_off, k_off=k_off, v_off=v_off),
        out_shape=jax.ShapeDtypeStruct((B, S, D), jnp.bfloat16),
        grid_spec=pltpu.PrefetchScalarGridSpec(
            num_scalar_prefetch=0,
            grid=(B, n_groups),
            in_specs=[q_spec, k_spec, v_spec],
            out_specs=pl.BlockSpec((1, S, gw), lambda b, g: (b, 0, g)),
        ),
        compiler_params=pltpu.CompilerParams(
            dimension_semantics=("parallel", "parallel"),
            vmem_limit_bytes=_VMEM_LIMIT),
    )(qkv, qkv, qkv)


# -----------------------------------------------------------------------------
# Head: ln_post([CLS]) @ proj -> L2 normalize  (then tiled classifier matmul)
# -----------------------------------------------------------------------------

def _feature_kernel(x_ref, g_ref, b_ref, proj_ref, o_ref):
    x = x_ref[...].astype(jnp.float32)
    mean = jnp.mean(x, axis=-1, keepdims=True)
    var = jnp.mean(jnp.square(x - mean), axis=-1, keepdims=True)
    y = (x - mean) * lax.rsqrt(var + 1e-5) * g_ref[...] + b_ref[...]
    f = jnp.dot(y.astype(jnp.bfloat16), proj_ref[...],
                preferred_element_type=jnp.float32)
    f = f * lax.rsqrt(jnp.sum(f * f, axis=-1, keepdims=True))
    o_ref[...] = f


def image_features(x_cls, gamma, beta, proj):
    """x_cls:[B,D] -> ln_post -> @ proj (bf16 MXU) -> L2 normalize (f32)."""
    B, D = x_cls.shape
    E = proj.shape[1]
    return pl.pallas_call(
        _feature_kernel,
        out_shape=jax.ShapeDtypeStruct((B, E), jnp.float32),
        grid=(1,),
        in_specs=[
            pl.BlockSpec((B, D), lambda i: (0, 0)),
            pl.BlockSpec((1, D), lambda i: (0, 0)),
            pl.BlockSpec((1, D), lambda i: (0, 0)),
            pl.BlockSpec((D, E), lambda i: (0, 0)),
        ],
        out_specs=pl.BlockSpec((B, E), lambda i: (0, 0)),
        compiler_params=pltpu.CompilerParams(vmem_limit_bytes=_VMEM_LIMIT),
    )(x_cls, gamma.reshape(1, D), beta.reshape(1, D),
      proj.astype(jnp.bfloat16))


# -----------------------------------------------------------------------------
# Model wrapper (parameter setup + glue reshapes in plain JAX)
# -----------------------------------------------------------------------------

def init_params(key, *, in_ch=3, patch=8, width=128, layers=2, heads=4,
                mlp_ratio=4, embed_dim=128, num_classes=8, seq_len=17):
    ks = iter(jax.random.split(key, 64))

    def n(shape, s=0.02, dtype=jnp.bfloat16):
        return (s * jax.random.normal(next(ks), shape, jnp.float32)).astype(dtype)

    d_head = width // heads
    attn_scale = 1.0 / float(d_head) ** 0.5

    params = {
        # conv1 (kernel==stride==patch, no bias) flattened to a matmul weight
        "conv_w": n((in_ch * patch * patch, width)),
        "class_embedding": n((width,), dtype=jnp.float32),
        "positional_embedding": n((seq_len, width), dtype=jnp.float32),
        "ln_pre_g": jnp.ones((width,), jnp.float32),
        "ln_pre_b": jnp.zeros((width,), jnp.float32),
        "ln_post_g": jnp.ones((width,), jnp.float32),
        "ln_post_b": jnp.zeros((width,), jnp.float32),
        "proj": n((width, embed_dim), dtype=jnp.float32),
        "blocks": [],
    }
    for _ in range(layers):
        qkv_w = n((width, 3 * width), dtype=jnp.float32)
        qkv_b = jnp.zeros((3 * width,), jnp.float32)
        # fold 1/sqrt(d_head) into the q columns / bias at parameter-prep time
        qkv_w = qkv_w.at[:, :width].multiply(attn_scale)
        qkv_b = qkv_b.at[:width].multiply(attn_scale)
        params["blocks"].append({
            "ln1_g": jnp.ones((width,), jnp.float32),
            "ln1_b": jnp.zeros((width,), jnp.float32),
            "qkv_w": qkv_w.astype(jnp.bfloat16),
            "qkv_b": qkv_b,
            "out_w": n((width, width)),
            "out_b": jnp.zeros((width,), jnp.float32),
            "ln2_g": jnp.ones((width,), jnp.float32),
            "ln2_b": jnp.zeros((width,), jnp.float32),
            "fc1_w": n((width, mlp_ratio * width)),
            "fc1_b": jnp.zeros((mlp_ratio * width,), jnp.float32),
            "fc2_w": n((mlp_ratio * width, width)),
            "fc2_b": jnp.zeros((width,), jnp.float32),
        })
    # zero-shot classifier: unit-normed class embeddings stacked on dim=1
    cls_w = jax.random.normal(next(ks), (embed_dim, num_classes), jnp.float32)
    cls_w = cls_w / jnp.linalg.norm(cls_w, axis=0, keepdims=True)
    params["classifier"] = cls_w
    return params


def clip_classifier_forward(images, params, *, patch, heads):
    # layout: images NCHW [B, C, H, W] (PyTorch convention)
    B, C, H, W = images.shape
    D = params["conv_w"].shape[1]
    gh, gw_ = H // patch, W // patch

    # --- patch embedding: conv(kernel=stride=P, no bias) == patchify + matmul
    patches = images.astype(jnp.bfloat16).reshape(B, C, gh, patch, gw_, patch)
    patches = patches.transpose(0, 2, 4, 1, 3, 5).reshape(
        B * gh * gw_, C * patch * patch)
    x = fused_matmul(patches, params["conv_w"])
    x = x.reshape(B, gh * gw_, D)

    # --- prepend class token; pos-emb add + ln_pre fused into one kernel ---
    cls_tok = jnp.broadcast_to(
        params["class_embedding"].astype(jnp.bfloat16)[None, None, :], (B, 1, D))
    x = jnp.concatenate([cls_tok, x], axis=1)              # [B, S, D]
    S = x.shape[1]
    x = add_pos_layernorm(x, params["positional_embedding"],
                          params["ln_pre_g"], params["ln_pre_b"])

    x2 = x.reshape(B * S, D)                                # bf16 residual stream
    # --- transformer (ResidualAttentionBlocks) ---
    for blk in params["blocks"]:
        # LN1 fused into QKV projection (LN cached per row tile)
        qkv = fused_matmul(x2, blk["qkv_w"], blk["qkv_b"],
                           ln=(blk["ln1_g"], blk["ln1_b"]))          # [B*S, 3D]
        attn = multihead_attention(qkv.reshape(B, S, 3 * D), heads)  # [B, S, D]
        # out-projection with the residual add fused into the epilogue
        x2 = fused_matmul(attn.reshape(B * S, D), blk["out_w"], blk["out_b"],
                          residual=x2)
        # LN2 fused into FC1 + QuickGELU; residual fused into FC2
        h1 = fused_matmul(x2, blk["fc1_w"], blk["fc1_b"],
                          ln=(blk["ln2_g"], blk["ln2_b"]),
                          activation="quick_gelu")
        x2 = fused_matmul(h1, blk["fc2_w"], blk["fc2_b"], residual=x2)

    x = x2.reshape(B, S, D)

    # --- head: ln_post on [CLS], project, L2-normalize, zero-shot classify ---
    # TODO(synk): the exact return of model.visual depends on the adapter/mask
    # variant; here we return zero-shot logits (normed features @ classifier).
    feats = image_features(x[:, 0, :], params["ln_post_g"],
                           params["ln_post_b"], params["proj"])
    logits = fused_matmul(feats, params["classifier"], out_dtype=jnp.float32)
    return logits


# -----------------------------------------------------------------------------

if __name__ == "__main__":
    key = jax.random.PRNGKey(0)
    k_img, k_par = jax.random.split(key)

    # small ViT-style config with 128-lane-friendly width: patch=8 on 32x32
    # -> 16 patches + CLS = 17 tokens, width 128, 4 heads (d_head 32)
    B, C, H, W = 2, 3, 32, 32
    patch, width, heads = 8, 128, 4
    images = jax.random.normal(k_img, (B, C, H, W), jnp.float32)

    seq_len = (H // patch) * (W // patch) + 1
    params = init_params(k_par, in_ch=C, patch=patch, width=width, layers=2,
                         heads=heads, mlp_ratio=4, embed_dim=128,
                         num_classes=8, seq_len=seq_len)

    fwd = jax.jit(functools.partial(clip_classifier_forward, patch=patch,
                                    heads=heads))
    logits = fwd(images, params)
    jax.block_until_ready(logits)
    assert logits.shape == (B, 8) and logits.dtype == jnp.float32
    print("KERNEL_OK")
</pallas_src>

<mosaic_0001>
module attributes {stable_mosaic.version = 11 : i64} {
  func.func @_fused_matmul_kernel(%arg0: i32, %arg1: i32, %arg2: i32, %arg3: memref<32x192xbf16, #tpu.memory_space<vmem>>, %arg4: memref<192x128xbf16, #tpu.memory_space<vmem>>, %arg5: memref<32x128xbf16, #tpu.memory_space<vmem>>, %arg6: memref<32x128xf32, #tpu.memory_space<vmem>>) attributes {dimension_semantics = [#tpu.dimension_semantics<parallel>, #tpu.dimension_semantics<parallel>, #tpu.dimension_semantics<arbitrary>], iteration_bounds = array<i64: 1, 1, 1>, scalar_prefetch = 0 : i64, scratch_operands = 1 : i64, tpu.core_type = #tpu.core_type<tc>, window_params = [{transform_indices = @transform_0, window_bounds = array<i64: 32, 192>}, {transform_indices = @transform_1, window_bounds = array<i64: 192, 128>}, {transform_indices = @transform_2, window_bounds = array<i64: 32, 128>}]} {
    %c0_i32 = arith.constant 0 : i32
    %0 = arith.cmpi eq, %arg2, %c0_i32 : i32
    %1 = arith.extui %0 : i1 to i32
    %c0_i32_0 = arith.constant 0 : i32
    %2 = arith.cmpi ne, %1, %c0_i32_0 : i32
    scf.if %2 {
      %cst_10 = arith.constant 0.000000e+00 : f32
      %12 = vector.broadcast %cst_10 : f32 to vector<32x128xf32>
      %c0_11 = arith.constant 0 : index
      %c0_12 = arith.constant 0 : index
      %13 = vector.load %arg6[%c0_11, %c0_12] : memref<32x128xf32, #tpu.memory_space<vmem>>, vector<32x128xf32>
      tpu.vector_store %arg6[%c0_11, %c0_12], %12 {strides = array<i32>} : memref<32x128xf32, #tpu.memory_space<vmem>>, vector<32x128xf32>,
    } else {
    }
    %c0 = arith.constant 0 : index
    %c0_1 = arith.constant 0 : index
    %3 = vector.load %arg3[%c0, %c0_1] : memref<32x192xbf16, #tpu.memory_space<vmem>>, vector<32x192xbf16>
    %c0_2 = arith.constant 0 : index
    %c0_3 = arith.constant 0 : index
    %4 = vector.load %arg6[%c0_2, %c0_3] : memref<32x128xf32, #tpu.memory_space<vmem>>, vector<32x128xf32>
    %c0_4 = arith.constant 0 : index
    %c0_5 = arith.constant 0 : index
    %5 = vector.load %arg4[%c0_4, %c0_5] : memref<192x128xbf16, #tpu.memory_space<vmem>>, vector<192x128xbf16>
    %cst = arith.constant dense<0.000000e+00> : vector<32x128xf32>
    %6 = tpu.matmul %3, %5, %cst {dimension_numbers = #tpu.dot_dimension_numbers<[1], [0], [0], [1], [0, 0, 1, 1], [], []>} : vector<32x192xbf16>, vector<192x128xbf16>, vector<32x128xf32> -> vector<32x128xf32>
    %7 = arith.addf %4, %6 : vector<32x128xf32>
    %c0_6 = arith.constant 0 : index
    %c0_7 = arith.constant 0 : index
    %8 = vector.load %arg6[%c0_6, %c0_7] : memref<32x128xf32, #tpu.memory_space<vmem>>, vector<32x128xf32>
    tpu.vector_store %arg6[%c0_6, %c0_7], %7 {strides = array<i32>} : memref<32x128xf32, #tpu.memory_space<vmem>>, vector<32x128xf32>,
    %c0_i32_8 = arith.constant 0 : i32
    %9 = arith.cmpi eq, %arg2, %c0_i32_8 : i32
    %10 = arith.extui %9 : i1 to i32
    %c0_i32_9 = arith.constant 0 : i32
    %11 = arith.cmpi ne, %10, %c0_i32_9 : i32
    scf.if %11 {
      %c0_10 = arith.constant 0 : index
      %c0_11 = arith.constant 0 : index
      %12 = vector.load %arg6[%c0_10, %c0_11] : memref<32x128xf32, #tpu.memory_space<vmem>>, vector<32x128xf32>
      %13 = arith.truncf %12 : vector<32x128xf32> to vector<32x128xbf16>
      %c0_12 = arith.constant 0 : index
      %c0_13 = arith.constant 0 : index
      %14 = vector.load %arg5[%c0_12, %c0_13] : memref<32x128xbf16, #tpu.memory_space<vmem>>, vector<32x128xbf16>
      tpu.vector_store %arg5[%c0_12, %c0_13], %13 {strides = array<i32>} : memref<32x128xbf16, #tpu.memory_space<vmem>>, vector<32x128xbf16>,
    } else {
    }
    return
  }
  func.func @transform_0(%arg0: i32, %arg1: i32, %arg2: i32) -> (i32, i32) {
    %c0_i32 = arith.constant 0 : i32
    return %arg0, %arg2 : i32, i32
  }
  func.func @transform_1(%arg0: i32, %arg1: i32, %arg2: i32) -> (i32, i32) {
    %c0_i32 = arith.constant 0 : i32
    return %arg2, %arg1 : i32, i32
  }
  func.func @transform_2(%arg0: i32, %arg1: i32, %arg2: i32) -> (i32, i32) {
    %c0_i32 = arith.constant 0 : i32
    return %arg0, %arg1 : i32, i32
  }
}

module attributes {stable_mosaic.version = 11 : i64} {
  func.func @_ln_pre_kernel(%arg0: i32, %arg1: memref<1x17x128xbf16, #tpu.memory_space<vmem>>, %arg2: memref<17x128xf32, #tpu.memory_space<vmem>>, %arg3: memref<1x128xf32, #tpu.memory_space<vmem>>, %arg4: memref<1x128xf32, #tpu.memory_space<vmem>>, %arg5: memref<1x17x128xbf16, #tpu.memory_space<vmem>>) attributes {dimension_semantics = [#tpu.dimension_semantics<parallel>], iteration_bounds = array<i64: 2>, scalar_prefetch = 0 : i64, scratch_operands = 0 : i64, tpu.core_type = #tpu.core_type<tc>, window_params = [{transform_indices = @transform_0, window_bounds = array<i64: 1, 17, 128>}, {pipeline_mode = #tpu.pipeline_mode<synchronous>, transform_indices = @transform_1, window_bounds = array<i64: 17, 128>}, {pipeline_mode = #tpu.pipeline_mode<synchronous>, transform_indices = @transform_2, window_bounds = array<i64: 1, 128>}, {pipeline_mode = #tpu.pipeline_mode<synchronous>, transform_indices = @transform_3, window_bounds = array<i64: 1, 128>}, {transform_indices = @transform_4, window_bounds = array<i64: 1, 17, 128>}]} {
    %c0 = arith.constant 0 : index
    %c0_0 = arith.constant 0 : index
    %c0_1 = arith.constant 0 : index
    %0 = vector.load %arg1[%c0, %c0_0, %c0_1] : memref<1x17x128xbf16, #tpu.memory_space<vmem>>, vector<1x17x128xbf16>
    %1 = vector.shape_cast %0 : vector<1x17x128xbf16> to vector<17x128xbf16>
    %2 = arith.extf %1 : vector<17x128xbf16> to vector<17x128xf32>
    %c0_2 = arith.constant 0 : index
    %c0_3 = arith.constant 0 : index
    %3 = vector.load %arg2[%c0_2, %c0_3] : memref<17x128xf32, #tpu.memory_space<vmem>>, vector<17x128xf32>
    %4 = arith.addf %2, %3 : vector<17x128xf32>
    %cst = arith.constant dense<0.000000e+00> : vector<17xf32>
    %5 = vector.multi_reduction <add>, %4, %cst [1] : vector<17x128xf32> to vector<17xf32>
    %6 = vector.shape_cast %5 : vector<17xf32> to vector<17x1xf32>
    %cst_4 = arith.constant 1.280000e+02 : f32
    %7 = vector.broadcast %cst_4 : f32 to vector<17x1xf32>
    %8 = arith.divf %6, %7 : vector<17x1xf32>
    %9 = vector.broadcast %8 : vector<17x1xf32> to vector<17x128xf32>
    %10 = arith.subf %4, %9 : vector<17x128xf32>
    %11 = arith.mulf %10, %10 : vector<17x128xf32>
    %cst_5 = arith.constant dense<0.000000e+00> : vector<17xf32>
    %12 = vector.multi_reduction <add>, %11, %cst_5 [1] : vector<17x128xf32> to vector<17xf32>
    %13 = vector.shape_cast %12 : vector<17xf32> to vector<17x1xf32>
    %cst_6 = arith.constant 1.280000e+02 : f32
    %14 = vector.broadcast %cst_6 : f32 to vector<17x1xf32>
    %15 = arith.divf %13, %14 : vector<17x1xf32>
    %16 = vector.broadcast %8 : vector<17x1xf32> to vector<17x128xf32>
    %17 = arith.subf %4, %16 : vector<17x128xf32>
    %cst_7 = arith.constant 9.99999974E-6 : f32
    %18 = vector.broadcast %cst_7 : f32 to vector<17x1xf32>
    %19 = arith.addf %15, %18 : vector<17x1xf32>
    %20 = math.rsqrt %19 : vector<17x1xf32>
    %21 = vector.broadcast %20 : vector<17x1xf32> to vector<17x128xf32>
    %22 = arith.mulf %17, %21 : vector<17x128xf32>
    %c0_8 = arith.constant 0 : index
    %c0_9 = arith.constant 0 : index
    %23 = vector.load %arg3[%c0_8, %c0_9] : memref<1x128xf32, #tpu.memory_space<vmem>>, vector<1x128xf32>
    %24 = vector.broadcast %23 : vector<1x128xf32> to vector<17x128xf32>
    %25 = arith.mulf %22, %24 : vector<17x128xf32>
    %c0_10 = arith.constant 0 : index
    %c0_11 = arith.constant 0 : index
    %26 = vector.load %arg4[%c0_10, %c0_11] : memref<1x128xf32, #tpu.memory_space<vmem>>, vector<1x128xf32>
    %27 = vector.broadcast %26 : vector<1x128xf32> to vector<17x128xf32>
    %28 = arith.addf %25, %27 : vector<17x128xf32>
    %29 = arith.truncf %28 : vector<17x128xf32> to vector<17x128xbf16>
    %c0_12 = arith.constant 0 : index
    %c0_13 = arith.constant 0 : index
    %c0_14 = arith.constant 0 : index
    %30 = vector.load %arg5[%c0_12, %c0_13, %c0_14] : memref<1x17x128xbf16, #tpu.memory_space<vmem>>, vector<1x17x128xbf16>
    %31 = vector.shape_cast %30 : vector<1x17x128xbf16> to vector<17x128xbf16>
    %32 = vector.shape_cast %29 : vector<17x128xbf16> to vector<1x17x128xbf16>
    tpu.vector_store %arg5[%c0_12, %c0_13, %c0_14], %32 {strides = array<i32>} : memref<1x17x128xbf16, #tpu.memory_space<vmem>>, vector<1x17x128xbf16>,
    return
  }
  func.func @transform_0(%arg0: i32) -> (i32, i32, i32) {
    %c0_i32 = arith.constant 0 : i32
    %c0_i32_0 = arith.constant 0 : i32
    %c0_i32_1 = arith.constant 0 : i32
    return %arg0, %c0_i32, %c0_i32_0 : i32, i32, i32
  }
  func.func @transform_1(%arg0: i32) -> (i32, i32) {
    %c0_i32 = arith.constant 0 : i32
    %c0_i32_0 = arith.constant 0 : i32
    %c0_i32_1 = arith.constant 0 : i32
    return %c0_i32, %c0_i32_0 : i32, i32
  }
  func.func @transform_2(%arg0: i32) -> (i32, i32) {
    %c0_i32 = arith.constant 0 : i32
    %c0_i32_0 = arith.constant 0 : i32
    %c0_i32_1 = arith.constant 0 : i32
    return %c0_i32, %c0_i32_0 : i32, i32
  }
  func.func @transform_3(%arg0: i32) -> (i32, i32) {
    %c0_i32 = arith.constant 0 : i32
    %c0_i32_0 = arith.constant 0 : i32
    %c0_i32_1 = arith.constant 0 : i32
    return %c0_i32, %c0_i32_0 : i32, i32
  }
  func.func @transform_4(%arg0: i32) -> (i32, i32, i32) {
    %c0_i32 = arith.constant 0 : i32
    %c0_i32_0 = arith.constant 0 : i32
    %c0_i32_1 = arith.constant 0 : i32
    return %arg0, %c0_i32, %c0_i32_0 : i32, i32, i32
  }
}

module attributes {stable_mosaic.version = 11 : i64} {
  func.func @_fused_matmul_kernel(%arg0: i32, %arg1: i32, %arg2: i32, %arg3: memref<40x128xbf16, #tpu.memory_space<vmem>>, %arg4: memref<128x384xbf16, #tpu.memory_space<vmem>>, %arg5: memref<1x384xf32, #tpu.memory_space<vmem>>, %arg6: memref<1x128xf32, #tpu.memory_space<vmem>>, %arg7: memref<1x128xf32, #tpu.memory_space<vmem>>, %arg8: memref<40x384xbf16, #tpu.memory_space<vmem>>, %arg9: memref<40x384xf32, #tpu.memory_space<vmem>>, %arg10: memref<40x128xbf16, #tpu.memory_space<vmem>>) attributes {dimension_semantics = [#tpu.dimension_semantics<parallel>, #tpu.dimension_semantics<arbitrary>, #tpu.dimension_semantics<arbitrary>], iteration_bounds = array<i64: 1, 1, 1>, scalar_prefetch = 0 : i64, scratch_operands = 2 : i64, tpu.core_type = #tpu.core_type<tc>, window_params = [{transform_indices = @transform_0, window_bounds = array<i64: 40, 128>}, {transform_indices = @transform_1, window_bounds = array<i64: 128, 384>}, {transform_indices = @transform_2, window_bounds = array<i64: 1, 384>}, {transform_indices = @transform_3, window_bounds = array<i64: 1, 128>}, {transform_indices = @transform_4, window_bounds = array<i64: 1, 128>}, {transform_indices = @transform_5, window_bounds = array<i64: 40, 384>}]} {
    %c0_i32 = arith.constant 0 : i32
    %0 = arith.cmpi eq, %arg2, %c0_i32 : i32
    %1 = arith.extui %0 : i1 to i32
    %c0_i32_0 = arith.constant 0 : i32
    %2 = arith.cmpi ne, %1, %c0_i32_0 : i32
    scf.if %2 {
      %cst_12 = arith.constant 0.000000e+00 : f32
      %15 = vector.broadcast %cst_12 : f32 to vector<40x384xf32>
      %c0_13 = arith.constant 0 : index
      %c0_14 = arith.constant 0 : index
      %16 = vector.load %arg9[%c0_13, %c0_14] : memref<40x384xf32, #tpu.memory_space<vmem>>, vector<40x384xf32>
      tpu.vector_store %arg9[%c0_13, %c0_14], %15 {strides = array<i32>} : memref<40x384xf32, #tpu.memory_space<vmem>>, vector<40x384xf32>,
    } else {
    }
    %c0_i32_1 = arith.constant 0 : i32
    %3 = arith.cmpi eq, %arg1, %c0_i32_1 : i32
    %4 = arith.extui %3 : i1 to i32
    %c0_i32_2 = arith.constant 0 : i32
    %5 = arith.cmpi ne, %4, %c0_i32_2 : i32
    scf.if %5 {
      %c0_12 = arith.constant 0 : index
      %c0_13 = arith.constant 0 : index
      %15 = vector.load %arg3[%c0_12, %c0_13] : memref<40x128xbf16, #tpu.memory_space<vmem>>, vector<40x128xbf16>
      %16 = arith.extf %15 : vector<40x128xbf16> to vector<40x128xf32>
      %cst_14 = arith.constant dense<0.000000e+00> : vector<40xf32>
      %17 = vector.multi_reduction <add>, %16, %cst_14 [1] : vector<40x128xf32> to vector<40xf32>
      %18 = vector.shape_cast %17 : vector<40xf32> to vector<40x1xf32>
      %cst_15 = arith.constant 1.280000e+02 : f32
      %19 = vector.broadcast %cst_15 : f32 to vector<40x1xf32>
      %20 = arith.divf %18, %19 : vector<40x1xf32>
      %21 = vector.broadcast %20 : vector<40x1xf32> to vector<40x128xf32>
      %22 = arith.subf %16, %21 : vector<40x128xf32>
      %23 = arith.mulf %22, %22 : vector<40x128xf32>
      %cst_16 = arith.constant dense<0.000000e+00> : vector<40xf32>
      %24 = vector.multi_reduction <add>, %23, %cst_16 [1] : vector<40x128xf32> to vector<40xf32>
      %25 = vector.shape_cast %24 : vector<40xf32> to vector<40x1xf32>
      %cst_17 = arith.constant 1.280000e+02 : f32
      %26 = vector.broadcast %cst_17 : f32 to vector<40x1xf32>
      %27 = arith.divf %25, %26 : vector<40x1xf32>
      %28 = vector.broadcast %20 : vector<40x1xf32> to vector<40x128xf32>
      %29 = arith.subf %16, %28 : vector<40x128xf32>
      %cst_18 = arith.constant 9.99999974E-6 : f32
      %30 = vector.broadcast %cst_18 : f32 to vector<40x1xf32>
      %31 = arith.addf %27, %30 : vector<40x1xf32>
      %32 = math.rsqrt %31 : vector<40x1xf32>
      %33 = vector.broadcast %32 : vector<40x1xf32> to vector<40x128xf32>
      %34 = arith.mulf %29, %33 : vector<40x128xf32>
      %c0_19 = arith.constant 0 : index
      %c0_20 = arith.constant 0 : index
      %35 = vector.load %arg6[%c0_19, %c0_20] : memref<1x128xf32, #tpu.memory_space<vmem>>, vector<1x128xf32>
      %36 = vector.broadcast %35 : vector<1x128xf32> to vector<40x128xf32>
      %37 = arith.mulf %34, %36 : vector<40x128xf32>
      %c0_21 = arith.constant 0 : index
      %c0_22 = arith.constant 0 : index
      %38 = vector.load %arg7[%c0_21, %c0_22] : memref<1x128xf32, #tpu.memory_space<vmem>>, vector<1x128xf32>
      %39 = vector.broadcast %38 : vector<1x128xf32> to vector<40x128xf32>
      %40 = arith.addf %37, %39 : vector<40x128xf32>
      %41 = arith.truncf %40 : vector<40x128xf32> to vector<40x128xbf16>
      %c0_23 = arith.constant 0 : index
      %c0_24 = arith.constant 0 : index
      %42 = vector.load %arg10[%c0_23, %c0_24] : memref<40x128xbf16, #tpu.memory_space<vmem>>, vector<40x128xbf16>
      tpu.vector_store %arg10[%c0_23, %c0_24], %41 {strides = array<i32>} : memref<40x128xbf16, #tpu.memory_space<vmem>>, vector<40x128xbf16>,
    } else {
    }
    %c0 = arith.constant 0 : index
    %c0_3 = arith.constant 0 : index
    %6 = vector.load %arg10[%c0, %c0_3] : memref<40x128xbf16, #tpu.memory_space<vmem>>, vector<40x128xbf16>
    %c0_4 = arith.constant 0 : index
    %c0_5 = arith.constant 0 : index
    %7 = vector.load %arg9[%c0_4, %c0_5] : memref<40x384xf32, #tpu.memory_space<vmem>>, vector<40x384xf32>
    %c0_6 = arith.constant 0 : index
    %c0_7 = arith.constant 0 : index
    %8 = vector.load %arg4[%c0_6, %c0_7] : memref<128x384xbf16, #tpu.memory_space<vmem>>, vector<128x384xbf16>
    %cst = arith.constant dense<0.000000e+00> : vector<40x384xf32>
    %9 = tpu.matmul %6, %8, %cst {dimension_numbers = #tpu.dot_dimension_numbers<[1], [0], [0], [1], [0, 0, 1, 1], [], []>} : vector<40x128xbf16>, vector<128x384xbf16>, vector<40x384xf32> -> vector<40x384xf32>
    %10 = arith.addf %7, %9 : vector<40x384xf32>
    %c0_8 = arith.constant 0 : index
    %c0_9 = arith.constant 0 : index
    %11 = vector.load %arg9[%c0_8, %c0_9] : memref<40x384xf32, #tpu.memory_space<vmem>>, vector<40x384xf32>
    tpu.vector_store %arg9[%c0_8, %c0_9], %10 {strides = array<i32>} : memref<40x384xf32, #tpu.memory_space<vmem>>, vector<40x384xf32>,
    %c0_i32_10 = arith.constant 0 : i32
    %12 = arith.cmpi eq, %arg2, %c0_i32_10 : i32
    %13 = arith.extui %12 : i1 to i32
    %c0_i32_11 = arith.constant 0 : i32
    %14 = arith.cmpi ne, %13, %c0_i32_11 : i32
    scf.if %14 {
      %c0_12 = arith.constant 0 : index
      %c0_13 = arith.constant 0 : index
      %15 = vector.load %arg9[%c0_12, %c0_13] : memref<40x384xf32, #tpu.memory_space<vmem>>, vector<40x384xf32>
      %c0_14 = arith.constant 0 : index
      %c0_15 = arith.constant 0 : index
      %16 = vector.load %arg5[%c0_14, %c0_15] : memref<1x384xf32, #tpu.memory_space<vmem>>, vector<1x384xf32>
      %17 = vector.broadcast %16 : vector<1x384xf32> to vector<40x384xf32>
      %18 = arith.addf %15, %17 : vector<40x384xf32>
      %19 = arith.truncf %18 : vector<40x384xf32> to vector<40x384xbf16>
      %c0_16 = arith.constant 0 : index
      %c0_17 = arith.constant 0 : index
      %20 = vector.load %arg8[%c0_16, %c0_17] : memref<40x384xbf16, #tpu.memory_space<vmem>>, vector<40x384xbf16>
      tpu.vector_store %arg8[%c0_16, %c0_17], %19 {strides = array<i32>} : memref<40x384xbf16, #tpu.memory_space<vmem>>, vector<40x384xbf16>,
    } else {
    }
    return
  }
  func.func @transform_0(%arg0: i32, %arg1: i32, %arg2: i32) -> (i32, i32) {
    %c0_i32 = arith.constant 0 : i32
    return %arg0, %arg2 : i32, i32
  }
  func.func @transform_1(%arg0: i32, %arg1: i32, %arg2: i32) -> (i32, i32) {
    %c0_i32 = arith.constant 0 : i32
    return %arg2, %arg1 : i32, i32
  }
  func.func @transform_2(%arg0: i32, %arg1: i32, %arg2: i32) -> (i32, i32) {
    %c0_i32 = arith.constant 0 : i32
    %c0_i32_0 = arith.constant 0 : i32
    return %c0_i32, %arg1 : i32, i32
  }
  func.func @transform_3(%arg0: i32, %arg1: i32, %arg2: i32) -> (i32, i32) {
    %c0_i32 = arith.constant 0 : i32
    %c0_i32_0 = arith.constant 0 : i32
    return %c0_i32, %arg2 : i32, i32
  }
  func.func @transform_4(%arg0: i32, %arg1: i32, %arg2: i32) -> (i32, i32) {
    %c0_i32 = arith.constant 0 : i32
    %c0_i32_0 = arith.constant 0 : i32
    return %c0_i32, %arg2 : i32, i32
  }
  func.func @transform_5(%arg0: i32, %arg1: i32, %arg2: i32) -> (i32, i32) {
    %c0_i32 = arith.constant 0 : i32
    return %arg0, %arg1 : i32, i32
  }
}

module attributes {stable_mosaic.version = 11 : i64} {
  func.func @_attention_kernel(%arg0: i32, %arg1: i32, %arg2: memref<1x17x128xbf16, #tpu.memory_space<vmem>>, %arg3: memref<1x17x128xbf16, #tpu.memory_space<vmem>>, %arg4: memref<1x17x128xbf16, #tpu.memory_space<vmem>>, %arg5: memref<1x17x128xbf16, #tpu.memory_space<vmem>>) attributes {dimension_semantics = [#tpu.dimension_semantics<parallel>, #tpu.dimension_semantics<parallel>], iteration_bounds = array<i64: 2, 1>, scalar_prefetch = 0 : i64, scratch_operands = 0 : i64, tpu.core_type = #tpu.core_type<tc>, window_params = [{transform_indices = @transform_0, window_bounds = array<i64: 1, 17, 128>}, {transform_indices = @transform_1, window_bounds = array<i64: 1, 17, 128>}, {transform_indices = @transform_2, window_bounds = array<i64: 1, 17, 128>}, {transform_indices = @transform_3, window_bounds = array<i64: 1, 17, 128>}]} {
    %c0 = arith.constant 0 : index
    %c0_0 = arith.constant 0 : index
    %c0_1 = arith.constant 0 : index
    %0 = vector.load %arg2[%c0, %c0_0, %c0_1] : memref<1x17x128xbf16, #tpu.memory_space<vmem>>, vector<1x17x32xbf16>
    %1 = vector.shape_cast %0 : vector<1x17x32xbf16> to vector<17x32xbf16>
    %c0_2 = arith.constant 0 : index
    %c0_3 = arith.constant 0 : index
    %c0_4 = arith.constant 0 : index
    %2 = vector.load %arg3[%c0_2, %c0_3, %c0_4] : memref<1x17x128xbf16, #tpu.memory_space<vmem>>, vector<1x17x32xbf16>
    %3 = vector.shape_cast %2 : vector<1x17x32xbf16> to vector<17x32xbf16>
    %c0_5 = arith.constant 0 : index
    %c0_6 = arith.constant 0 : index
    %c0_7 = arith.constant 0 : index
    %4 = vector.load %arg4[%c0_5, %c0_6, %c0_7] : memref<1x17x128xbf16, #tpu.memory_space<vmem>>, vector<1x17x32xbf16>
    %5 = vector.shape_cast %4 : vector<1x17x32xbf16> to vector<17x32xbf16>
    %cst = arith.constant dense<0.000000e+00> : vector<17x17xf32>
    %6 = tpu.matmul %1, %3, %cst {dimension_numbers = #tpu.dot_dimension_numbers<[1], [1], [0], [0], [0, 0, 1, 0], [], []>} : vector<17x32xbf16>, vector<17x32xbf16>, vector<17x17xf32> -> vector<17x17xf32>
    %cst_8 = arith.constant dense<0xFF800000> : vector<17xf32>
    %7 = vector.multi_reduction <maximumf>, %6, %cst_8 [1] : vector<17x17xf32> to vector<17xf32>
    %8 = vector.shape_cast %7 : vector<17xf32> to vector<17x1xf32>
    %9 = vector.broadcast %8 : vector<17x1xf32> to vector<17x17xf32>
    %10 = arith.subf %6, %9 : vector<17x17xf32>
    %11 = math.exp %10 : vector<17x17xf32>
    %cst_9 = arith.constant dense<0.000000e+00> : vector<17xf32>
    %12 = vector.multi_reduction <add>, %11, %cst_9 [1] : vector<17x17xf32> to vector<17xf32>
    %13 = vector.shape_cast %12 : vector<17xf32> to vector<17x1xf32>
    %14 = tpu.reciprocal %13 {approx = true} : vector<17x1xf32> -> vector<17x1xf32>
    %15 = vector.broadcast %14 : vector<17x1xf32> to vector<17x17xf32>
    %16 = arith.mulf %11, %15 : vector<17x17xf32>
    %17 = arith.truncf %16 : vector<17x17xf32> to vector<17x17xbf16>
    %cst_10 = arith.constant dense<0.000000e+00> : vector<17x32xf32>
    %18 = tpu.matmul %17, %5, %cst_10 {dimension_numbers = #tpu.dot_dimension_numbers<[1], [0], [0], [1], [0, 0, 1, 1], [], []>} : vector<17x17xbf16>, vector<17x32xbf16>, vector<17x32xf32> -> vector<17x32xf32>
    %19 = arith.truncf %18 : vector<17x32xf32> to vector<17x32xbf16>
    %c0_11 = arith.constant 0 : index
    %c0_12 = arith.constant 0 : index
    %c0_13 = arith.constant 0 : index
    %20 = vector.load %arg5[%c0_11, %c0_12, %c0_13] : memref<1x17x128xbf16, #tpu.memory_space<vmem>>, vector<1x17x32xbf16>
    %21 = vector.shape_cast %20 : vector<1x17x32xbf16> to vector<17x32xbf16>
    %22 = vector.shape_cast %19 : vector<17x32xbf16> to vector<1x17x32xbf16>
    tpu.vector_store %arg5[%c0_11, %c0_12, %c0_13], %22 {strides = array<i32>} : memref<1x17x128xbf16, #tpu.memory_space<vmem>>, vector<1x17x32xbf16>,
    %c0_14 = arith.constant 0 : index
    %c0_15 = arith.constant 0 : index
    %c32 = arith.constant 32 : index
    %23 = vector.load %arg2[%c0_14, %c0_15, %c32] : memref<1x17x128xbf16, #tpu.memory_space<vmem>>, vector<1x17x32xbf16>
    %24 = vector.shape_cast %23 : vector<1x17x32xbf16> to vector<17x32xbf16>
    %c0_16 = arith.constant 0 : index
    %c0_17 = arith.constant 0 : index
    %c32_18 = arith.constant 32 : index
    %25 = vector.load %arg3[%c0_16, %c0_17, %c32_18] : memref<1x17x128xbf16, #tpu.memory_space<vmem>>, vector<1x17x32xbf16>
    %26 = vector.shape_cast %25 : vector<1x17x32xbf16> to vector<17x32xbf16>
    %c0_19 = arith.constant 0 : index
    %c0_20 = arith.constant 0 : index
    %c32_21 = arith.constant 32 : index
    %27 = vector.load %arg4[%c0_19, %c0_20, %c32_21] : memref<1x17x128xbf16, #tpu.memory_space<vmem>>, vector<1x17x32xbf16>
    %28 = vector.shape_cast %27 : vector<1x17x32xbf16> to vector<17x32xbf16>
    %cst_22 = arith.constant dense<0.000000e+00> : vector<17x17xf32>
    %29 = tpu.matmul %24, %26, %cst_22 {dimension_numbers = #tpu.dot_dimension_numbers<[1], [1], [0], [0], [0, 0, 1, 0], [], []>} : vector<17x32xbf16>, vector<17x32xbf16>, vector<17x17xf32> -> vector<17x17xf32>
    %cst_23 = arith.constant dense<0xFF800000> : vector<17xf32>
    %30 = vector.multi_reduction <maximumf>, %29, %cst_23 [1] : vector<17x17xf32> to vector<17xf32>
    %31 = vector.shape_cast %30 : vector<17xf32> to vector<17x1xf32>
    %32 = vector.broadcast %31 : vector<17x1xf32> to vector<17x17xf32>
    %33 = arith.subf %29, %32 : vector<17x17xf32>
    %34 = math.exp %33 : vector<17x17xf32>
    %cst_24 = arith.constant dense<0.000000e+00> : vector<17xf32>
    %35 = vector.multi_reduction <add>, %34, %cst_24 [1] : vector<17x17xf32> to vector<17xf32>
    %36 = vector.shape_cast %35 : vector<17xf32> to vector<17x1xf32>
    %37 = tpu.reciprocal %36 {approx = true} : vector<17x1xf32> -> vector<17x1xf32>
    %38 = vector.broadcast %37 : vector<17x1xf32> to vector<17x17xf32>
    %39 = arith.mulf %34, %38 : vector<17x17xf32>
    %40 = arith.truncf %39 : vector<17x17xf32> to vector<17x17xbf16>
    %cst_25 = arith.constant dense<0.000000e+00> : vector<17x32xf32>
    %41 = tpu.matmul %40, %28, %cst_25 {dimension_numbers = #tpu.dot_dimension_numbers<[1], [0], [0], [1], [0, 0, 1, 1], [], []>} : vector<17x17xbf16>, vector<17x32xbf16>, vector<17x32xf32> -> vector<17x32xf32>
    %42 = arith.truncf %41 : vector<17x32xf32> to vector<17x32xbf16>
    %c0_26 = arith.constant 0 : index
    %c0_27 = arith.constant 0 : index
    %c32_28 = arith.constant 32 : index
    %43 = vector.load %arg5[%c0_26, %c0_27, %c32_28] : memref<1x17x128xbf16, #tpu.memory_space<vmem>>, vector<1x17x32xbf16>
    %44 = vector.shape_cast %43 : vector<1x17x32xbf16> to vector<17x32xbf16>
    %45 = vector.shape_cast %42 : vector<17x32xbf16> to vector<1x17x32xbf16>
    tpu.vector_store %arg5[%c0_26, %c0_27, %c32_28], %45 {strides = array<i32>} : memref<1x17x128xbf16, #tpu.memory_space<vmem>>, vector<1x17x32xbf16>,
    %c0_29 = arith.constant 0 : index
    %c0_30 = arith.constant 0 : index
    %c64 = arith.constant 64 : index
    %46 = vector.load %arg2[%c0_29, %c0_30, %c64] : memref<1x17x128xbf16, #tpu.memory_space<vmem>>, vector<1x17x32xbf16>
    %47 = vector.shape_cast %46 : vector<1x17x32xbf16> to vector<17x32xbf16>
    %c0_31 = arith.constant 0 : index
    %c0_32 = arith.constant 0 : index
    %c64_33 = arith.constant 64 : index
    %48 = vector.load %arg3[%c0_31, %c0_32, %c64_33] : memref<1x17x128xbf16, #tpu.memory_space<vmem>>, vector<1x17x32xbf16>
    %49 = vector.shape_cast %48 : vector<1x17x32xbf16> to vector<17x32xbf16>
    %c0_34 = arith.constant 0 : index
    %c0_35 = arith.constant 0 : index
    %c64_36 = arith.constant 64 : index
    %50 = vector.load %arg4[%c0_34, %c0_35, %c64_36] : memref<1x17x128xbf16, #tpu.memory_space<vmem>>, vector<1x17x32xbf16>
    %51 = vector.shape_cast %50 : vector<1x17x32xbf16> to vector<17x32xbf16>
    %cst_37 = arith.constant dense<0.000000e+00> : vector<17x17xf32>
    %52 = tpu.matmul %47, %49, %cst_37 {dimension_numbers = #tpu.dot_dimension_numbers<[1], [1], [0], [0], [0, 0, 1, 0], [], []>} : vector<17x32xbf16>, vector<17x32xbf16>, vector<17x17xf32> -> vector<17x17xf32>
    %cst_38 = arith.constant dense<0xFF800000> : vector<17xf32>
    %53 = vector.multi_reduction <maximumf>, %52, %cst_38 [1] : vector<17x17xf32> to vector<17xf32>
    %54 = vector.shape_cast %53 : vector<17xf32> to vector<17x1xf32>
    %55 = vector.broadcast %54 : vector<17x1xf32> to vector<17x17xf32>
    %56 = arith.subf %52, %55 : vector<17x17xf32>
    %57 = math.exp %56 : vector<17x17xf32>
    %cst_39 = arith.constant dense<0.000000e+00> : vector<17xf32>
    %58 = vector.multi_reduction <add>, %57, %cst_39 [1] : vector<17x17xf32> to vector<17xf32>
    %59 = vector.shape_cast %58 : vector<17xf32> to vector<17x1xf32>
    %60 = tpu.reciprocal %59 {approx = true} : vector<17x1xf32> -> vector<17x1xf32>
    %61 = vector.broadcast %60 : vector<17x1xf32> to vector<17x17xf32>
    %62 = arith.mulf %57, %61 : vector<17x17xf32>
    %63 = arith.truncf %62 : vector<17x17xf32> to vector<17x17xbf16>
    %cst_40 = arith.constant dense<0.000000e+00> : vector<17x32xf32>
    %64 = tpu.matmul %63, %51, %cst_40 {dimension_numbers = #tpu.dot_dimension_numbers<[1], [0], [0], [1], [0, 0, 1, 1], [], []>} : vector<17x17xbf16>, vector<17x32xbf16>, vector<17x32xf32> -> vector<17x32xf32>
    %65 = arith.truncf %64 : vector<17x32xf32> to vector<17x32xbf16>
    %c0_41 = arith.constant 0 : index
    %c0_42 = arith.constant 0 : index
    %c64_43 = arith.constant 64 : index
    %66 = vector.load %arg5[%c0_41, %c0_42, %c64_43] : memref<1x17x128xbf16, #tpu.memory_space<vmem>>, vector<1x17x32xbf16>
    %67 = vector.shape_cast %66 : vector<1x17x32xbf16> to vector<17x32xbf16>
    %68 = vector.shape_cast %65 : vector<17x32xbf16> to vector<1x17x32xbf16>
    tpu.vector_store %arg5[%c0_41, %c0_42, %c64_43], %68 {strides = array<i32>} : memref<1x17x128xbf16, #tpu.memory_space<vmem>>, vector<1x17x32xbf16>,
    %c0_44 = arith.constant 0 : index
    %c0_45 = arith.constant 0 : index
    %c96 = arith.constant 96 : index
    %69 = vector.load %arg2[%c0_44, %c0_45, %c96] : memref<1x17x128xbf16, #tpu.memory_space<vmem>>, vector<1x17x32xbf16>
    %70 = vector.shape_cast %69 : vector<1x17x32xbf16> to vector<17x32xbf16>
    %c0_46 = arith.constant 0 : index
    %c0_47 = arith.constant 0 : index
    %c96_48 = arith.constant 96 : index
    %71 = vector.load %arg3[%c0_46, %c0_47, %c96_48] : memref<1x17x128xbf16, #tpu.memory_space<vmem>>, vector<1x17x32xbf16>
    %72 = vector.shape_cast %71 : vector<1x17x32xbf16> to vector<17x32xbf16>
    %c0_49 = arith.constant 0 : index
    %c0_50 = arith.constant 0 : index
    %c96_51 = arith.constant 96 : index
    %73 = vector.load %arg4[%c0_49, %c0_50, %c96_51] : memref<1x17x128xbf16, #tpu.memory_space<vmem>>, vector<1x17x32xbf16>
    %74 = vector.shape_cast %73 : vector<1x17x32xbf16> to vector<17x32xbf16>
    %cst_52 = arith.constant dense<0.000000e+00> : vector<17x17xf32>
    %75 = tpu.matmul %70, %72, %cst_52 {dimension_numbers = #tpu.dot_dimension_numbers<[1], [1], [0], [0], [0, 0, 1, 0], [], []>} : vector<17x32xbf16>, vector<17x32xbf16>, vector<17x17xf32> -> vector<17x17xf32>
    %cst_53 = arith.constant dense<0xFF800000> : vector<17xf32>
    %76 = vector.multi_reduction <maximumf>, %75, %cst_53 [1] : vector<17x17xf32> to vector<17xf32>
    %77 = vector.shape_cast %76 : vector<17xf32> to vector<17x1xf32>
    %78 = vector.broadcast %77 : vector<17x1xf32> to vector<17x17xf32>
    %79 = arith.subf %75, %78 : vector<17x17xf32>
    %80 = math.exp %79 : vector<17x17xf32>
    %cst_54 = arith.constant dense<0.000000e+00> : vector<17xf32>
    %81 = vector.multi_reduction <add>, %80, %cst_54 [1] : vector<17x17xf32> to vector<17xf32>
    %82 = vector.shape_cast %81 : vector<17xf32> to vector<17x1xf32>
    %83 = tpu.reciprocal %82 {approx = true} : vector<17x1xf32> -> vector<17x1xf32>
    %84 = vector.broadcast %83 : vector<17x1xf32> to vector<17x17xf32>
    %85 = arith.mulf %80, %84 : vector<17x17xf32>
    %86 = arith.truncf %85 : vector<17x17xf32> to vector<17x17xbf16>
    %cst_55 = arith.constant dense<0.000000e+00> : vector<17x32xf32>
    %87 = tpu.matmul %86, %74, %cst_55 {dimension_numbers = #tpu.dot_dimension_numbers<[1], [0], [0], [1], [0, 0, 1, 1], [], []>} : vector<17x17xbf16>, vector<17x32xbf16>, vector<17x32xf32> -> vector<17x32xf32>
    %88 = arith.truncf %87 : vector<17x32xf32> to vector<17x32xbf16>
    %c0_56 = arith.constant 0 : index
    %c0_57 = arith.constant 0 : index
    %c96_58 = arith.constant 96 : index
    %89 = vector.load %arg5[%c0_56, %c0_57, %c96_58] : memref<1x17x128xbf16, #tpu.memory_space<vmem>>, vector<1x17x32xbf16>
    %90 = vector.shape_cast %89 : vector<1x17x32xbf16> to vector<17x32xbf16>
    %91 = vector.shape_cast %88 : vector<17x32xbf16> to vector<1x17x32xbf16>
    tpu.vector_store %arg5[%c0_56, %c0_57, %c96_58], %91 {strides = array<i32>} : memref<1x17x128xbf16, #tpu.memory_space<vmem>>, vector<1x17x32xbf16>,
    return
  }
  func.func @transform_0(%arg0: i32, %arg1: i32) -> (i32, i32, i32) {
    %c0_i32 = arith.constant 0 : i32
    %c0_i32_0 = arith.constant 0 : i32
    return %arg0, %c0_i32, %arg1 : i32, i32, i32
  }
  func.func @transform_1(%arg0: i32, %arg1: i32) -> (i32, i32, i32) {
    %c1_i32 = arith.constant 1 : i32
    %0 = arith.addi %c1_i32, %arg1 : i32
    %c0_i32 = arith.constant 0 : i32
    %c0_i32_0 = arith.constant 0 : i32
    return %arg0, %c0_i32, %0 : i32, i32, i32
  }
  func.func @transform_2(%arg0: i32, %arg1: i32) -> (i32, i32, i32) {
    %c2_i32 = arith.constant 2 : i32
    %0 = arith.addi %c2_i32, %arg1 : i32
    %c0_i32 = arith.constant 0 : i32
    %c0_i32_0 = arith.constant 0 : i32
    return %arg0, %c0_i32, %0 : i32, i32, i32
  }
  func.func @transform_3(%arg0: i32, %arg1: i32) -> (i32, i32, i32) {
    %c0_i32 = arith.constant 0 : i32
    %c0_i32_0 = arith.constant 0 : i32
    return %arg0, %c0_i32, %arg1 : i32, i32, i32
  }
}

module attributes {stable_mosaic.version = 11 : i64} {
  func.func @_fused_matmul_kernel(%arg0: i32, %arg1: i32, %arg2: i32, %arg3: memref<40x128xbf16, #tpu.memory_space<vmem>>, %arg4: memref<128x128xbf16, #tpu.memory_space<vmem>>, %arg5: memref<1x128xf32, #tpu.memory_space<vmem>>, %arg6: memref<40x128xbf16, #tpu.memory_space<vmem>>, %arg7: memref<40x128xbf16, #tpu.memory_space<vmem>>, %arg8: memref<40x128xf32, #tpu.memory_space<vmem>>) attributes {dimension_semantics = [#tpu.dimension_semantics<parallel>, #tpu.dimension_semantics<parallel>, #tpu.dimension_semantics<arbitrary>], iteration_bounds = array<i64: 1, 1, 1>, scalar_prefetch = 0 : i64, scratch_operands = 1 : i64, tpu.core_type = #tpu.core_type<tc>, window_params = [{transform_indices = @transform_0, window_bounds = array<i64: 40, 128>}, {transform_indices = @transform_1, window_bounds = array<i64: 128, 128>}, {transform_indices = @transform_2, window_bounds = array<i64: 1, 128>}, {transform_indices = @transform_3, window_bounds = array<i64: 40, 128>}, {transform_indices = @transform_4, window_bounds = array<i64: 40, 128>}]} {
    %c0_i32 = arith.constant 0 : i32
    %0 = arith.cmpi eq, %arg2, %c0_i32 : i32
    %1 = arith.extui %0 : i1 to i32
    %c0_i32_0 = arith.constant 0 : i32
    %2 = arith.cmpi ne, %1, %c0_i32_0 : i32
    scf.if %2 {
      %cst_10 = arith.constant 0.000000e+00 : f32
      %12 = vector.broadcast %cst_10 : f32 to vector<40x128xf32>
      %c0_11 = arith.constant 0 : index
      %c0_12 = arith.constant 0 : index
      %13 = vector.load %arg8[%c0_11, %c0_12] : memref<40x128xf32, #tpu.memory_space<vmem>>, vector<40x128xf32>
      tpu.vector_store %arg8[%c0_11, %c0_12], %12 {strides = array<i32>} : memref<40x128xf32, #tpu.memory_space<vmem>>, vector<40x128xf32>,
    } else {
    }
    %c0 = arith.constant 0 : index
    %c0_1 = arith.constant 0 : index
    %3 = vector.load %arg3[%c0, %c0_1] : memref<40x128xbf16, #tpu.memory_space<vmem>>, vector<40x128xbf16>
    %c0_2 = arith.constant 0 : index
    %c0_3 = arith.constant 0 : index
    %4 = vector.load %arg8[%c0_2, %c0_3] : memref<40x128xf32, #tpu.memory_space<vmem>>, vector<40x128xf32>
    %c0_4 = arith.constant 0 : index
    %c0_5 = arith.constant 0 : index
    %5 = vector.load %arg4[%c0_4, %c0_5] : memref<128x128xbf16, #tpu.memory_space<vmem>>, vector<128x128xbf16>
    %cst = arith.constant dense<0.000000e+00> : vector<40x128xf32>
    %6 = tpu.matmul %3, %5, %cst {dimension_numbers = #tpu.dot_dimension_numbers<[1], [0], [0], [1], [0, 0, 1, 1], [], []>} : vector<40x128xbf16>, vector<128x128xbf16>, vector<40x128xf32> -> vector<40x128xf32>
    %7 = arith.addf %4, %6 : vector<40x128xf32>
    %c0_6 = arith.constant 0 : index
    %c0_7 = arith.constant 0 : index
    %8 = vector.load %arg8[%c0_6, %c0_7] : memref<40x128xf32, #tpu.memory_space<vmem>>, vector<40x128xf32>
    tpu.vector_store %arg8[%c0_6, %c0_7], %7 {strides = array<i32>} : memref<40x128xf32, #tpu.memory_space<vmem>>, vector<40x128xf32>,
    %c0_i32_8 = arith.constant 0 : i32
    %9 = arith.cmpi eq, %arg2, %c0_i32_8 : i32
    %10 = arith.extui %9 : i1 to i32
    %c0_i32_9 = arith.constant 0 : i32
    %11 = arith.cmpi ne, %10, %c0_i32_9 : i32
    scf.if %11 {
      %c0_10 = arith.constant 0 : index
      %c0_11 = arith.constant 0 : index
      %12 = vector.load %arg8[%c0_10, %c0_11] : memref<40x128xf32, #tpu.memory_space<vmem>>, vector<40x128xf32>
      %c0_12 = arith.constant 0 : index
      %c0_13 = arith.constant 0 : index
      %13 = vector.load %arg5[%c0_12, %c0_13] : memref<1x128xf32, #tpu.memory_space<vmem>>, vector<1x128xf32>
      %14 = vector.broadcast %13 : vector<1x128xf32> to vector<40x128xf32>
      %15 = arith.addf %12, %14 : vector<40x128xf32>
      %c0_14 = arith.constant 0 : index
      %c0_15 = arith.constant 0 : index
      %16 = vector.load %arg6[%c0_14, %c0_15] : memref<40x128xbf16, #tpu.memory_space<vmem>>, vector<40x128xbf16>
      %17 = arith.extf %16 : vector<40x128xbf16> to vector<40x128xf32>
      %18 = arith.addf %15, %17 : vector<40x128xf32>
      %19 = arith.truncf %18 : vector<40x128xf32> to vector<40x128xbf16>
      %c0_16 = arith.constant 0 : index
      %c0_17 = arith.constant 0 : index
      %20 = vector.load %arg7[%c0_16, %c0_17] : memref<40x128xbf16, #tpu.memory_space<vmem>>, vector<40x128xbf16>
      tpu.vector_store %arg7[%c0_16, %c0_17], %19 {strides = array<i32>} : memref<40x128xbf16, #tpu.memory_space<vmem>>, vector<40x128xbf16>,
    } else {
    }
    return
  }
  func.func @transform_0(%arg0: i32, %arg1: i32, %arg2: i32) -> (i32, i32) {
    %c0_i32 = arith.constant 0 : i32
    return %arg0, %arg2 : i32, i32
  }
  func.func @transform_1(%arg0: i32, %arg1: i32, %arg2: i32) -> (i32, i32) {
    %c0_i32 = arith.constant 0 : i32
    return %arg2, %arg1 : i32, i32
  }
  func.func @transform_2(%arg0: i32, %arg1: i32, %arg2: i32) -> (i32, i32) {
    %c0_i32 = arith.constant 0 : i32
    %c0_i32_0 = arith.constant 0 : i32
    return %c0_i32, %arg1 : i32, i32
  }
  func.func @transform_3(%arg0: i32, %arg1: i32, %arg2: i32) -> (i32, i32) {
    %c0_i32 = arith.constant 0 : i32
    return %arg0, %arg1 : i32, i32
  }
  func.func @transform_4(%arg0: i32, %arg1: i32, %arg2: i32) -> (i32, i32) {
    %c0_i32 = arith.constant 0 : i32
    return %arg0, %arg1 : i32, i32
  }
}

module attributes {stable_mosaic.version = 11 : i64} {
  func.func @_fused_matmul_kernel(%arg0: i32, %arg1: i32, %arg2: i32, %arg3: memref<40x128xbf16, #tpu.memory_space<vmem>>, %arg4: memref<128x512xbf16, #tpu.memory_space<vmem>>, %arg5: memref<1x512xf32, #tpu.memory_space<vmem>>, %arg6: memref<1x128xf32, #tpu.memory_space<vmem>>, %arg7: memref<1x128xf32, #tpu.memory_space<vmem>>, %arg8: memref<40x512xbf16, #tpu.memory_space<vmem>>, %arg9: memref<40x512xf32, #tpu.memory_space<vmem>>, %arg10: memref<40x128xbf16, #tpu.memory_space<vmem>>) attributes {dimension_semantics = [#tpu.dimension_semantics<parallel>, #tpu.dimension_semantics<arbitrary>, #tpu.dimension_semantics<arbitrary>], iteration_bounds = array<i64: 1, 1, 1>, scalar_prefetch = 0 : i64, scratch_operands = 2 : i64, tpu.core_type = #tpu.core_type<tc>, window_params = [{transform_indices = @transform_0, window_bounds = array<i64: 40, 128>}, {transform_indices = @transform_1, window_bounds = array<i64: 128, 512>}, {transform_indices = @transform_2, window_bounds = array<i64: 1, 512>}, {transform_indices = @transform_3, window_bounds = array<i64: 1, 128>}, {transform_indices = @transform_4, window_bounds = array<i64: 1, 128>}, {transform_indices = @transform_5, window_bounds = array<i64: 40, 512>}]} {
    %c0_i32 = arith.constant 0 : i32
    %0 = arith.cmpi eq, %arg2, %c0_i32 : i32
    %1 = arith.extui %0 : i1 to i32
    %c0_i32_0 = arith.constant 0 : i32
    %2 = arith.cmpi ne, %1, %c0_i32_0 : i32
    scf.if %2 {
      %cst_12 = arith.constant 0.000000e+00 : f32
      %15 = vector.broadcast %cst_12 : f32 to vector<40x512xf32>
      %c0_13 = arith.constant 0 : index
      %c0_14 = arith.constant 0 : index
      %16 = vector.load %arg9[%c0_13, %c0_14] : memref<40x512xf32, #tpu.memory_space<vmem>>, vector<40x512xf32>
      tpu.vector_store %arg9[%c0_13, %c0_14], %15 {strides = array<i32>} : memref<40x512xf32, #tpu.memory_space<vmem>>, vector<40x512xf32>,
    } else {
    }
    %c0_i32_1 = arith.constant 0 : i32
    %3 = arith.cmpi eq, %arg1, %c0_i32_1 : i32
    %4 = arith.extui %3 : i1 to i32
    %c0_i32_2 = arith.constant 0 : i32
    %5 = arith.cmpi ne, %4, %c0_i32_2 : i32
    scf.if %5 {
      %c0_12 = arith.constant 0 : index
      %c0_13 = arith.constant 0 : index
      %15 = vector.load %arg3[%c0_12, %c0_13] : memref<40x128xbf16, #tpu.memory_space<vmem>>, vector<40x128xbf16>
      %16 = arith.extf %15 : vector<40x128xbf16> to vector<40x128xf32>
      %cst_14 = arith.constant dense<0.000000e+00> : vector<40xf32>
      %17 = vector.multi_reduction <add>, %16, %cst_14 [1] : vector<40x128xf32> to vector<40xf32>
      %18 = vector.shape_cast %17 : vector<40xf32> to vector<40x1xf32>
      %cst_15 = arith.constant 1.280000e+02 : f32
      %19 = vector.broadcast %cst_15 : f32 to vector<40x1xf32>
      %20 = arith.divf %18, %19 : vector<40x1xf32>
      %21 = vector.broadcast %20 : vector<40x1xf32> to vector<40x128xf32>
      %22 = arith.subf %16, %21 : vector<40x128xf32>
      %23 = arith.mulf %22, %22 : vector<40x128xf32>
      %cst_16 = arith.constant dense<0.000000e+00> : vector<40xf32>
      %24 = vector.multi_reduction <add>, %23, %cst_16 [1] : vector<40x128xf32> to vector<40xf32>
      %25 = vector.shape_cast %24 : vector<40xf32> to vector<40x1xf32>
      %cst_17 = arith.constant 1.280000e+02 : f32
      %26 = vector.broadcast %cst_17 : f32 to vector<40x1xf32>
      %27 = arith.divf %25, %26 : vector<40x1xf32>
      %28 = vector.broadcast %20 : vector<40x1xf32> to vector<40x128xf32>
      %29 = arith.subf %16, %28 : vector<40x128xf32>
      %cst_18 = arith.constant 9.99999974E-6 : f32
      %30 = vector.broadcast %cst_18 : f32 to vector<40x1xf32>
      %31 = arith.addf %27, %30 : vector<40x1xf32>
      %32 = math.rsqrt %31 : vector<40x1xf32>
      %33 = vector.broadcast %32 : vector<40x1xf32> to vector<40x128xf32>
      %34 = arith.mulf %29, %33 : vector<40x128xf32>
      %c0_19 = arith.constant 0 : index
      %c0_20 = arith.constant 0 : index
      %35 = vector.load %arg6[%c0_19, %c0_20] : memref<1x128xf32, #tpu.memory_space<vmem>>, vector<1x128xf32>
      %36 = vector.broadcast %35 : vector<1x128xf32> to vector<40x128xf32>
      %37 = arith.mulf %34, %36 : vector<40x128xf32>
      %c0_21 = arith.constant 0 : index
      %c0_22 = arith.constant 0 : index
      %38 = vector.load %arg7[%c0_21, %c0_22] : memref<1x128xf32, #tpu.memory_space<vmem>>, vector<1x128xf32>
      %39 = vector.broadcast %38 : vector<1x128xf32> to vector<40x128xf32>
      %40 = arith.addf %37, %39 : vector<40x128xf32>
      %41 = arith.truncf %40 : vector<40x128xf32> to vector<40x128xbf16>
      %c0_23 = arith.constant 0 : index
      %c0_24 = arith.constant 0 : index
      %42 = vector.load %arg10[%c0_23, %c0_24] : memref<40x128xbf16, #tpu.memory_space<vmem>>, vector<40x128xbf16>
      tpu.vector_store %arg10[%c0_23, %c0_24], %41 {strides = array<i32>} : memref<40x128xbf16, #tpu.memory_space<vmem>>, vector<40x128xbf16>,
    } else {
    }
    %c0 = arith.constant 0 : index
    %c0_3 = arith.constant 0 : index
    %6 = vector.load %arg10[%c0, %c0_3] : memref<40x128xbf16, #tpu.memory_space<vmem>>, vector<40x128xbf16>
    %c0_4 = arith.constant 0 : index
    %c0_5 = arith.constant 0 : index
    %7 = vector.load %arg9[%c0_4, %c0_5] : memref<40x512xf32, #tpu.memory_space<vmem>>, vector<40x512xf32>
    %c0_6 = arith.constant 0 : index
    %c0_7 = arith.constant 0 : index
    %8 = vector.load %arg4[%c0_6, %c0_7] : memref<128x512xbf16, #tpu.memory_space<vmem>>, vector<128x512xbf16>
    %cst = arith.constant dense<0.000000e+00> : vector<40x512xf32>
    %9 = tpu.matmul %6, %8, %cst {dimension_numbers = #tpu.dot_dimension_numbers<[1], [0], [0], [1], [0, 0, 1, 1], [], []>} : vector<40x128xbf16>, vector<128x512xbf16>, vector<40x512xf32> -> vector<40x512xf32>
    %10 = arith.addf %7, %9 : vector<40x512xf32>
    %c0_8 = arith.constant 0 : index
    %c0_9 = arith.constant 0 : index
    %11 = vector.load %arg9[%c0_8, %c0_9] : memref<40x512xf32, #tpu.memory_space<vmem>>, vector<40x512xf32>
    tpu.vector_store %arg9[%c0_8, %c0_9], %10 {strides = array<i32>} : memref<40x512xf32, #tpu.memory_space<vmem>>, vector<40x512xf32>,
    %c0_i32_10 = arith.constant 0 : i32
    %12 = arith.cmpi eq, %arg2, %c0_i32_10 : i32
    %13 = arith.extui %12 : i1 to i32
    %c0_i32_11 = arith.constant 0 : i32
    %14 = arith.cmpi ne, %13, %c0_i32_11 : i32
    scf.if %14 {
      %c0_12 = arith.constant 0 : index
      %c0_13 = arith.constant 0 : index
      %15 = vector.load %arg9[%c0_12, %c0_13] : memref<40x512xf32, #tpu.memory_space<vmem>>, vector<40x512xf32>
      %c0_14 = arith.constant 0 : index
      %c0_15 = arith.constant 0 : index
      %16 = vector.load %arg5[%c0_14, %c0_15] : memref<1x512xf32, #tpu.memory_space<vmem>>, vector<1x512xf32>
      %17 = vector.broadcast %16 : vector<1x512xf32> to vector<40x512xf32>
      %18 = arith.addf %15, %17 : vector<40x512xf32>
      %cst_16 = arith.constant 1.702000e+00 : f32
      %19 = vector.broadcast %cst_16 : f32 to vector<40x512xf32>
      %20 = arith.mulf %19, %18 : vector<40x512xf32>
      %21 = arith.negf %20 : vector<40x512xf32>
      %22 = math.exp %21 : vector<40x512xf32>
      %cst_17 = arith.constant 1.000000e+00 : f32
      %23 = vector.broadcast %cst_17 : f32 to vector<40x512xf32>
      %24 = arith.addf %23, %22 : vector<40x512xf32>
      %25 = arith.divf %23, %24 : vector<40x512xf32>
      %26 = arith.mulf %18, %25 : vector<40x512xf32>
      %27 = arith.truncf %26 : vector<40x512xf32> to vector<40x512xbf16>
      %c0_18 = arith.constant 0 : index
      %c0_19 = arith.constant 0 : index
      %28 = vector.load %arg8[%c0_18, %c0_19] : memref<40x512xbf16, #tpu.memory_space<vmem>>, vector<40x512xbf16>
      tpu.vector_store %arg8[%c0_18, %c0_19], %27 {strides = array<i32>} : memref<40x512xbf16, #tpu.memory_space<vmem>>, vector<40x512xbf16>,
    } else {
    }
    return
  }
  func.func @transform_0(%arg0: i32, %arg1: i32, %arg2: i32) -> (i32, i32) {
    %c0_i32 = arith.constant 0 : i32
    return %arg0, %arg2 : i32, i32
  }
  func.func @transform_1(%arg0: i32, %arg1: i32, %arg2: i32) -> (i32, i32) {
    %c0_i32 = arith.constant 0 : i32
    return %arg2, %arg1 : i32, i32
  }
  func.func @transform_2(%arg0: i32, %arg1: i32, %arg2: i32) -> (i32, i32) {
    %c0_i32 = arith.constant 0 : i32
    %c0_i32_0 = arith.constant 0 : i32
    return %c0_i32, %arg1 : i32, i32
  }
  func.func @transform_3(%arg0: i32, %arg1: i32, %arg2: i32) -> (i32, i32) {
    %c0_i32 = arith.constant 0 : i32
    %c0_i32_0 = arith.constant 0 : i32
    return %c0_i32, %arg2 : i32, i32
  }
  func.func @transform_4(%arg0: i32, %arg1: i32, %arg2: i32) -> (i32, i32) {
    %c0_i32 = arith.constant 0 : i32
    %c0_i32_0 = arith.constant 0 : i32
    return %c0_i32, %arg2 : i32, i32
  }
  func.func @transform_5(%arg0: i32, %arg1: i32, %arg2: i32) -> (i32, i32) {
    %c0_i32 = arith.constant 0 : i32
    return %arg0, %arg1 : i32, i32
  }
}

module attributes {stable_mosaic.version = 11 : i64} {
  func.func @_fused_matmul_kernel(%arg0: i32, %arg1: i32, %arg2: i32, %arg3: memref<40x512xbf16, #tpu.memory_space<vmem>>, %arg4: memref<512x128xbf16, #tpu.memory_space<vmem>>, %arg5: memref<1x128xf32, #tpu.memory_space<vmem>>, %arg6: memref<40x128xbf16, #tpu.memory_space<vmem>>, %arg7: memref<40x128xbf16, #tpu.memory_space<vmem>>, %arg8: memref<40x128xf32, #tpu.memory_space<vmem>>) attributes {dimension_semantics = [#tpu.dimension_semantics<parallel>, #tpu.dimension_semantics<parallel>, #tpu.dimension_semantics<arbitrary>], iteration_bounds = array<i64: 1, 1, 1>, scalar_prefetch = 0 : i64, scratch_operands = 1 : i64, tpu.core_type = #tpu.core_type<tc>, window_params = [{transform_indices = @transform_0, window_bounds = array<i64: 40, 512>}, {transform_indices = @transform_1, window_bounds = array<i64: 512, 128>}, {transform_indices = @transform_2, window_bounds = array<i64: 1, 128>}, {transform_indices = @transform_3, window_bounds = array<i64: 40, 128>}, {transform_indices = @transform_4, window_bounds = array<i64: 40, 128>}]} {
    %c0_i32 = arith.constant 0 : i32
    %0 = arith.cmpi eq, %arg2, %c0_i32 : i32
    %1 = arith.extui %0 : i1 to i32
    %c0_i32_0 = arith.constant 0 : i32
    %2 = arith.cmpi ne, %1, %c0_i32_0 : i32
    scf.if %2 {
      %cst_10 = arith.constant 0.000000e+00 : f32
      %12 = vector.broadcast %cst_10 : f32 to vector<40x128xf32>
      %c0_11 = arith.constant 0 : index
      %c0_12 = arith.constant 0 : index
      %13 = vector.load %arg8[%c0_11, %c0_12] : memref<40x128xf32, #tpu.memory_space<vmem>>, vector<40x128xf32>
      tpu.vector_store %arg8[%c0_11, %c0_12], %12 {strides = array<i32>} : memref<40x128xf32, #tpu.memory_space<vmem>>, vector<40x128xf32>,
    } else {
    }
    %c0 = arith.constant 0 : index
    %c0_1 = arith.constant 0 : index
    %3 = vector.load %arg3[%c0, %c0_1] : memref<40x512xbf16, #tpu.memory_space<vmem>>, vector<40x512xbf16>
    %c0_2 = arith.constant 0 : index
    %c0_3 = arith.constant 0 : index
    %4 = vector.load %arg8[%c0_2, %c0_3] : memref<40x128xf32, #tpu.memory_space<vmem>>, vector<40x128xf32>
    %c0_4 = arith.constant 0 : index
    %c0_5 = arith.constant 0 : index
    %5 = vector.load %arg4[%c0_4, %c0_5] : memref<512x128xbf16, #tpu.memory_space<vmem>>, vector<512x128xbf16>
    %cst = arith.constant dense<0.000000e+00> : vector<40x128xf32>
    %6 = tpu.matmul %3, %5, %cst {dimension_numbers = #tpu.dot_dimension_numbers<[1], [0], [0], [1], [0, 0, 1, 1], [], []>} : vector<40x512xbf16>, vector<512x128xbf16>, vector<40x128xf32> -> vector<40x128xf32>
    %7 = arith.addf %4, %6 : vector<40x128xf32>
    %c0_6 = arith.constant 0 : index
    %c0_7 = arith.constant 0 : index
    %8 = vector.load %arg8[%c0_6, %c0_7] : memref<40x128xf32, #tpu.memory_space<vmem>>, vector<40x128xf32>
    tpu.vector_store %arg8[%c0_6, %c0_7], %7 {strides = array<i32>} : memref<40x128xf32, #tpu.memory_space<vmem>>, vector<40x128xf32>,
    %c0_i32_8 = arith.constant 0 : i32
    %9 = arith.cmpi eq, %arg2, %c0_i32_8 : i32
    %10 = arith.extui %9 : i1 to i32
    %c0_i32_9 = arith.constant 0 : i32
    %11 = arith.cmpi ne, %10, %c0_i32_9 : i32
    scf.if %11 {
      %c0_10 = arith.constant 0 : index
      %c0_11 = arith.constant 0 : index
      %12 = vector.load %arg8[%c0_10, %c0_11] : memref<40x128xf32, #tpu.memory_space<vmem>>, vector<40x128xf32>
      %c0_12 = arith.constant 0 : index
      %c0_13 = arith.constant 0 : index
      %13 = vector.load %arg5[%c0_12, %c0_13] : memref<1x128xf32, #tpu.memory_space<vmem>>, vector<1x128xf32>
      %14 = vector.broadcast %13 : vector<1x128xf32> to vector<40x128xf32>
      %15 = arith.addf %12, %14 : vector<40x128xf32>
      %c0_14 = arith.constant 0 : index
      %c0_15 = arith.constant 0 : index
      %16 = vector.load %arg6[%c0_14, %c0_15] : memref<40x128xbf16, #tpu.memory_space<vmem>>, vector<40x128xbf16>
      %17 = arith.extf %16 : vector<40x128xbf16> to vector<40x128xf32>
      %18 = arith.addf %15, %17 : vector<40x128xf32>
      %19 = arith.truncf %18 : vector<40x128xf32> to vector<40x128xbf16>
      %c0_16 = arith.constant 0 : index
      %c0_17 = arith.constant 0 : index
      %20 = vector.load %arg7[%c0_16, %c0_17] : memref<40x128xbf16, #tpu.memory_space<vmem>>, vector<40x128xbf16>
      tpu.vector_store %arg7[%c0_16, %c0_17], %19 {strides = array<i32>} : memref<40x128xbf16, #tpu.memory_space<vmem>>, vector<40x128xbf16>,
    } else {
    }
    return
  }
  func.func @transform_0(%arg0: i32, %arg1: i32, %arg2: i32) -> (i32, i32) {
    %c0_i32 = arith.constant 0 : i32
    return %arg0, %arg2 : i32, i32
  }
  func.func @transform_1(%arg0: i32, %arg1: i32, %arg2: i32) -> (i32, i32) {
    %c0_i32 = arith.constant 0 : i32
    return %arg2, %arg1 : i32, i32
  }
  func.func @transform_2(%arg0: i32, %arg1: i32, %arg2: i32) -> (i32, i32) {
    %c0_i32 = arith.constant 0 : i32
    %c0_i32_0 = arith.constant 0 : i32
    return %c0_i32, %arg1 : i32, i32
  }
  func.func @transform_3(%arg0: i32, %arg1: i32, %arg2: i32) -> (i32, i32) {
    %c0_i32 = arith.constant 0 : i32
    return %arg0, %arg1 : i32, i32
  }
  func.func @transform_4(%arg0: i32, %arg1: i32, %arg2: i32) -> (i32, i32) {
    %c0_i32 = arith.constant 0 : i32
    return %arg0, %arg1 : i32, i32
  }
}

module attributes {stable_mosaic.version = 11 : i64} {
  func.func @_feature_kernel(%arg0: i32, %arg1: memref<2x128xbf16, #tpu.memory_space<vmem>>, %arg2: memref<1x128xf32, #tpu.memory_space<vmem>>, %arg3: memref<1x128xf32, #tpu.memory_space<vmem>>, %arg4: memref<128x128xbf16, #tpu.memory_space<vmem>>, %arg5: memref<2x128xf32, #tpu.memory_space<vmem>>) attributes {dimension_semantics = [#tpu.dimension_semantics<arbitrary>], iteration_bounds = array<i64: 1>, scalar_prefetch = 0 : i64, scratch_operands = 0 : i64, tpu.core_type = #tpu.core_type<tc>, window_params = [{pipeline_mode = #tpu.pipeline_mode<synchronous>, transform_indices = @transform_0, window_bounds = array<i64: 2, 128>}, {pipeline_mode = #tpu.pipeline_mode<synchronous>, transform_indices = @transform_1, window_bounds = array<i64: 1, 128>}, {pipeline_mode = #tpu.pipeline_mode<synchronous>, transform_indices = @transform_2, window_bounds = array<i64: 1, 128>}, {pipeline_mode = #tpu.pipeline_mode<synchronous>, transform_indices = @transform_3, window_bounds = array<i64: 128, 128>}, {pipeline_mode = #tpu.pipeline_mode<synchronous>, transform_indices = @transform_4, window_bounds = array<i64: 2, 128>}]} {
    %c0 = arith.constant 0 : index
    %c0_0 = arith.constant 0 : index
    %0 = vector.load %arg1[%c0, %c0_0] : memref<2x128xbf16, #tpu.memory_space<vmem>>, vector<2x128xbf16>
    %1 = arith.extf %0 : vector<2x128xbf16> to vector<2x128xf32>
    %cst = arith.constant dense<0.000000e+00> : vector<2xf32>
    %2 = vector.multi_reduction <add>, %1, %cst [1] : vector<2x128xf32> to vector<2xf32>
    %3 = vector.shape_cast %2 : vector<2xf32> to vector<2x1xf32>
    %cst_1 = arith.constant 1.280000e+02 : f32
    %4 = vector.broadcast %cst_1 : f32 to vector<2x1xf32>
    %5 = arith.divf %3, %4 : vector<2x1xf32>
    %6 = vector.broadcast %5 : vector<2x1xf32> to vector<2x128xf32>
    %7 = arith.subf %1, %6 : vector<2x128xf32>
    %8 = arith.mulf %7, %7 : vector<2x128xf32>
    %cst_2 = arith.constant dense<0.000000e+00> : vector<2xf32>
    %9 = vector.multi_reduction <add>, %8, %cst_2 [1] : vector<2x128xf32> to vector<2xf32>
    %10 = vector.shape_cast %9 : vector<2xf32> to vector<2x1xf32>
    %cst_3 = arith.constant 1.280000e+02 : f32
    %11 = vector.broadcast %cst_3 : f32 to vector<2x1xf32>
    %12 = arith.divf %10, %11 : vector<2x1xf32>
    %13 = vector.broadcast %5 : vector<2x1xf32> to vector<2x128xf32>
    %14 = arith.subf %1, %13 : vector<2x128xf32>
    %cst_4 = arith.constant 9.99999974E-6 : f32
    %15 = vector.broadcast %cst_4 : f32 to vector<2x1xf32>
    %16 = arith.addf %12, %15 : vector<2x1xf32>
    %17 = math.rsqrt %16 : vector<2x1xf32>
    %18 = vector.broadcast %17 : vector<2x1xf32> to vector<2x128xf32>
    %19 = arith.mulf %14, %18 : vector<2x128xf32>
    %c0_5 = arith.constant 0 : index
    %c0_6 = arith.constant 0 : index
    %20 = vector.load %arg2[%c0_5, %c0_6] : memref<1x128xf32, #tpu.memory_space<vmem>>, vector<1x128xf32>
    %21 = vector.broadcast %20 : vector<1x128xf32> to vector<2x128xf32>
    %22 = arith.mulf %19, %21 : vector<2x128xf32>
    %c0_7 = arith.constant 0 : index
    %c0_8 = arith.constant 0 : index
    %23 = vector.load %arg3[%c0_7, %c0_8] : memref<1x128xf32, #tpu.memory_space<vmem>>, vector<1x128xf32>
    %24 = vector.broadcast %23 : vector<1x128xf32> to vector<2x128xf32>
    %25 = arith.addf %22, %24 : vector<2x128xf32>
    %26 = arith.truncf %25 : vector<2x128xf32> to vector<2x128xbf16>
    %c0_9 = arith.constant 0 : index
    %c0_10 = arith.constant 0 : index
    %27 = vector.load %arg4[%c0_9, %c0_10] : memref<128x128xbf16, #tpu.memory_space<vmem>>, vector<128x128xbf16>
    %cst_11 = arith.constant dense<0.000000e+00> : vector<2x128xf32>
    %28 = tpu.matmul %26, %27, %cst_11 {dimension_numbers = #tpu.dot_dimension_numbers<[1], [0], [0], [1], [0, 0, 1, 1], [], []>} : vector<2x128xbf16>, vector<128x128xbf16>, vector<2x128xf32> -> vector<2x128xf32>
    %29 = arith.mulf %28, %28 : vector<2x128xf32>
    %cst_12 = arith.constant dense<0.000000e+00> : vector<2xf32>
    %30 = vector.multi_reduction <add>, %29, %cst_12 [1] : vector<2x128xf32> to vector<2xf32>
    %31 = vector.shape_cast %30 : vector<2xf32> to vector<2x1xf32>
    %32 = math.rsqrt %31 : vector<2x1xf32>
    %33 = vector.broadcast %32 : vector<2x1xf32> to vector<2x128xf32>
    %34 = arith.mulf %28, %33 : vector<2x128xf32>
    %c0_13 = arith.constant 0 : index
    %c0_14 = arith.constant 0 : index
    %35 = vector.load %arg5[%c0_13, %c0_14] : memref<2x128xf32, #tpu.memory_space<vmem>>, vector<2x128xf32>
    tpu.vector_store %arg5[%c0_13, %c0_14], %34 {strides = array<i32>} : memref<2x128xf32, #tpu.memory_space<vmem>>, vector<2x128xf32>,
    return
  }
  func.func @transform_0(%arg0: i32) -> (i32, i32) {
    %c0_i32 = arith.constant 0 : i32
    %c0_i32_0 = arith.constant 0 : i32
    %c0_i32_1 = arith.constant 0 : i32
    return %c0_i32, %c0_i32_0 : i32, i32
  }
  func.func @transform_1(%arg0: i32) -> (i32, i32) {
    %c0_i32 = arith.constant 0 : i32
    %c0_i32_0 = arith.constant 0 : i32
    %c0_i32_1 = arith.constant 0 : i32
    return %c0_i32, %c0_i32_0 : i32, i32
  }
  func.func @transform_2(%arg0: i32) -> (i32, i32) {
    %c0_i32 = arith.constant 0 : i32
    %c0_i32_0 = arith.constant 0 : i32
    %c0_i32_1 = arith.constant 0 : i32
    return %c0_i32, %c0_i32_0 : i32, i32
  }
  func.func @transform_3(%arg0: i32) -> (i32, i32) {
    %c0_i32 = arith.constant 0 : i32
    %c0_i32_0 = arith.constant 0 : i32
    %c0_i32_1 = arith.constant 0 : i32
    return %c0_i32, %c0_i32_0 : i32, i32
  }
  func.func @transform_4(%arg0: i32) -> (i32, i32) {
    %c0_i32 = arith.constant 0 : i32
    %c0_i32_0 = arith.constant 0 : i32
    %c0_i32_1 = arith.constant 0 : i32
    return %c0_i32, %c0_i32_0 : i32, i32
  }
}

module attributes {stable_mosaic.version = 11 : i64} {
  func.func @_fused_matmul_kernel(%arg0: i32, %arg1: i32, %arg2: i32, %arg3: memref<8x128xbf16, #tpu.memory_space<vmem>>, %arg4: memref<128x8xbf16, #tpu.memory_space<vmem>>, %arg5: memref<8x8xf32, #tpu.memory_space<vmem>>, %arg6: memref<8x8xf32, #tpu.memory_space<vmem>>) attributes {dimension_semantics = [#tpu.dimension_semantics<parallel>, #tpu.dimension_semantics<parallel>, #tpu.dimension_semantics<arbitrary>], iteration_bounds = array<i64: 1, 1, 1>, scalar_prefetch = 0 : i64, scratch_operands = 1 : i64, tpu.core_type = #tpu.core_type<tc>, window_params = [{transform_indices = @transform_0, window_bounds = array<i64: 8, 128>}, {transform_indices = @transform_1, window_bounds = array<i64: 128, 8>}, {transform_indices = @transform_2, window_bounds = array<i64: 8, 8>}]} {
    %c0_i32 = arith.constant 0 : i32
    %0 = arith.cmpi eq, %arg2, %c0_i32 : i32
    %1 = arith.extui %0 : i1 to i32
    %c0_i32_0 = arith.constant 0 : i32
    %2 = arith.cmpi ne, %1, %c0_i32_0 : i32
    scf.if %2 {
      %cst_10 = arith.constant 0.000000e+00 : f32
      %12 = vector.broadcast %cst_10 : f32 to vector<8x8xf32>
      %c0_11 = arith.constant 0 : index
      %c0_12 = arith.constant 0 : index
      %13 = vector.load %arg6[%c0_11, %c0_12] : memref<8x8xf32, #tpu.memory_space<vmem>>, vector<8x8xf32>
      tpu.vector_store %arg6[%c0_11, %c0_12], %12 {strides = array<i32>} : memref<8x8xf32, #tpu.memory_space<vmem>>, vector<8x8xf32>,
    } else {
    }
    %c0 = arith.constant 0 : index
    %c0_1 = arith.constant 0 : index
    %3 = vector.load %arg3[%c0, %c0_1] : memref<8x128xbf16, #tpu.memory_space<vmem>>, vector<8x128xbf16>
    %c0_2 = arith.constant 0 : index
    %c0_3 = arith.constant 0 : index
    %4 = vector.load %arg6[%c0_2, %c0_3] : memref<8x8xf32, #tpu.memory_space<vmem>>, vector<8x8xf32>
    %c0_4 = arith.constant 0 : index
    %c0_5 = arith.constant 0 : index
    %5 = vector.load %arg4[%c0_4, %c0_5] : memref<128x8xbf16, #tpu.memory_space<vmem>>, vector<128x8xbf16>
    %cst = arith.constant dense<0.000000e+00> : vector<8x8xf32>
    %6 = tpu.matmul %3, %5, %cst {dimension_numbers = #tpu.dot_dimension_numbers<[1], [0], [0], [1], [0, 0, 1, 1], [], []>} : vector<8x128xbf16>, vector<128x8xbf16>, vector<8x8xf32> -> vector<8x8xf32>
    %7 = arith.addf %4, %6 : vector<8x8xf32>
    %c0_6 = arith.constant 0 : index
    %c0_7 = arith.constant 0 : index
    %8 = vector.load %arg6[%c0_6, %c0_7] : memref<8x8xf32, #tpu.memory_space<vmem>>, vector<8x8xf32>
    tpu.vector_store %arg6[%c0_6, %c0_7], %7 {strides = array<i32>} : memref<8x8xf32, #tpu.memory_space<vmem>>, vector<8x8xf32>,
    %c0_i32_8 = arith.constant 0 : i32
    %9 = arith.cmpi eq, %arg2, %c0_i32_8 : i32
    %10 = arith.extui %9 : i1 to i32
    %c0_i32_9 = arith.constant 0 : i32
    %11 = arith.cmpi ne, %10, %c0_i32_9 : i32
    scf.if %11 {
      %c0_10 = arith.constant 0 : index
      %c0_11 = arith.constant 0 : index
      %12 = vector.load %arg6[%c0_10, %c0_11] : memref<8x8xf32, #tpu.memory_space<vmem>>, vector<8x8xf32>
      %c0_12 = arith.constant 0 : index
      %c0_13 = arith.constant 0 : index
      %13 = vector.load %arg5[%c0_12, %c0_13] : memref<8x8xf32, #tpu.memory_space<vmem>>, vector<8x8xf32>
      tpu.vector_store %arg5[%c0_12, %c0_13], %12 {strides = array<i32>} : memref<8x8xf32, #tpu.memory_space<vmem>>, vector<8x8xf32>,
    } else {
    }
    return
  }
  func.func @transform_0(%arg0: i32, %arg1: i32, %arg2: i32) -> (i32, i32) {
    %c0_i32 = arith.constant 0 : i32
    return %arg0, %arg2 : i32, i32
  }
  func.func @transform_1(%arg0: i32, %arg1: i32, %arg2: i32) -> (i32, i32) {
    %c0_i32 = arith.constant 0 : i32
    return %arg2, %arg1 : i32, i32
  }
  func.func @transform_2(%arg0: i32, %arg1: i32, %arg2: i32) -> (i32, i32) {
    %c0_i32 = arith.constant 0 : i32
    return %arg0, %arg1 : i32, i32
  }
}

</mosaic_0001>

<bundles_post_ra>
// kernel: clip_classifier_forward.15
= control target key start
LH: loop header
LB: loop body
LE: loop exit
PB: predicated region body
PF: predicated region fallthrough
CT: control target
= control target key end

     0   :  { %s417_s15 = smov 0   ;;  %s459_s0 = inlined_call_operand.vmem [shape: bf16[2,17,128], index: 0, kind: input, shape index: {}]   ;;  %s460_s1 = inlined_call_operand.vmem [shape: f32[17,128], index: 1, kind: input, shape index: {}]   ;;  %s461_s2 = inlined_call_operand.vmem [shape: f32[1,128], index: 2, kind: input, shape index: {}]   ;;  %s462_s3 = inlined_call_operand.vmem [shape: f32[1,128], index: 3, kind: input, shape index: {}]   ;;  %s463_s4 = inlined_call_operand.vmem [shape: bf16[2,17,128], index: 4, kind: output, shape index: {}]  }
   0x1 LB: > { %s343_s16 = sadd.s32 4294967295, %s390_s15   ;;  %p347_p0 = scmp.ge.s32.totalorder %s390_s15, 1  ;;  %s390_s15 = sphi %s417_s15, %s14_s15  }
   0x2   : > { %p162_p1 = scmp.lt.s32.totalorder %s390_s15, 3 }
   0x4   : > { %p163_p2 = pnand %p347_p0, %p162_p1 }
   0x5   : > { %p188_p3 = scmp.lt.s32.totalorder (!%p163_p2), %s343_s16, 1  ;;  %v206_v0 = vld [vmem:[%s460_s1 + $0x10] sm:$0x1] (!%p163_p2)  ;;  %v205_v3 = vld [vmem:[%s460_s1 + $0x8] sm:$0xff] (!%p163_p2)  ;;  %vm214_vm0 = vcmask (!%p163_p2), 1040384   ;;  %v204_v8 = vld [vmem:[%s460_s1] sm:$0xff] (!%p163_p2) }
   0x6   : > { %166 = sbr.rel (%p163_p2) target bundleno = 342 (0x156), region = 36  ;;  %v350_v35 = vld [vmem:[%s461_s2] ss:$0 sm:$0xff] (!%p163_p2)  ;;  %vm283_vm1 = vsmask.f32 (!%p163_p2), 256 }
   0x7   : > { %v351_v37 = vld [vmem:[%s462_s3] ss:$0 sm:$0xff] (!%p163_p2)  ;;  %vm284_vm2 = vmand (!%p163_p2), %vm214_vm0, %vm283_vm1 }
   0xd   : > { %s465_s16 = smov (!%p188_p3, %s343_s16), 1 }
   0xe   : > { %s369_s17 = smul.u32 12, %s465_s16 }
  0x10   : > { %s192_s20 = scalar_lea.vmem %s459_s0, %s369_s17  ;;  %s197_s7 = scalar_lea.vmem %s463_s4, %s369_s17 }
  0x11   : > { %v200_v1 = vld [vmem:[%s192_s20 + $0x8] sm:$0x1]  ;;  %v361_v2 = vld [vmem:[%s192_s20] sm:$0xff]  }
  0x12   : > { %v203_v4 = vunpack.c.l.bf16 %v200_v1  ;;  %v363_v5 = vunpack.c.h.bf16 %v361_v2  ;;  %v362_v6 = vunpack.c.l.bf16 %v361_v2  ;;  %v285_v44 = vld [vmem:[%s197_s7 + $0x8] sm:$0x1] }
  0x14   : > { %v209_v7 = vadd.f32 %v206_v0, %v203_v4  ;;  %v208_v9 = vadd.f32 %v363_v5, %v205_v3  ;;  %v207_v11 = vadd.f32 %v362_v6, %v204_v8 }
  0x16   : > { %v215_v10 = vsel %vm214_vm0, %v209_v7, 0.0  ;;  %212 = vadd.xlane.f32.xlu1 %v208_v9 }
  0x17   : > { %216 = vadd.xlane.f32.xlu0 %v215_v10 }
  0x1b   : > { %210 = vadd.xlane.f32.xlu0 %v207_v11 }
  0xa3   : > { %v213_v12 = vpop.xlane.xlu1 %212 }
  0xa4   : > { %v217_v13 = vpop.xlane.xlu0 %216  ;;  %v220_v14 = vmul.f32 0.0078125, %v213_v12 }
  0xa5   : > { %v221_v15 = vmul.f32 0.0078125, %v217_v13 }
  0xa6   : > { %v223_v18 = vsub.f32 %v208_v9, %v220_v14 }
  0xa7   : > { %v224_v16 = vsub.f32 %v209_v7, %v221_v15 }
  0xa8   : > { %v211_v17 = vpop.xlane.xlu0 %210  ;;  %v226_v23 = vmul.f32 %v223_v18, %v223_v18 }
  0xa9   : > { %v219_v19 = vmul.f32 0.0078125, %v211_v17  ;;  %v227_v20 = vmul.f32 %v224_v16, %v224_v16 }
  0xab   : > { %v222_v21 = vsub.f32 %v207_v11, %v219_v19  ;;  %v232_v22 = vsel %vm214_vm0, %v227_v20, 0.0 }
  0xac   : > { %233 = vadd.xlane.f32.xlu1 %v232_v22 }
  0xad   : > { %v225_v24 = vmul.f32 %v222_v21, %v222_v21 }
  0xaf   : > { %228 = vadd.xlane.f32.xlu0 %v225_v24 }
  0xb0   : > { %230 = vadd.xlane.f32.xlu1 %v226_v23 }
 0x139   : > { %v234_v25 = vpop.xlane.xlu1 %233 }
 0x13a   : > { %v237_v26 = vmul.f32 0.0078125, %v234_v25 }
 0x13c   : > { %v240_v27 = vadd.f32 1e-05, %v237_v26  ;;  %v229_v28 = vpop.xlane.xlu0 %228 }
 0x13d   : > { %v235_v29 = vmul.f32 0.0078125, %v229_v28  ;;  %v231_v30 = vpop.xlane.xlu1 %230 }
 0x13e   : > { %378 = vrsqrt.f32 %v240_v27  ;;  %v236_v31 = vmul.f32 0.0078125, %v231_v30 }
 0x13f   : > { %v238_v32 = vadd.f32 1e-05, %v235_v29 }
 0x140   : > { %v239_v33 = vadd.f32 1e-05, %v236_v31 }
 0x141   : > { %380 = vrsqrt.f32 %v238_v32 }
 0x142   : > { %382 = vrsqrt.f32 %v239_v33 }
 0x148   : > { %v379_v34 = vpop.eup %378 }
 0x149   : > { %v246_v36 = vmul.f32 %v379_v34, %v224_v16 }
 0x14b   : > { %v381_v38 = vpop.eup %380  ;;  %v256_v39 = vmul.f32 %v350_v35, %v246_v36 }
 0x14c   : > { %v383_v40 = vpop.eup %382  ;;  %v244_v41 = vmul.f32 %v381_v38, %v222_v21 }
 0x14d   : > { %v266_v42 = vadd.f32 %v351_v37, %v256_v39  ;;  %v245_v43 = vmul.f32 %v383_v40, %v223_v18 }
 0x14e   : > { %v254_v45 = vmul.f32 %v350_v35, %v244_v41 }
 0x14f   : > { %v359_v46 = vpack.c.bf16 %v266_v42, %v266_v42  ;;  %v255_v47 = vmul.f32 %v350_v35, %v245_v43 }
 0x150   : > { %v264_v48 = vadd.f32 %v351_v37, %v254_v45 }
 0x151   : > { %v286_v49 = vsel %vm284_vm2, %v359_v46, %v285_v44  ;;  %v265_v50 = vadd.f32 %v351_v37, %v255_v47 }
 0x152   : > { %287 = vst [vmem:[%s197_s7 + $0x8] sm:$0x1] %v286_v49 }
 0x153   : > { %v367_v51 = vpack.c.bf16 %v265_v50, %v264_v48 }
 0x155   : > { %368 = vst [vmem:[%s197_s7] sm:$0xff] %v367_v51  }
 0x156 PF: > { %s14_s15 = sadd.s32 1, %s390_s15  }
 0x157   : > { %p11_p4 = scmp.ge.s32.totalorder %s14_s15, 4  }
 0x159   :  { %13 = sbr.rel (!%p11_p4) target bundleno = 1 (0x1), region = 66 }

// kernel: clip_classifier_forward.14
= control target key start
LH: loop header
LB: loop body
LE: loop exit
PB: predicated region body
PF: predicated region fallthrough
CT: control target
= control target key end

     0   :  { %v317_v0 = vmov 0   ;;  %vm142_vm0 = vcmask 523264   ;;  %s411_s1 = inlined_call_operand.vmem [shape: bf16[192,128], index: 1, kind: input, shape index: {}]   ;;  %s412_s0 = inlined_call_operand.vmem [shape: bf16[32,192], index: 0, kind: input, shape index: {}]   ;;  %s413_s2 = inlined_call_operand.vmem [shape: bf16[32,128], index: 2, kind: output, shape index: {}]  }
   0x1   :  { %149 = vmatprep.subr.bf16.mxu0 %v317_v0  ;;  %274 = vmatprep.subr.bf16.mxu1 %v317_v0  ;;  %v299_v1 = vld [vmem:[%s411_s1] sm:$0xff]   ;;  %v300_v2 = vld [vmem:[%s411_s1 + $0x8] sm:$0xff]   ;;  %v301_v3 = vld [vmem:[%s411_s1 + $0x10] sm:$0xff]  }
   0x2   :  { %150 = vmatpush1.bf16.msra.mxu0 %v299_v1  ;;  %286 = vmatpush1.bf16.msra.mxu1 %v299_v1  ;;  %v302_v4 = vld [vmem:[%s411_s1 + $0x18] sm:$0xff]   ;;  %v313_v5 = vld [vmem:[%s412_s0 + $0x4] ss:$8 sps:$4 sm:$0xff]   ;;  %v305_v9 = vld [vmem:[%s411_s1 + $0x30] sm:$0xff]  }
   0x3   :  { %151 = vmatprep.subr.bf16.mxu0 %v317_v0  ;;  %275 = vmatprep.subr.bf16.mxu1 %v317_v0  ;;  %v303_v6 = vld [vmem:[%s411_s1 + $0x20] sm:$0xff]   ;;  %v316_v7 = vld [vmem:[%s412_s0 + $0x14] ss:$8 sps:$4 sm:$0xff]   ;;  %v304_v8 = vld [vmem:[%s411_s1 + $0x28] sm:$0xff]  }
   0x4   :  { %253 = vmatprep.mubr.msk.bf16.mxu0 %vm142_vm0, %v313_v5  ;;  %254 = vmatprep.mubr.msk.bf16.mxu1 %vm142_vm0, %v316_v7  ;;  %v306_v10 = vld [vmem:[%s411_s1 + $0x38] sm:$0xff]   ;;  %v307_v11 = vld [vmem:[%s411_s1 + $0x40] sm:$0xff]   ;;  %v308_v12 = vld [vmem:[%s411_s1 + $0x48] sm:$0xff]  }
   0x5   :  { %v309_v13 = vld [vmem:[%s411_s1 + $0x50] sm:$0xff]   ;;  %v310_v14 = vld [vmem:[%s411_s1 + $0x58] sm:$0xff]   ;;  %v311_v15 = vld [vmem:[%s412_s0] ss:$8 sps:$4 sm:$0xff]  }
   0x6   :  { %152 = vmatpush1.bf16.msra.mxu0 %v300_v2  ;;  %287 = vmatpush1.bf16.msra.mxu1 %v300_v2  ;;  %v314_v16 = vld [vmem:[%s412_s0 + $0x10] ss:$8 sps:$4 sm:$0xff]  }
   0x7   :  { %153 = vmatprep.subr.bf16.mxu0 %v317_v0  ;;  %276 = vmatprep.subr.bf16.mxu1 %v317_v0 }
   0xa   :  { %154 = vmatpush1.bf16.msra.mxu0 %v301_v3  ;;  %288 = vmatpush1.bf16.msra.mxu1 %v301_v3 }
   0xb   :  { %155 = vmatprep.subr.bf16.mxu0 %v317_v0  ;;  %277 = vmatprep.subr.bf16.mxu1 %v317_v0 }
   0xe   :  { %156 = vmatpush1.bf16.msra.mxu0 %v302_v4  ;;  %289 = vmatpush1.bf16.msra.mxu1 %v302_v4 }
   0xf   :  { %157 = vmatprep.subr.bf16.mxu0 %v317_v0  ;;  %278 = vmatprep.subr.bf16.mxu1 %v317_v0 }
  0x12   :  { %158 = vmatpush1.bf16.msra.mxu0 %v303_v6  ;;  %290 = vmatpush1.bf16.msra.mxu1 %v303_v6 }
  0x13   :  { %159 = vmatprep.subr.bf16.mxu0 %v317_v0  ;;  %279 = vmatprep.subr.bf16.mxu1 %v317_v0 }
  0x16   :  { %160 = vmatpush1.bf16.msra.mxu0 %v304_v8  ;;  %291 = vmatpush1.bf16.msra.mxu1 %v304_v8 }
  0x17   :  { %161 = vmatprep.subr.bf16.mxu0 %v317_v0  ;;  %280 = vmatprep.subr.bf16.mxu1 %v317_v0 }
  0x1a   :  { %162 = vmatpush1.bf16.msra.mxu0 %v305_v9  ;;  %292 = vmatpush1.bf16.msra.mxu1 %v305_v9 }
  0x1b   :  { %163 = vmatprep.subr.bf16.mxu0 %v317_v0  ;;  %281 = vmatprep.subr.bf16.mxu1 %v317_v0 }
  0x1e   :  { %164 = vmatpush1.bf16.msra.mxu0 %v306_v10  ;;  %293 = vmatpush1.bf16.msra.mxu1 %v306_v10 }
  0x1f   :  { %165 = vmatprep.subr.bf16.mxu0 %v317_v0  ;;  %282 = vmatprep.subr.bf16.mxu1 %v317_v0 }
  0x22   :  { %166 = vmatpush1.bf16.msra.mxu0 %v307_v11  ;;  %294 = vmatpush1.bf16.msra.mxu1 %v307_v11 }
  0x23   :  { %167 = vmatprep.subr.bf16.mxu0 %v317_v0  ;;  %283 = vmatprep.subr.bf16.mxu1 %v317_v0 }
  0x26   :  { %168 = vmatpush1.bf16.msra.mxu0 %v308_v12  ;;  %295 = vmatpush1.bf16.msra.mxu1 %v308_v12 }
  0x27   :  { %169 = vmatprep.subr.bf16.mxu0 %v317_v0  ;;  %284 = vmatprep.subr.bf16.mxu1 %v317_v0 }
  0x2a   :  { %170 = vmatpush1.bf16.msra.mxu0 %v309_v13  ;;  %296 = vmatpush1.bf16.msra.mxu1 %v309_v13 }
  0x2b   :  { %171 = vmatprep.subr.bf16.mxu0 %v317_v0  ;;  %285 = vmatprep.subr.bf16.mxu1 %v317_v0 }
  0x2e   :  { %172 = vmatpush1.bf16.msra.mxu0 %v310_v14  ;;  %297 = vmatpush1.bf16.msra.mxu1 %v310_v14 }
  0x31   :  { %182 = vmatmul.mubr.bf16.vlgmr.msra.gmra.mrb[0].mxu0 %v311_v15  ;;  %190 = vmatmul.mubr.bf16.vlgmr.msra.gmra.mrb[0].mxu1 %v314_v16 }
 0x104   :  { %v183_v17 = vpop.f32.mrb[0].mxu0  ;;  %v191_v18 = vpop.f32.mrb[0].mxu1 }
 0x105   :  { %v185_v19 = vpop.f32.mrb[1].mxu0  ;;  %v193_v20 = vpop.f32.mrb[1].mxu1 }
 0x106   :  { %v186_v21 = vpop.f32.mrb[2].mxu0  ;;  %v194_v22 = vpop.f32.mrb[2].mxu1 }
 0x107   :  { %v266_v23 = vpack.c.bf16 %v186_v21, %v183_v17  ;;  %v271_v24 = vpack.c.bf16 %v194_v22, %v191_v18  ;;  %v188_v25 = vpop.f32.mrb[3].mxu0  ;;  %v196_v26 = vpop.f32.mrb[3].mxu1 }
 0x109   :  { %267 = vst [vmem:[%s413_s2] sm:$0xff] %v266_v23   ;;  %273 = vst [vmem:[%s413_s2 + $0x8] sm:$0xff] %v271_v24  }

// kernel: clip_classifier_forward.16
= control target key start
LH: loop header
LB: loop body
LE: loop exit
PB: predicated region body
PF: predicated region fallthrough
CT: control target
= control target key end

     0   :  { %v786_v30 = vmov 0.0   ;;  %v787_v53 = vmov 0   ;;  %vm788_vm0 = vmmov 0   ;;  %s981_s0 = inlined_call_operand.vmem [shape: bf16[40,128], index: 0, kind: input, shape index: {}]   ;;  %s982_s1 = inlined_call_operand.vmem [shape: bf16[128,384], index: 1, kind: input, shape index: {}]   ;;  %s983_s3 = inlined_call_operand.vmem [shape: f32[1,128], index: 3, kind: input, shape index: {}]   ;;  %s984_s4 = inlined_call_operand.vmem [shape: f32[1,128], index: 4, kind: input, shape index: {}]   ;;  %s985_s2 = inlined_call_operand.vmem [shape: f32[1,384], index: 2, kind: input, shape index: {}]   ;;  %s986_s5 = inlined_call_operand.vmem [shape: bf16[40,384], index: 5, kind: output, shape index: {}]  }
   0x1   :  { %v680_v0 = vld [vmem:[%s981_s0] sm:$0xff]   ;;  %v697_v1 = vld [vmem:[%s981_s0 + $0x8] sm:$0xff]   ;;  %v48_v6 = vld [vmem:[%s981_s0 + $0x10] sm:$0xf]  ;;  %710 = vmatprep.subr.bf16.mxu1 %v786_v30  ;;  %388 = vmatprep.mubr.bf16.mxu0 %v787_v53 }
   0x2   :  { %v681_v2 = vunpack.c.l.bf16 %v680_v0  ;;  %v685_v3 = vunpack.c.l.bf16 %v697_v1  ;;  %v682_v4 = vunpack.c.h.bf16 %v680_v0  ;;  %v686_v5 = vunpack.c.h.bf16 %v697_v1  ;;  %v741_v28 = vld [vmem:[%s982_s1 + $0x4] ss:$12 sps:$4 sm:$0xff]   ;;  %v743_v29 = vld [vmem:[%s982_s1] ss:$12 sps:$4 sm:$0xff]   ;;  %v744_v31 = vld [vmem:[%s982_s1 + $0x8] ss:$12 sps:$4 sm:$0xff]   ;;  %726 = vmatprep.mubr.msk.bf16.mxu1 %vm788_vm0, %v786_v30 }
   0x3   :  { %v53_v7 = vunpack.c.l.bf16 %v48_v6  ;;  %356 = vmatprep.subr.bf16.mxu0 %v741_v28  ;;  %711 = vmatpush3.bf16.msra.mxu1 %v744_v31  ;;  %v745_v32 = vld [vmem:[%s982_s1 + $0x1c] ss:$12 sps:$4 sm:$0xff]   ;;  %v747_v33 = vld [vmem:[%s982_s1 + $0x18] ss:$12 sps:$4 sm:$0xff]   ;;  %v748_v34 = vld [vmem:[%s982_s1 + $0x20] ss:$12 sps:$4 sm:$0xff]  }
   0x4   :  { %54 = vadd.xlane.f32.xlu0 %v681_v2  ;;  %58 = vadd.xlane.f32.xlu1 %v685_v3  ;;  %v749_v35 = vld [vmem:[%s982_s1 + $0x34] ss:$12 sps:$4 sm:$0xff]   ;;  %v751_v36 = vld [vmem:[%s982_s1 + $0x30] ss:$12 sps:$4 sm:$0xff]   ;;  %v752_v37 = vld [vmem:[%s982_s1 + $0x38] ss:$12 sps:$4 sm:$0xff]  }
   0x5   :  { %357 = vmatpush1.bf16.msra.mxu0 %v743_v29  ;;  %712 = vmatprep.subr.bf16.mxu1 %v786_v30  ;;  %v753_v38 = vld [vmem:[%s982_s1 + $0x4c] ss:$12 sps:$4 sm:$0xff]   ;;  %v755_v39 = vld [vmem:[%s982_s1 + $0x48] ss:$12 sps:$4 sm:$0xff]   ;;  %v756_v40 = vld [vmem:[%s982_s1 + $0x50] ss:$12 sps:$4 sm:$0xff]  }
   0x6   :  { %358 = vmatprep.subr.bf16.mxu0 %v745_v32  ;;  %v757_v41 = vld [vmem:[%s982_s1 + $0x64] ss:$12 sps:$4 sm:$0xff]   ;;  %v759_v42 = vld [vmem:[%s982_s1 + $0x60] ss:$12 sps:$4 sm:$0xff]   ;;  %v760_v43 = vld [vmem:[%s982_s1 + $0x68] ss:$12 sps:$4 sm:$0xff]  }
   0x7   :  { %713 = vmatpush3.bf16.msra.mxu1 %v748_v34  ;;  %v761_v44 = vld [vmem:[%s982_s1 + $0x7c] ss:$12 sps:$4 sm:$0xff]   ;;  %v763_v45 = vld [vmem:[%s982_s1 + $0x78] ss:$12 sps:$4 sm:$0xff]   ;;  %v764_v46 = vld [vmem:[%s982_s1 + $0x80] ss:$12 sps:$4 sm:$0xff]   ;;  %v523_v34 = vlaneseq }
   0x8   :  { %56 = vadd.xlane.f32.xlu0 %v682_v4  ;;  %60 = vadd.xlane.f32.xlu1 %v686_v5  ;;  %v765_v47 = vld [vmem:[%s982_s1 + $0x94] ss:$12 sps:$4 sm:$0xff]   ;;  %v767_v48 = vld [vmem:[%s982_s1 + $0x90] ss:$12 sps:$4 sm:$0xff]   ;;  %v768_v49 = vld [vmem:[%s982_s1 + $0x98] ss:$12 sps:$4 sm:$0xff]  }
   0x9   :  { %359 = vmatpush1.bf16.msra.mxu0 %v747_v33  ;;  %714 = vmatprep.subr.bf16.mxu1 %v786_v30  ;;  %v769_v50 = vld [vmem:[%s982_s1 + $0xac] ss:$12 sps:$4 sm:$0xff]   ;;  %v771_v51 = vld [vmem:[%s982_s1 + $0xa8] ss:$12 sps:$4 sm:$0xff]   ;;  %v772_v52 = vld [vmem:[%s982_s1 + $0xb0] ss:$12 sps:$4 sm:$0xff]  }
   0xa   :  { %360 = vmatprep.subr.bf16.mxu0 %v749_v35  ;;  %v524_v35 = vshrl.u32 %v523_v34, 7 }
   0xb   :  { %715 = vmatpush3.bf16.msra.mxu1 %v752_v37 }
   0xc   :  { %62 = vadd.xlane.f32.xlu0 %v53_v7  ;;  %716 = vmatprep.subr.bf16.mxu1 %v786_v30  ;;  %v533_v37 = vsub.s32 2, %v524_v35 }
   0xd   :  { %361 = vmatpush1.bf16.msra.mxu0 %v751_v36  ;;  %v525_v36 = vsub.s32 0, %v524_v35 }
   0xe   :  { %362 = vmatprep.subr.bf16.mxu0 %v753_v38  ;;  %v521_v38 = vld [vmem:[%s985_s2] sm:$0x7] }
   0xf   :  { %717 = vmatpush3.bf16.msra.mxu1 %v756_v40  ;;  %v526_v40 = vrot.slane %v521_v38, %v525_v36 }
  0x10   :  { %718 = vmatprep.subr.bf16.mxu1 %v786_v30 }
  0x11   :  { %363 = vmatpush1.bf16.msra.mxu0 %v755_v39  ;;  %v529_v39 = vsub.s32 1, %v524_v35 }
  0x12   :  { %364 = vmatprep.subr.bf16.mxu0 %v757_v41  ;;  %v534_v41 = vrot.slane %v521_v38, %v533_v37 }
  0x13   :  { %719 = vmatpush3.bf16.msra.mxu1 %v760_v43 }
  0x14   :  { %720 = vmatprep.subr.bf16.mxu1 %v786_v30 }
  0x15   :  { %365 = vmatpush1.bf16.msra.mxu0 %v759_v42  ;;  %v530_v42 = vrot.slane %v521_v38, %v529_v39 }
  0x16   :  { %366 = vmatprep.subr.bf16.mxu0 %v761_v44 }
  0x17   :  { %721 = vmatpush3.bf16.msra.mxu1 %v764_v46 }
  0x18   :  { %722 = vmatprep.subr.bf16.mxu1 %v786_v30 }
  0x19   :  { %367 = vmatpush1.bf16.msra.mxu0 %v763_v45 }
  0x1a   :  { %368 = vmatprep.subr.bf16.mxu0 %v765_v47 }
  0x1b   :  { %723 = vmatpush3.bf16.msra.mxu1 %v768_v49 }
  0x1c   :  { %724 = vmatprep.subr.bf16.mxu1 %v786_v30 }
  0x1d   :  { %369 = vmatpush1.bf16.msra.mxu0 %v767_v48 }
  0x1e   :  { %370 = vmatprep.subr.bf16.mxu0 %v769_v50 }
  0x1f   :  { %725 = vmatpush3.bf16.msra.mxu1 %v772_v52 }
  0x21   :  { %371 = vmatpush1.bf16.msra.mxu0 %v771_v51 }
  0x91   :  { %v55_v8 = vpop.xlane.xlu0 %54  ;;  %v59_v9 = vpop.xlane.xlu1 %58 }
  0x92   :  { %v65_v10 = vmul.f32 0.0078125, %v55_v8  ;;  %v67_v11 = vmul.f32 0.0078125, %v59_v9 }
  0x94   :  { %v828_v12 = vsub.f32 %v681_v2, %v65_v10  ;;  %v830_v13 = vsub.f32 %v685_v3, %v67_v11 }
  0x95   :  { %v57_v14 = vpop.xlane.xlu0 %56  ;;  %v61_v15 = vpop.xlane.xlu1 %60 }
  0x96   :  { %v66_v16 = vmul.f32 0.0078125, %v57_v14  ;;  %v75_v17 = vmul.f32 %v828_v12, %v828_v12  ;;  %v68_v18 = vmul.f32 0.0078125, %v61_v15  ;;  %v77_v21 = vmul.f32 %v830_v13, %v830_v13  ;;  %v621_v15 = vld [vmem:[%s984_s4] ss:$0 sm:$0xff] }
  0x98   :  { %v834_v19 = vsub.f32 %v682_v4, %v66_v16  ;;  %80 = vadd.xlane.f32.xlu1 %v75_v17  ;;  %v836_v20 = vsub.f32 %v686_v5, %v68_v18 }
  0x99   :  { %v63_v22 = vpop.xlane.xlu0 %62 }
  0x9a   :  { %v69_v23 = vmul.f32 0.0078125, %v63_v22  ;;  %v76_v24 = vmul.f32 %v834_v19, %v834_v19  ;;  %v78_v26 = vmul.f32 %v836_v20, %v836_v20 }
  0x9c   :  { %v842_v25 = vsub.f32 %v53_v7, %v69_v23  ;;  %84 = vadd.xlane.f32.xlu1 %v77_v21  ;;  %82 = vadd.xlane.f32.xlu0 %v76_v24  ;;  %v620_v7 = vld [vmem:[%s983_s3] ss:$0 sm:$0xff] }
  0x9e   :  { %v79_v27 = vmul.f32 %v842_v25, %v842_v25 }
  0xa0   :  { %86 = vadd.xlane.f32.xlu0 %v78_v26  ;;  %88 = vadd.xlane.f32.xlu1 %v79_v27 }
 0x125   :  { %v81_v54 = vpop.xlane.xlu1 %80 }
 0x126   :  { %v90_v55 = vmul.f32 0.0078125, %v81_v54 }
 0x128   :  { %v95_v56 = vadd.f32 1e-05, %v90_v55 }
 0x129   :  { %v85_v57 = vpop.xlane.xlu1 %84  ;;  %v83_v58 = vpop.xlane.xlu0 %82 }
 0x12a   :  { %776 = vrsqrt.f32 %v95_v56  ;;  %v92_v59 = vmul.f32 0.0078125, %v85_v57  ;;  %v91_v60 = vmul.f32 0.0078125, %v83_v58 }
 0x12c   :  { %v97_v61 = vadd.f32 1e-05, %v92_v59  ;;  %v96_v62 = vadd.f32 1e-05, %v91_v60 }
 0x12d   :  { %v89_v63 = vpop.xlane.xlu1 %88  ;;  %v87_v0 = vpop.xlane.xlu0 %86 }
 0x12e   :  { %778 = vrsqrt.f32 %v97_v61  ;;  %v94_v1 = vmul.f32 0.0078125, %v89_v63  ;;  %v93_v2 = vmul.f32 0.0078125, %v87_v0 }
 0x12f   :  { %780 = vrsqrt.f32 %v96_v62 }
 0x130   :  { %v99_v3 = vadd.f32 1e-05, %v94_v1  ;;  %v98_v4 = vadd.f32 1e-05, %v93_v2 }
 0x132   :  { %782 = vrsqrt.f32 %v99_v3 }
 0x133   :  { %784 = vrsqrt.f32 %v98_v4 }
 0x134   :  { %v777_v5 = vpop.eup %776 }
 0x135   :  { %v105_v6 = vmul.f32 %v777_v5, %v828_v12 }
 0x137   :  { %v117_v10 = vmul.f32 %v620_v7, %v105_v6 }
 0x138   :  { %v779_v8 = vpop.eup %778 }
 0x139   :  { %v781_v9 = vpop.eup %780  ;;  %v107_v11 = vmul.f32 %v779_v8, %v830_v13  ;;  %v129_v21 = vadd.f32 %v621_v15, %v117_v10 }
 0x13a   :  { %v106_v14 = vmul.f32 %v781_v9, %v834_v19 }
 0x13b   :  { %v119_v22 = vmul.f32 %v620_v7, %v107_v11 }
 0x13c   :  { %v783_v16 = vpop.eup %782  ;;  %v118_v17 = vmul.f32 %v620_v7, %v106_v14 }
 0x13d   :  { %v785_v18 = vpop.eup %784  ;;  %v109_v12 = vmul.f32 %v783_v16, %v842_v25  ;;  %v131_v29 = vadd.f32 %v621_v15, %v119_v22 }
 0x13e   :  { %v130_v23 = vadd.f32 %v621_v15, %v118_v17  ;;  %v108_v24 = vmul.f32 %v785_v18, %v836_v20 }
 0x13f   :  { %v121_v26 = vmul.f32 %v620_v7, %v109_v12 }
 0x140   :  { %v690_v27 = vpack.c.bf16 %v130_v23, %v129_v21  ;;  %v120_v28 = vmul.f32 %v620_v7, %v108_v24 }
 0x141   :  { %v133_v13 = vadd.f32 %v621_v15, %v121_v26 }
 0x142   :  { %691 = vst [vmem:[#allocation3] sm:$0xff] %v690_v27   ;;  %v132_v19 = vadd.f32 %v621_v15, %v120_v28 }
 0x143   :  { %v668_v31 = vpack.c.bf16 %v133_v13, %v133_v13 }
 0x144   :  { %v695_v32 = vpack.c.bf16 %v132_v19, %v131_v29 }
 0x145   :  { %159 = vst [vmem:[#allocation3 + $0x10] sm:$0xf] %v668_v31 }
 0x146   :  { %698 = vst [vmem:[#allocation3 + $0x8] sm:$0xff] %v695_v32  }
 0x149   :  { %v773_v33 = vld [vmem:[#allocation3] sm:$0xff]  }
 0x14a   :  { %389 = vmatmul.mubr.bf16.vlgmr.msra.gmra.mrb[0].mxu0 %v773_v33  ;;  %727 = vmatmul.mubr.bf16.vlgmr.msra.gmra.mrb[0].mxu1 %v773_v33 }
 0x14b   :  { %398 = vmatprep.mubr.bf16.mxu0 %v787_v53  ;;  %730 = vmatprep.mubr.msk.bf16.mxu1 %vm788_vm0, %v786_v30 }
 0x14c   :  { %v775_v25 = vld [vmem:[#allocation3 + $0x10] ss:$0 sps:$4 sm:$0xff]  }
 0x14d   :  { %v774_v20 = vld [vmem:[#allocation3 + $0x8] sm:$0xff]  }
 0x152   :  { %399 = vmatmul.mubr.bf16.gmra.mrb[4].mxu0 %v774_v20  ;;  %731 = vmatmul.mubr.bf16.gmra.mrb[4].mxu1 %v774_v20 }
 0x153   :  { %408 = vmatprep.mubr.bf16.mxu0 %v787_v53  ;;  %734 = vmatprep.mubr.msk.bf16.mxu1 %vm788_vm0, %v786_v30 }
 0x15a   :  { %409 = vmatmul.mubr.bf16.gmra.mrb[8].mxu0 %v775_v25  ;;  %735 = vmatmul.mubr.bf16.gmra.mrb[8].mxu1 %v775_v25 }
 0x21d   :  { %v390_v43 = vpop.f32.mrb[0].mxu0  ;;  %v451_v44 = vpop.f32.mrb[0].mxu1 }
 0x21e   :  { %v538_v45 = vadd.f32 %v526_v40, %v390_v43  ;;  %v540_v46 = vadd.f32 %v534_v41, %v451_v44  ;;  %v392_v30 = vpop.f32.mrb[1].mxu0  ;;  %v728_v47 = vpop.f32.mrb[1].mxu1 }
 0x21f   :  { %v539_v48 = vadd.f32 %v530_v42, %v392_v30  ;;  %v394_v49 = vpop.f32.mrb[2].mxu0  ;;  %v454_v50 = vpop.f32.mrb[2].mxu1 }
 0x220   :  { %v670_v51 = vpack.c.bf16 %v540_v46, %v540_v46  ;;  %v541_v52 = vadd.f32 %v526_v40, %v394_v49  ;;  %v543_v53 = vadd.f32 %v534_v41, %v454_v50  ;;  %v396_v54 = vpop.f32.mrb[3].mxu0  ;;  %v729_v55 = vpop.f32.mrb[3].mxu1 }
 0x221   :  { %v669_v56 = vpack.c.bf16 %v539_v48, %v538_v45  ;;  %v542_v57 = vadd.f32 %v530_v42, %v396_v54 }
 0x222   :  { %607 = vst [vmem:[%s986_s5 + $0x8] sm:$0xf] %v670_v51  ;;  %v672_v58 = vpack.c.bf16 %v543_v53, %v543_v53 }
 0x223   :  { %606 = vst [vmem:[%s986_s5] sm:$0xff] %v669_v56  ;;  %v671_v59 = vpack.c.bf16 %v542_v57, %v541_v52 }
 0x224   :  { %609 = vst [vmem:[%s986_s5 + $0x14] sm:$0xf] %v672_v58 }
 0x225   :  { %608 = vst [vmem:[%s986_s5 + $0xc] sm:$0xff] %v671_v59  ;;  %v400_v60 = vpop.f32.mrb[4].mxu0  ;;  %v459_v61 = vpop.f32.mrb[4].mxu1 }
 0x226   :  { %v544_v62 = vadd.f32 %v526_v40, %v400_v60  ;;  %v546_v63 = vadd.f32 %v534_v41, %v459_v61  ;;  %v402_v0 = vpop.f32.mrb[5].mxu0  ;;  %v732_v1 = vpop.f32.mrb[5].mxu1 }
 0x227   :  { %v545_v2 = vadd.f32 %v530_v42, %v402_v0  ;;  %v404_v3 = vpop.f32.mrb[6].mxu0  ;;  %v462_v4 = vpop.f32.mrb[6].mxu1 }
 0x228   :  { %v674_v5 = vpack.c.bf16 %v546_v63, %v546_v63  ;;  %v547_v6 = vadd.f32 %v526_v40, %v404_v3  ;;  %v549_v7 = vadd.f32 %v534_v41, %v462_v4  ;;  %v406_v8 = vpop.f32.mrb[7].mxu0  ;;  %v733_v9 = vpop.f32.mrb[7].mxu1 }
 0x229   :  { %v673_v10 = vpack.c.bf16 %v545_v2, %v544_v62  ;;  %v548_v11 = vadd.f32 %v530_v42, %v406_v8 }
 0x22a   :  { %611 = vst [vmem:[%s986_s5 + $0x20] sm:$0xf] %v674_v5  ;;  %v676_v14 = vpack.c.bf16 %v549_v7, %v549_v7 }
 0x22b   :  { %610 = vst [vmem:[%s986_s5 + $0x18] sm:$0xff] %v673_v10  ;;  %v675_v15 = vpack.c.bf16 %v548_v11, %v547_v6 }
 0x22c   :  { %613 = vst [vmem:[%s986_s5 + $0x2c] sm:$0xf] %v676_v14 }
 0x22d   :  { %612 = vst [vmem:[%s986_s5 + $0x24] sm:$0xff] %v675_v15  ;;  %v410_v16 = vpop.f32.mrb[8].mxu0  ;;  %v467_v17 = vpop.f32.mrb[8].mxu1 }
 0x22e   :  { %v550_v18 = vadd.f32 %v526_v40, %v410_v16  ;;  %v552_v12 = vadd.f32 %v534_v41, %v467_v17  ;;  %v412_v21 = vpop.f32.mrb[9].mxu0  ;;  %v736_v22 = vpop.f32.mrb[9].mxu1 }
 0x22f   :  { %v551_v23 = vadd.f32 %v530_v42, %v412_v21  ;;  %v414_v24 = vpop.f32.mrb[10].mxu0  ;;  %v470_v26 = vpop.f32.mrb[10].mxu1 }
 0x230   :  { %v678_v27 = vpack.c.bf16 %v552_v12, %v552_v12  ;;  %v415_v28 = vpop.f32.mrb[11].mxu0  ;;  %v737_v13 = vpop.f32.mrb[11].mxu1 }
 0x231   :  { %v677_v29 = vpack.c.bf16 %v551_v23, %v550_v18 }
 0x232   :  { %615 = vst [vmem:[%s986_s5 + $0x38] sm:$0xf] %v678_v27 }
 0x233   :  { %614 = vst [vmem:[%s986_s5 + $0x30] sm:$0xff] %v677_v29 }

// kernel: clip_classifier_forward.17
= control target key start
LH: loop header
LB: loop body
LE: loop exit
PB: predicated region body
PF: predicated region fallthrough
CT: control target
= control target key end

     0   :  { %s1786_s12 = smov 0   ;;  %s1788_s13 = smov 0   ;;  %s2034_s0 = inlined_call_operand.vmem [shape: bf16[2,17,384], index: 0, kind: input, shape index: {}, may-alias: {0,1,2}]   ;;  %s2035_s1 = inlined_call_operand.vmem [shape: bf16[2,17,384], index: 1, kind: input, shape index: {}, may-alias: {0,1,2}]   ;;  %s2036_s2 = inlined_call_operand.vmem [shape: bf16[2,17,384], index: 2, kind: input, shape index: {}, may-alias: {0,1,2}]   ;;  %s2037_s3 = inlined_call_operand.vmem [shape: bf16[2,17,128], index: 3, kind: output, shape index: {}]  }
   0x1   :  { %s1790_s14 = smov 0   ;;  %s1792_s15 = smov 0  }
   0x2   :  { %s1794_s16 = smov 0  }
   0x3 LB: > { %s25_s17 = sadd.s32 1, %s1756_s15  ;;  %p41_p1 = scmp.ne.s32.totalorder %s1748_s13, %s1744_s12  ;;  %s1760_s16 = sphi %s1794_s16, %s13_s16   ;;  %s1756_s15 = sphi %s1792_s15, %s2042_s15   ;;  %s1752_s14 = sphi %s1790_s14, %s2041_s14   ;;  %s1748_s13 = sphi %s1788_s13, %s2040_s13   ;;  %s1744_s12 = sphi %s1786_s12, %s2039_s12  }
   0x4   : > { %p27_p0 = scmp.ge.s32.totalorder %s25_s17, 2  ;;  %p42_p2 = scmp.eq.s32.totalorder %s1760_s16, 0 }
   0x5   : > { %s34_s20 = sadd.s32 1, %s1748_s13  ;;  %p1418_p5 = scmp.ge.s32.totalorder %s1760_s16, 2 }
   0x6   : > { %s2044_s17 = smov (%p27_p0, %s25_s17), 0  ;;  %p1817_p3 = por %p42_p2, %p41_p1 }
   0x7   : > { %s29_s19 = ssub.s32 %s1756_s15, %s2044_s17  ;;  %155 = sbr.rel (%p1418_p5) target bundleno = 35 (0x23), region = 16 }
   0x8   : > { %p32_p4 = scmp.eq.s32.totalorder %s29_s19, 0 }
   0xa   : > { %s1825_s21 = scalar_select %p32_p4, %s1748_s13, %s34_s20  }
   0xe   : > { %158 = sbr.rel (!%p1817_p3) target bundleno = 21 (0x15), region = 20  ;;  %s160_s22 = sand.u32 (%p1817_p3), 1, %s1748_s13  }
   0xf   : > { %s1601_s23 = smul.u32 (%p1817_p3), 36, %s1756_s15 }
  0x10   : > { %s1600_s24 = smul.u32 (%p1817_p3), 12, %s160_s22 }
  0x11   : > { %s166_s27 = scalar_lea.vmem (%p1817_p3), %s2034_s0, %s1601_s23 }
  0x12   : > { %v182_v0 = vld [vmem:[%s166_s27] sm:$0xf] (%p1817_p3)  ;;  %v184_v1 = vld [vmem:[%s166_s27 + $0xc] sm:$0xf] (%p1817_p3)  ;;  %s162_s28 = scalar_lea.vmem (%p1817_p3), [#allocation2], %s1600_s24 }
  0x13   : > { %183 = vst [vmem:[%s162_s28] sm:$0xf] (%p1817_p3), %v182_v0  ;;  %185 = vst [vmem:[%s162_s28 + $0x4] sm:$0xf] (%p1817_p3), %v184_v1  ;;  %v186_v2 = vld [vmem:[%s166_s27 + $0x18] sm:$0xf] (%p1817_p3) }
  0x14   : > { %187 = vst [vmem:[%s162_s28 + $0x8] sm:$0xf] (%p1817_p3), %v186_v2 }
  0x15 PF: > { %216 = sbr.rel (!%p1817_p3) target bundleno = 28 (0x1c), region = 61  ;;  %s218_s29 = sand.u32 (%p1817_p3), 1, %s1748_s13  }
  0x16   : > { %s1420_s30 = smul.u32 (%p1817_p3), 36, %s1756_s15 }
  0x17   : > { %s1602_s4 = smul.u32 (%p1817_p3), 12, %s218_s29 }
  0x18   : > { %s1326_s7 = scalar_lea.vmem (%p1817_p3), %s2035_s1, %s1420_s30 }
  0x19   : > { %v1421_v3 = vld [vmem:[%s1326_s7 + $0x4] sm:$0xf] (%p1817_p3)  ;;  %v1422_v4 = vld [vmem:[%s1326_s7 + $0x10] sm:$0xf] (%p1817_p3)  ;;  %s220_s8 = scalar_lea.vmem (%p1817_p3), [#allocation3], %s1602_s4 }
  0x1a   : > { %242 = vst [vmem:[%s220_s8] sm:$0xf] (%p1817_p3), %v1421_v3  ;;  %244 = vst [vmem:[%s220_s8 + $0x4] sm:$0xf] (%p1817_p3), %v1422_v4  ;;  %v1423_v5 = vld [vmem:[%s1326_s7 + $0x1c] sm:$0xf] (%p1817_p3) }
  0x1b   : > { %246 = vst [vmem:[%s220_s8 + $0x8] sm:$0xf] (%p1817_p3), %v1423_v5 }
  0x1c PF: > { %275 = sbr.rel (!%p1817_p3) target bundleno = 35 (0x23), region = 102  ;;  %s277_s9 = sand.u32 (%p1817_p3), 1, %s1748_s13  }
  0x1d   : > { %s1424_s10 = smul.u32 (%p1817_p3), 36, %s1756_s15 }
  0x1e   : > { %s1603_s11 = smul.u32 (%p1817_p3), 12, %s277_s9 }
  0x1f   : > { %s1333_s22 = scalar_lea.vmem (%p1817_p3), %s2036_s2, %s1424_s10 }
  0x20   : > { %v1425_v6 = vld [vmem:[%s1333_s22 + $0x8] sm:$0xf] (%p1817_p3)  ;;  %v1426_v7 = vld [vmem:[%s1333_s22 + $0x14] sm:$0xf] (%p1817_p3)  ;;  %s279_s23 = scalar_lea.vmem (%p1817_p3), [#allocation4], %s1603_s11 }
  0x21   : > { %301 = vst [vmem:[%s279_s23] sm:$0xf] (%p1817_p3), %v1425_v6  ;;  %303 = vst [vmem:[%s279_s23 + $0x4] sm:$0xf] (%p1817_p3), %v1426_v7  ;;  %v1427_v8 = vld [vmem:[%s1333_s22 + $0x20] sm:$0xf] (%p1817_p3) }
  0x22   : > { %305 = vst [vmem:[%s279_s23 + $0x8] sm:$0xf] (%p1817_p3), %v1427_v8 }
  0x23 PF: > { %p1428_p6 = scmp.ge.s32.totalorder %s1760_s16, 1  ;;  %p333_p7 = scmp.lt.s32.totalorder %s1760_s16, 3 }
  0x25   : > { %p334_p8 = pnand %p1428_p6, %p333_p7 }
  0x26   : > { %s340_s18 = sand.u32 (!%p334_p8), 1, %s1744_s12   ;;  %vm424_vm0 = vcmask (!%p334_p8), 261120   ;;  %vm492_vm1 = vcmask (!%p334_p8), 131072   ;;  %vm485_vm2 = vcmask (!%p334_p8), 138240   ;;  %vm537_vm3 = vcmask (!%p334_p8), 1040384   ;;  %s1762_s27 = smov (!%p334_p8), 96  }
  0x27   : > { %337 = sbr.rel (%p334_p8) target bundleno = 2581 (0xa15), region = 143  ;;  %v1763_v42 = vmov (!%p334_p8), 0   ;;  %p390_p9 = scmp.lt.s32.totalorder (!%p334_p8), %s1752_s14, 1  ;;  %vm607_vm4 = vcmask (!%p334_p8), 253952   ;;  %vm608_vm5 = vsmask.f32 (!%p334_p8), 256 }
  0x28   : > { %s1852_s24 = smul.u32 (!%p334_p8), 12, %s340_s18  ;;  %v1885_v43 = vsel (!%p334_p8), %vm537_vm3, 65535, %v1763_v42  ;;  %vm609_vm6 = vmand (!%p334_p8), %vm607_vm4, %vm608_vm5  ;;  %vm604_vm7 = vcmask (!%p334_p8), 257024   ;;  %s1765_s5 = smov (!%p334_p8), 32   ;;  %vm833_vm8 = vcmask (!%p334_p8), 516352   ;;  %vm830_vm9 = vcmask (!%p334_p8), 519424  }
  0x29   : > { %vm834_vm10 = vmand (!%p334_p8), %vm833_vm8, %vm608_vm5  ;;  %vm1055_vm11 = vcmask (!%p334_p8), 781824   ;;  %vm1058_vm12 = vcmask (!%p334_p8), 778752   ;;  %vm1283_vm14 = vcmask (!%p334_p8), 1041152  }
  0x2a   : > { %s1855_s25 = scalar_lea.vmem (!%p334_p8), [#allocation3], %s1852_s24  ;;  %s1860_s26 = scalar_lea.vmem (!%p334_p8), [#allocation2], %s1852_s24  ;;  %vm1059_vm13 = vmand (!%p334_p8), %vm1058_vm12, %vm608_vm5 }
  0x2b   : > { %v1650_v9 = vld [vmem:[%s1855_s25] sm:$0xff] (!%p334_p8)   ;;  %v1651_v10 = vld [vmem:[%s1855_s25 + $0x8] ss:$0 sps:$4 sm:$0x11] (!%p334_p8)   ;;  %s1878_s12 = scalar_lea.vmem (!%p334_p8), [#allocation4], %s1852_s24  ;;  %vm1284_vm15 = vmand (!%p334_p8), %vm1283_vm14, %vm608_vm5 }
  0x2c   : > { %v1652_v11 = vld [vmem:[%s1860_s26] sm:$0xff] (!%p334_p8)   ;;  %1592 = vmatprep.subr.msk.bf16.mxu0 (!%p334_p8), %vm424_vm0, %v1650_v9  ;;  %v432_v12 = vsel (!%p334_p8), %vm424_vm0, %v1650_v9, 0  ;;  %v435_v13 = vsel (!%p334_p8), %vm424_vm0, %v1651_v10, 0  ;;  %v1653_v14 = vld [vmem:[%s1860_s26 + $0x8] ss:$0 sps:$4 sm:$0x11] (!%p334_p8)  }
  0x2d   : > { %1529 = vmatpush3.bf16.xpose.msra.mxu0 (!%p334_p8), %v432_v12  ;;  %1532 = vmatprep.mubr.msk.bf16.mxu0 (!%p334_p8), %vm424_vm0, %v1652_v11  ;;  %v1655_v37 = vld [vmem:[%s1855_s25 + $0x8] ss:$0 sps:$4 sm:$0x11] (!%p334_p8)   ;;  %v1658_v38 = vld [vmem:[%s1878_s12] sm:$0xff] (!%p334_p8)   ;;  %v1654_v39 = vld [vmem:[%s1855_s25] sm:$0xff] (!%p334_p8)  }
  0x2e   : > { %1593 = vmatprep.subr.msk.bf16.mxu0 %vm424_vm0, %v1651_v10  ;;  %v1659_v40 = vld [vmem:[%s1878_s12 + $0x8] ss:$0 sps:$4 sm:$0x11]   ;;  %v1656_v41 = vld [vmem:[%s1860_s26] sm:$0xff]   ;;  %1536 = vmatprep.subr.bf16.mxu1 %v1658_v38  ;;  %s2046_s14 = smov (!%p390_p9, %s1752_s14), 1 }
  0x2f   : > { %1537 = vmatpush3.bf16.msra.mxu1 %v1658_v38  ;;  %v541_v44 = vand.u32 %v1659_v40, %v1885_v43  ;;  %v1657_v45 = vld [vmem:[%s1860_s26 + $0x8] ss:$0 sps:$4 sm:$0x11]   ;;  %s1605_s28 = smul.u32 12, %s2046_s14  ;;  %s1764_s14 = smov 64  }
  0x31   : > { %1538 = vmatprep.subr.bf16.mxu1 %v541_v44  ;;  %s1905_s4 = scalar_lea.vmem %s2037_s3, %s1605_s28 }
  0x32   : > { %v610_v0 = vld [vmem:[%s1905_s4 + $0x8] sm:$0x1] }
  0x33   : > { %1539 = vmatpush3.bf16.msra.mxu1 %v541_v44 }
  0x35   : > { %1531 = vmatpush3.bf16.xpose.msra.mxu0 %v435_v13 }
  0x3c   : > { %1533 = vmatmul.mubr.msk.bf16.vlgmr.msra.gmra.mrb[0].mxu0 %vm424_vm0, %v1653_v14 }
 0x10f   : > { %v1534_v15 = vpop.f32.mrb[0].mxu0 }
 0x110   : > { %v471_v16 = vpop.f32.mrb[1].mxu0  ;;  %v493_v17 = vsel %vm492_vm1, %v1534_v15, -inf }
 0x111   : > { %494 = vmax.xlane.f32.xlu1 %v493_v17  ;;  %v1535_v18 = vpop.f32.mrb[2].mxu0  ;;  %v486_v19 = vsel %vm485_vm2, %v471_v16, -inf }
 0x112   : > { %487 = vmax.xlane.f32.xlu0 %v486_v19  ;;  %v474_v20 = vpop.f32.mrb[3].mxu0 }
 0x113   : > { %v489_v21 = vsel %vm485_vm2, %v474_v20, -inf }
 0x116   : > { %490 = vmax.xlane.f32.xlu0 %v489_v21 }
 0x19e   : > { %v495_v22 = vpop.xlane.xlu1 %494 }
 0x19f   : > { %v498_v23 = vsub.f32 %v1534_v15, %v495_v22  ;;  %v488_v24 = vpop.xlane.xlu0 %487 }
 0x1a0   : > { %v496_v25 = vsub.f32 %v471_v16, %v488_v24 }
 0x1a1   : > { %v503_v26 = vmul.f32 1.442695, %v498_v23 }
 0x1a2   : > { %v499_v27 = vmul.f32 1.442695, %v496_v25 }
 0x1a3   : > { %v491_v28 = vpop.xlane.xlu0 %490 }
 0x1a4   : > { %1674 = vpow2.f32 %v499_v27  ;;  %v497_v29 = vsub.f32 %v474_v20, %v491_v28 }
 0x1a5   : > { %1676 = vpow2.f32 %v503_v26 }
 0x1a6   : > { %v501_v30 = vmul.f32 1.442695, %v497_v29 }
 0x1a8   : > { %1678 = vpow2.f32 %v501_v30  ;;  %v1661_v30 = vld [vmem:[%s1878_s12 + $0x8] ss:$0 sps:$4 sm:$0x11]  }
 0x1ae   : > { %v1675_v31 = vpop.eup %1674 }
 0x1af   : > { %v505_v32 = vsel %vm485_vm2, %v1675_v31, 0.0  ;;  %v1677_v33 = vpop.eup %1676 }
 0x1b0   : > { %506 = vadd.xlane.f32.xlu1 %v505_v32  ;;  %v511_v35 = vsel %vm492_vm1, %v1677_v33, 0.0  ;;  %v1660_v32 = vld [vmem:[%s1878_s12] sm:$0xff]  }
 0x1b2   : > { %v1679_v34 = vpop.eup %1678 }
 0x1b3   : > { %v508_v36 = vsel %vm485_vm2, %v1679_v34, 0.0 }
 0x1b4   : > { %512 = vadd.xlane.f32.xlu1 %v511_v35  ;;  %509 = vadd.xlane.f32.xlu0 %v508_v36  ;;  %v1665_v35 = vld [vmem:[%s1860_s26 + $0x8] ss:$0 sps:$4 sm:$0x11]  }
 0x1c5   : > { %644 = vrot.lane.b32.xlu1 %v1655_v37, %s1762_s27 }
 0x1c9   : > { %630 = vrot.lane.b32.xlu1 %v1656_v41, %s1762_s27 }
 0x1ca   : > { %642 = vrot.lane.b32.xlu0 %v1654_v39, %s1762_s27 }
 0x1cd   : > { %632 = vrot.lane.b32.xlu1 %v1657_v45, %s1762_s27 }
 0x23d   : > { %v507_v46 = vpop.xlane.xlu1 %506 }
 0x23e   : > { %1680 = vrcp.f32 %v507_v46 }
 0x241   : > { %v513_v47 = vpop.xlane.xlu1 %512  ;;  %v510_v48 = vpop.xlane.xlu0 %509 }
 0x242   : > { %1682 = vrcp.f32 %v513_v47 }
 0x243   : > { %1684 = vrcp.f32 %v510_v48 }
 0x245   : > { %v643_v49 = vpop.permute.xlu0 %642  ;;  %v645_v51 = vpop.permute.xlu1 %644 }
 0x246   : > { %1594 = vmatprep.subr.msk.bf16.mxu1 %vm424_vm0, %v643_v49  ;;  %v653_v59 = vsel %vm424_vm0, %v643_v49, 0  ;;  %v656_v61 = vsel %vm424_vm0, %v645_v51, 0 }
 0x248   : > { %v1681_v50 = vpop.eup %1680 }
 0x249   : > { %v517_v55 = vmul.f32 %v1681_v50, %v1675_v31  ;;  %v631_v60 = vpop.permute.xlu1 %630  ;;  %v1662_v31 = vld [vmem:[%s1855_s25] sm:$0xff]  }
 0x24c   : > { %v1683_v52 = vpop.eup %1682 }
 0x24d   : > { %v1685_v53 = vpop.eup %1684  ;;  %v519_v54 = vmul.f32 %v1683_v52, %v1677_v33  ;;  %v633_v62 = vpop.permute.xlu1 %632  ;;  %v1663_v33 = vld [vmem:[%s1855_s25 + $0x8] ss:$0 sps:$4 sm:$0x11]  }
 0x24e   : > { %v518_v56 = vmul.f32 %v1685_v53, %v1679_v34  ;;  %v1664_v34 = vld [vmem:[%s1860_s26] sm:$0xff]  }
 0x24f   : > { %v521_v57 = vpack.c.bf16 %v519_v54, %v519_v54 }
 0x250   : > { %v520_v58 = vpack.c.bf16 %v518_v56, %v517_v55 }
 0x252   : > { %1540 = vmatprep.mubr.msk.bf16.mxu1 %vm485_vm2, %v520_v58 }
 0x253   : > { %1541 = vmatmul.mubr.msk.bf16.vlgmr.msra.gmra.mrb[0].mxu1 %vm485_vm2, %v521_v57 }
 0x254   : > { %1545 = vmatpush3.bf16.xpose.msra.mxu1 %v653_v59  ;;  %1548 = vmatprep.mubr.msk.bf16.mxu1 %vm424_vm0, %v631_v60 }
 0x255   : > { %1595 = vmatprep.subr.msk.bf16.mxu1 %vm424_vm0, %v645_v51 }
 0x25c   : > { %1547 = vmatpush3.bf16.xpose.msra.mxu1 %v656_v61 }
 0x263   : > { %1549 = vmatmul.mubr.msk.bf16.vlgmr.msra.gmra.mrb[4].mxu1 %vm424_vm0, %v633_v62 }
 0x326   : > { %v1542_v63 = vpop.f32.mrb[0].mxu1 }
 0x327   : > { %v1486_v1 = vpack.c.bf16 %v1542_v63, %v1542_v63  ;;  %v577_v2 = vpop.f32.mrb[1].mxu1 }
 0x328   : > { %v1484_v3 = vpack.c.bf16 %v577_v2, %v577_v2  ;;  %v1543_v4 = vpop.f32.mrb[2].mxu1 }
 0x329   : > { %v611_v5 = vsel %vm609_vm6, %v1486_v1, %v610_v0  ;;  %v580_v6 = vpop.f32.mrb[3].mxu1 }
 0x32a   : > { %612 = vst [vmem:[%s1905_s4 + $0x8] sm:$0x1] %v611_v5  ;;  %605 = vst.msk [vmem:[%s1905_s4] sm:$0xf] %vm604_vm7, %v1484_v3  ;;  %v1485_v7 = vpack.c.bf16 %v580_v6, %v580_v6 }
 0x32c   : > { %606 = vst.msk [vmem:[%s1905_s4 + $0x4] sm:$0xf] %vm604_vm7, %v1485_v7 }
 0x336   : > { %v1550_v8 = vpop.f32.mrb[4].mxu1 }
 0x337   : > { %v692_v9 = vpop.f32.mrb[5].mxu1  ;;  %v712_v14 = vsel %vm492_vm1, %v1550_v8, -inf }
 0x338   : > { %v1551_v10 = vpop.f32.mrb[6].mxu1  ;;  %v706_v11 = vsel %vm485_vm2, %v692_v9, -inf }
 0x339   : > { %707 = vmax.xlane.f32.xlu0 %v706_v11  ;;  %v695_v12 = vpop.f32.mrb[7].mxu1 }
 0x33a   : > { %v709_v13 = vsel %vm485_vm2, %v695_v12, -inf }
 0x33b   : > { %710 = vmax.xlane.f32.xlu1 %v709_v13 }
 0x33d   : > { %713 = vmax.xlane.f32.xlu0 %v712_v14 }
 0x3c6   : > { %v708_v15 = vpop.xlane.xlu0 %707 }
 0x3c7   : > { %v715_v16 = vsub.f32 %v692_v9, %v708_v15 }
 0x3c8   : > { %v711_v17 = vpop.xlane.xlu1 %710 }
 0x3c9   : > { %v718_v18 = vmul.f32 1.442695, %v715_v16  ;;  %v716_v19 = vsub.f32 %v695_v12, %v711_v17 }
 0x3ca   : > { %v714_v20 = vpop.xlane.xlu0 %713 }
 0x3cb   : > { %1686 = vpow2.f32 %v718_v18  ;;  %v720_v21 = vmul.f32 1.442695, %v716_v19  ;;  %v717_v22 = vsub.f32 %v1550_v8, %v714_v20  ;;  %v1667_v19 = vld [vmem:[%s1878_s12 + $0x8] ss:$0 sps:$4 sm:$0x11]  }
 0x3cc   : > { %v1668_v20 = vld [vmem:[%s1855_s25] sm:$0xff]  }
 0x3cd   : > { %1688 = vpow2.f32 %v720_v21  ;;  %v722_v23 = vmul.f32 1.442695, %v717_v22  ;;  %v1666_v21 = vld [vmem:[%s1878_s12] sm:$0xff]   ;;  %v1669_v22 = vld [vmem:[%s1855_s25 + $0x8] ss:$0 sps:$4 sm:$0x11]  }
 0x3cf   : > { %1690 = vpow2.f32 %v722_v23  ;;  %v1670_v23 = vld [vmem:[%s1860_s26] sm:$0xff]  }
 0x3d5   : > { %v1687_v24 = vpop.eup %1686 }
 0x3d6   : > { %v724_v25 = vsel %vm485_vm2, %v1687_v24, 0.0 }
 0x3d7   : > { %v1689_v26 = vpop.eup %1688  ;;  %725 = vadd.xlane.f32.xlu0 %v724_v25 }
 0x3d8   : > { %v727_v29 = vsel %vm485_vm2, %v1689_v26, 0.0 }
 0x3d9   : > { %v1691_v27 = vpop.eup %1690 }
 0x3da   : > { %v730_v28 = vsel %vm492_vm1, %v1691_v27, 0.0 }
 0x3db   : > { %731 = vadd.xlane.f32.xlu1 %v730_v28  ;;  %728 = vadd.xlane.f32.xlu0 %v727_v29 }
 0x3ec   : > { %751 = vrot.lane.b32.xlu1 %v1661_v30, %s1762_s27 }
 0x3f0   : > { %867 = vrot.lane.b32.xlu1 %v1662_v31, %s1764_s14 }
 0x3f1   : > { %749 = vrot.lane.b32.xlu0 %v1660_v32, %s1762_s27 }
 0x3f4   : > { %869 = vrot.lane.b32.xlu1 %v1663_v33, %s1764_s14 }
 0x3f5   : > { %855 = vrot.lane.b32.xlu0 %v1664_v34, %s1764_s14 }
 0x3f8   : > { %857 = vrot.lane.b32.xlu1 %v1665_v35, %s1764_s14 }
 0x464   : > { %v726_v36 = vpop.xlane.xlu0 %725 }
 0x465   : > { %1692 = vrcp.f32 %v726_v36 }
 0x468   : > { %v729_v37 = vpop.xlane.xlu0 %728  ;;  %v732_v38 = vpop.xlane.xlu1 %731 }
 0x469   : > { %1694 = vrcp.f32 %v729_v37 }
 0x46a   : > { %1696 = vrcp.f32 %v732_v38 }
 0x46c   : > { %v750_v39 = vpop.permute.xlu0 %749  ;;  %v752_v40 = vpop.permute.xlu1 %751 }
 0x46d   : > { %1552 = vmatprep.subr.bf16.mxu0 %v750_v39  ;;  %v761_v41 = vand.u32 %v752_v40, %v1885_v43 }
 0x46e   : > { %1553 = vmatpush3.bf16.msra.mxu0 %v750_v39 }
 0x46f   : > { %1554 = vmatprep.subr.bf16.mxu0 %v761_v41  ;;  %v1693_v44 = vpop.eup %1692 }
 0x470   : > { %v868_v42 = vpop.permute.xlu1 %867  ;;  %v736_v47 = vmul.f32 %v1693_v44, %v1687_v24  ;;  %v856_v52 = vpop.permute.xlu0 %855  ;;  %v1671_v24 = vld [vmem:[%s1860_s26 + $0x8] ss:$0 sps:$4 sm:$0x11]  }
 0x471   : > { %v878_v53 = vsel %vm424_vm0, %v868_v42, 0 }
 0x472   : > { %1555 = vmatpush3.bf16.msra.mxu0 %v761_v41 }
 0x473   : > { %v1695_v45 = vpop.eup %1694  ;;  %1596 = vmatprep.subr.msk.bf16.mxu0 %vm424_vm0, %v868_v42 }
 0x474   : > { %v1697_v46 = vpop.eup %1696  ;;  %v737_v48 = vmul.f32 %v1695_v45, %v1689_v26  ;;  %v870_v54 = vpop.permute.xlu1 %869 }
 0x475   : > { %v738_v49 = vmul.f32 %v1697_v46, %v1691_v27  ;;  %v881_v55 = vsel %vm424_vm0, %v870_v54, 0 }
 0x476   : > { %v739_v50 = vpack.c.bf16 %v737_v48, %v736_v47 }
 0x477   : > { %v740_v51 = vpack.c.bf16 %v738_v49, %v738_v49 }
 0x478   : > { %1556 = vmatprep.mubr.msk.bf16.mxu0 %vm485_vm2, %v739_v50  ;;  %v858_v56 = vpop.permute.xlu1 %857 }
 0x479   : > { %1557 = vmatmul.mubr.msk.bf16.vlgmr.msra.gmra.mrb[4].mxu0 %vm485_vm2, %v740_v51 }
 0x47a   : > { %1564 = vmatprep.mubr.msk.bf16.mxu0 %vm424_vm0, %v856_v52 }
 0x47b   : > { %1561 = vmatpush3.bf16.xpose.msra.mxu0 %v878_v53 }
 0x47c   : > { %1597 = vmatprep.subr.msk.bf16.mxu0 %vm424_vm0, %v870_v54 }
 0x483   : > { %1563 = vmatpush3.bf16.xpose.msra.mxu0 %v881_v55 }
 0x48a   : > { %1565 = vmatmul.mubr.msk.bf16.vlgmr.msra.gmra.mrb[8].mxu0 %vm424_vm0, %v858_v56 }
 0x54c   : > { %v1939_v57 = vpop.f32.mrb[4].mxu0 }
 0x54d   : > { %v1941_v58 = vpop.f32.mrb[5].mxu0 }
 0x54e   : > { %v1559_v59 = vpop.f32.mrb[6].mxu0 }
 0x54f   : > { %v1943_v60 = vpop.f32.mrb[7].mxu0 }
 0x55d   : > { %v1566_v61 = vpop.f32.mrb[8].mxu0 }
 0x55e   : > { %v917_v62 = vpop.f32.mrb[9].mxu0  ;;  %v937_v3 = vsel %vm492_vm1, %v1566_v61, -inf }
 0x55f   : > { %v1567_v63 = vpop.f32.mrb[10].mxu0  ;;  %v931_v0 = vsel %vm485_vm2, %v917_v62, -inf }
 0x560   : > { %932 = vmax.xlane.f32.xlu0 %v931_v0  ;;  %v920_v1 = vpop.f32.mrb[11].mxu0 }
 0x561   : > { %v934_v2 = vsel %vm485_vm2, %v920_v1, -inf }
 0x562   : > { %935 = vmax.xlane.f32.xlu1 %v934_v2 }
 0x564   : > { %938 = vmax.xlane.f32.xlu0 %v937_v3 }
 0x5ed   : > { %v933_v4 = vpop.xlane.xlu0 %932 }
 0x5ee   : > { %v940_v5 = vsub.f32 %v917_v62, %v933_v4 }
 0x5ef   : > { %v936_v6 = vpop.xlane.xlu1 %935 }
 0x5f0   : > { %v943_v7 = vmul.f32 1.442695, %v940_v5  ;;  %v941_v8 = vsub.f32 %v920_v1, %v936_v6 }
 0x5f1   : > { %v939_v9 = vpop.xlane.xlu0 %938 }
 0x5f2   : > { %1698 = vpow2.f32 %v943_v7  ;;  %v945_v10 = vmul.f32 1.442695, %v941_v8  ;;  %v942_v11 = vsub.f32 %v1566_v61, %v939_v9 }
 0x5f4   : > { %1700 = vpow2.f32 %v945_v10  ;;  %v947_v12 = vmul.f32 1.442695, %v942_v11  ;;  %v1672_v11 = vld [vmem:[%s1878_s12 + $0x8] ss:$0 sps:$4 sm:$0x11]  }
 0x5f6   : > { %1702 = vpow2.f32 %v947_v12  ;;  %v1673_v12 = vld [vmem:[%s1878_s12] sm:$0xff]  }
 0x5fc   : > { %v1699_v13 = vpop.eup %1698 }
 0x5fd   : > { %v949_v14 = vsel %vm485_vm2, %v1699_v13, 0.0 }
 0x5fe   : > { %v1701_v15 = vpop.eup %1700  ;;  %950 = vadd.xlane.f32.xlu0 %v949_v14 }
 0x5ff   : > { %v952_v18 = vsel %vm485_vm2, %v1701_v15, 0.0 }
 0x600   : > { %v1703_v16 = vpop.eup %1702 }
 0x601   : > { %v955_v17 = vsel %vm492_vm1, %v1703_v16, 0.0 }
 0x602   : > { %956 = vadd.xlane.f32.xlu1 %v955_v17  ;;  %953 = vadd.xlane.f32.xlu0 %v952_v18 }
 0x613   : > { %976 = vrot.lane.b32.xlu1 %v1667_v19, %s1764_s14 }
 0x617   : > { %1092 = vrot.lane.b32.xlu1 %v1668_v20, %s1765_s5 }
 0x618   : > { %974 = vrot.lane.b32.xlu0 %v1666_v21, %s1764_s14 }
 0x61b   : > { %1094 = vrot.lane.b32.xlu1 %v1669_v22, %s1765_s5 }
 0x61c   : > { %1080 = vrot.lane.b32.xlu0 %v1670_v23, %s1765_s5  ;;  %v835_v23 = vld [vmem:[%s1905_s4 + $0x8] sm:$0x1] }
 0x61f   : > { %1082 = vrot.lane.b32.xlu1 %v1671_v24, %s1765_s5 }
 0x68b   : > { %v951_v25 = vpop.xlane.xlu0 %950 }
 0x68c   : > { %1704 = vrcp.f32 %v951_v25 }
 0x68f   : > { %v954_v26 = vpop.xlane.xlu0 %953  ;;  %v957_v27 = vpop.xlane.xlu1 %956 }
 0x690   : > { %1706 = vrcp.f32 %v954_v26 }
 0x691   : > { %1708 = vrcp.f32 %v957_v27 }
 0x693   : > { %v975_v28 = vpop.permute.xlu0 %974  ;;  %v977_v29 = vpop.permute.xlu1 %976 }
 0x694   : > { %1568 = vmatprep.subr.bf16.mxu1 %v975_v28  ;;  %v986_v30 = vand.u32 %v977_v29, %v1885_v43 }
 0x695   : > { %1569 = vmatpush3.bf16.msra.mxu1 %v975_v28 }
 0x696   : > { %1570 = vmatprep.subr.bf16.mxu1 %v986_v30  ;;  %v1705_v32 = vpop.eup %1704 }
 0x697   : > { %v1093_v31 = vpop.permute.xlu1 %1092  ;;  %v961_v35 = vmul.f32 %v1705_v32, %v1699_v13  ;;  %v1081_v40 = vpop.permute.xlu0 %1080  ;;  %v1489_v13 = vpack.c.bf16 %v1939_v57, %v1939_v57 }
 0x698   : > { %v1103_v41 = vsel %vm424_vm0, %v1093_v31, 0 }
 0x699   : > { %1571 = vmatpush3.bf16.msra.mxu1 %v986_v30 }
 0x69a   : > { %v1707_v33 = vpop.eup %1706  ;;  %1598 = vmatprep.subr.msk.bf16.mxu1 %vm424_vm0, %v1093_v31 }
 0x69b   : > { %v1709_v34 = vpop.eup %1708  ;;  %v962_v36 = vmul.f32 %v1707_v33, %v1701_v15  ;;  %v1095_v42 = vpop.permute.xlu1 %1094  ;;  %v1487_v15 = vpack.c.bf16 %v1941_v58, %v1941_v58 }
 0x69c   : > { %v963_v37 = vmul.f32 %v1709_v34, %v1703_v16  ;;  %v1106_v44 = vsel %vm424_vm0, %v1095_v42, 0  ;;  %v1488_v16 = vpack.c.bf16 %v1943_v60, %v1943_v60 }
 0x69d   : > { %v964_v38 = vpack.c.bf16 %v962_v36, %v961_v35 }
 0x69e   : > { %v965_v39 = vpack.c.bf16 %v963_v37, %v963_v37 }
 0x69f   : > { %1572 = vmatprep.mubr.msk.bf16.mxu1 %vm485_vm2, %v964_v38  ;;  %v1083_v45 = vpop.permute.xlu1 %1082 }
 0x6a0   : > { %1573 = vmatmul.mubr.msk.bf16.vlgmr.msra.gmra.mrb[8].mxu1 %vm485_vm2, %v965_v39 }
 0x6a1   : > { %1580 = vmatprep.mubr.msk.bf16.mxu1 %vm424_vm0, %v1081_v40 }
 0x6a2   : > { %1577 = vmatpush3.bf16.xpose.msra.mxu1 %v1103_v41 }
 0x6a3   : > { %1599 = vmatprep.subr.msk.bf16.mxu1 %vm424_vm0, %v1095_v42 }
 0x6aa   : > { %1579 = vmatpush3.bf16.xpose.msra.mxu1 %v1106_v44 }
 0x6b1   : > { %1581 = vmatmul.mubr.msk.bf16.vlgmr.msra.gmra.mrb[12].mxu1 %vm424_vm0, %v1083_v45  ;;  %vm1280_vm0 = vcmask 1044224  }
 0x773   : > { %v1574_v46 = vpop.f32.mrb[8].mxu1 }
 0x774   : > { %v1022_v47 = vpop.f32.mrb[9].mxu1  ;;  %v1492_v14 = vpack.c.bf16 %v1574_v46, %v1574_v46 }
 0x775   : > { %v1575_v48 = vpop.f32.mrb[10].mxu1  ;;  %v1490_v17 = vpack.c.bf16 %v1022_v47, %v1022_v47 }
 0x776   : > { %v1025_v49 = vpop.f32.mrb[11].mxu1 }
 0x777   : > { %v1491_v57 = vpack.c.bf16 %v1025_v49, %v1025_v49 }
 0x784   : > { %v1582_v50 = vpop.f32.mrb[12].mxu1 }
 0x785   : > { %v1142_v51 = vpop.f32.mrb[13].mxu1  ;;  %v1162_v56 = vsel %vm492_vm1, %v1582_v50, -inf }
 0x786   : > { %v1583_v52 = vpop.f32.mrb[14].mxu1  ;;  %v1156_v53 = vsel %vm485_vm2, %v1142_v51, -inf }
 0x787   : > { %1157 = vmax.xlane.f32.xlu0 %v1156_v53  ;;  %v1145_v54 = vpop.f32.mrb[15].mxu1 }
 0x788   : > { %v1159_v55 = vsel %vm485_vm2, %v1145_v54, -inf }
 0x789   : > { %1160 = vmax.xlane.f32.xlu1 %v1159_v55 }
 0x78b   : > { %1163 = vmax.xlane.f32.xlu0 %v1162_v56 }
 0x814   : > { %v1158_v59 = vpop.xlane.xlu0 %1157 }
 0x815   : > { %v1165_v61 = vsub.f32 %v1142_v51, %v1158_v59 }
 0x816   : > { %v1161_v62 = vpop.xlane.xlu1 %1160 }
 0x817   : > { %v1168_v63 = vmul.f32 1.442695, %v1165_v61  ;;  %v1166_v0 = vsub.f32 %v1145_v54, %v1161_v62 }
 0x818   : > { %v1164_v1 = vpop.xlane.xlu0 %1163 }
 0x819   : > { %1710 = vpow2.f32 %v1168_v63  ;;  %v1170_v2 = vmul.f32 1.442695, %v1166_v0  ;;  %v1167_v3 = vsub.f32 %v1582_v50, %v1164_v1 }
 0x81b   : > { %1712 = vpow2.f32 %v1170_v2  ;;  %v1172_v4 = vmul.f32 1.442695, %v1167_v3 }
 0x81d   : > { %1714 = vpow2.f32 %v1172_v4 }
 0x823   : > { %v1711_v5 = vpop.eup %1710 }
 0x824   : > { %v1174_v6 = vsel %vm485_vm2, %v1711_v5, 0.0 }
 0x825   : > { %v1713_v7 = vpop.eup %1712  ;;  %1175 = vadd.xlane.f32.xlu0 %v1174_v6 }
 0x826   : > { %v1177_v10 = vsel %vm485_vm2, %v1713_v7, 0.0 }
 0x827   : > { %v1715_v8 = vpop.eup %1714 }
 0x828   : > { %v1180_v9 = vsel %vm492_vm1, %v1715_v8, 0.0 }
 0x829   : > { %1181 = vadd.xlane.f32.xlu1 %v1180_v9  ;;  %1178 = vadd.xlane.f32.xlu0 %v1177_v10 }
 0x83a   : > { %1201 = vrot.lane.b32.xlu1 %v1672_v11, %s1765_s5 }
 0x83e   : > { %825 = vrot.lane.b32.xlu1 %v1489_v13, %s1765_s5 }
 0x83f   : > { %1199 = vrot.lane.b32.xlu0 %v1673_v12, %s1765_s5 }
 0x842   : > { %1050 = vrot.lane.b32.xlu1 %v1492_v14, %s1764_s14 }
 0x843   : > { %821 = vrot.lane.b32.xlu0 %v1487_v15, %s1765_s5 }
 0x846   : > { %823 = vrot.lane.b32.xlu1 %v1488_v16, %s1765_s5 }
 0x847   : > { %1046 = vrot.lane.b32.xlu0 %v1490_v17, %s1764_s14 }
 0x84a   : > { %1048 = vrot.lane.b32.xlu1 %v1491_v57, %s1764_s14 }
 0x8b2   : > { %v1176_v18 = vpop.xlane.xlu0 %1175 }
 0x8b3   : > { %1716 = vrcp.f32 %v1176_v18 }
 0x8b6   : > { %v1179_v19 = vpop.xlane.xlu0 %1178  ;;  %v1182_v58 = vpop.xlane.xlu1 %1181 }
 0x8b7   : > { %1718 = vrcp.f32 %v1179_v19 }
 0x8b8   : > { %1720 = vrcp.f32 %v1182_v58 }
 0x8ba   : > { %v1200_v20 = vpop.permute.xlu0 %1199  ;;  %v1202_v60 = vpop.permute.xlu1 %1201 }
 0x8bb   : > { %v1211_v21 = vand.u32 %v1202_v60, %v1885_v43  ;;  %1584 = vmatprep.subr.bf16.mxu0 %v1200_v20 }
 0x8bc   : > { %1585 = vmatpush3.bf16.msra.mxu0 %v1200_v20 }
 0x8bd   : > { %1586 = vmatprep.subr.bf16.mxu0 %v1211_v21  ;;  %v1717_v25 = vpop.eup %1716 }
 0x8be   : > { %v822_v22 = vpop.permute.xlu0 %821  ;;  %v826_v24 = vpop.permute.xlu1 %825  ;;  %v1186_v30 = vmul.f32 %v1717_v25, %v1711_v5 }
 0x8bf   : > { %831 = vst.msk [vmem:[%s1905_s4] sm:$0xf] %vm830_vm9, %v822_v22  ;;  %v836_v26 = vsel %vm834_vm10, %v826_v24, %v835_v23 }
 0x8c0   : > { %837 = vst [vmem:[%s1905_s4 + $0x8] sm:$0x1] %v836_v26  ;;  %1587 = vmatpush3.bf16.msra.mxu0 %v1211_v21 }
 0x8c1   : > { %v1719_v43 = vpop.eup %1718 }
 0x8c2   : > { %v1721_v27 = vpop.eup %1720  ;;  %v1047_v28 = vpop.permute.xlu0 %1046  ;;  %v1187_v31 = vmul.f32 %v1719_v43, %v1713_v7 }
 0x8c3   : > { %v1051_v29 = vpop.permute.xlu1 %1050  ;;  %v1188_v32 = vmul.f32 %v1721_v27, %v1715_v8  ;;  %1056 = vst.msk [vmem:[%s1905_s4] sm:$0xf] %vm1055_vm11, %v1047_v28 }
 0x8c4   : > { %v1189_v33 = vpack.c.bf16 %v1187_v31, %v1186_v30 }
 0x8c5   : > { %v1190_v34 = vpack.c.bf16 %v1188_v32, %v1188_v32 }
 0x8c6   : > { %1588 = vmatprep.mubr.msk.bf16.mxu0 %vm485_vm2, %v1189_v33 }
 0x8c7   : > { %v824_v35 = vpop.permute.xlu1 %823  ;;  %v1060_v36 = vld [vmem:[%s1905_s4 + $0x8] sm:$0x1]  ;;  %1589 = vmatmul.mubr.msk.bf16.vlgmr.msra.gmra.mrb[12].mxu0 %vm485_vm2, %v1190_v34 }
 0x8c8   : > { %832 = vst.msk [vmem:[%s1905_s4 + $0x4] sm:$0xf] %vm830_vm9, %v824_v35  ;;  %v1061_v37 = vsel %vm1059_vm13, %v1051_v29, %v1060_v36 }
 0x8c9   : > { %1062 = vst [vmem:[%s1905_s4 + $0x8] sm:$0x1] %v1061_v37 }
 0x8cb   : > { %v1049_v38 = vpop.permute.xlu1 %1048 }
 0x8cc   : > { %1057 = vst.msk [vmem:[%s1905_s4 + $0x4] sm:$0xf] %vm1055_vm11, %v1049_v38 }
 0x8d0   : > { %v1285_v48 = vld [vmem:[%s1905_s4 + $0x8] sm:$0x1] }
 0x99a   : > { %v1590_v39 = vpop.f32.mrb[12].mxu0 }
 0x99b   : > { %v1495_v40 = vpack.c.bf16 %v1590_v39, %v1590_v39  ;;  %v1247_v41 = vpop.f32.mrb[13].mxu0 }
 0x99c   : > { %v1493_v42 = vpack.c.bf16 %v1247_v41, %v1247_v41  ;;  %v1591_v44 = vpop.f32.mrb[14].mxu0 }
 0x99d   : > { %1275 = vrot.lane.b32.xlu0 %v1495_v40, %s1762_s27  ;;  %v1250_v45 = vpop.f32.mrb[15].mxu0 }
 0x99e   : > { %v1494_v46 = vpack.c.bf16 %v1250_v45, %v1250_v45  ;;  %1271 = vrot.lane.b32.xlu1 %v1493_v42, %s1762_s27 }
 0x9a1   : > { %1273 = vrot.lane.b32.xlu0 %v1494_v46, %s1762_s27 }
 0xa0f   : > { %v1276_v47 = vpop.permute.xlu0 %1275 }
 0xa10   : > { %v1286_v49 = vsel %vm1284_vm15, %v1276_v47, %v1285_v48  ;;  %v1272_v50 = vpop.permute.xlu1 %1271 }
 0xa11   : > { %1287 = vst [vmem:[%s1905_s4 + $0x8] sm:$0x1] %v1286_v49  ;;  %1281 = vst.msk [vmem:[%s1905_s4] sm:$0xf] %vm1280_vm0, %v1272_v50 }
 0xa13   : > { %v1274_v51 = vpop.permute.xlu0 %1273 }
 0xa14   : > { %1282 = vst.msk [vmem:[%s1905_s4 + $0x4] sm:$0xf] %vm1280_vm0, %v1274_v51 }
 0xa15 PF: > { %s13_s16 = sadd.s32 1, %s1760_s16   ;;  %s2039_s12 = smov %s1748_s13 }
 0xa16   : > { %p10_p10 = scmp.ge.s32.totalorder %s13_s16, 4   ;;  %s2040_s13 = smov %s1825_s21 }
 0xa17   : > { %s2041_s14 = smov %s1756_s15  ;;  %s2042_s15 = smov %s2044_s17 }
 0xa18   :  { %12 = sbr.rel (!%p10_p10) target bundleno = 3 (0x3), region = 206 }

// kernel: clip_classifier_forward.18
= control target key start
LH: loop header
LB: loop body
LE: loop exit
PB: predicated region body
PF: predicated region fallthrough
CT: control target
= control target key end

     0   :  { %v358_v0 = vmov 0.0   ;;  %vm359_vm0 = vmmov 0   ;;  %s442_s1 = inlined_call_operand.vmem [shape: bf16[128,128], index: 1, kind: input, shape index: {}]   ;;  %s443_s0 = inlined_call_operand.vmem [shape: bf16[40,128], index: 0, kind: input, shape index: {}]   ;;  %s444_s3 = inlined_call_operand.vmem [shape: bf16[40,128], index: 3, kind: input, shape index: {}]   ;;  %s445_s2 = inlined_call_operand.vmem [shape: f32[1,128], index: 2, kind: input, shape index: {}]   ;;  %s446_s4 = inlined_call_operand.vmem [shape: bf16[40,128], index: 4, kind: output, shape index: {}]  }
   0x1   :  { %329 = vmatprep.subr.bf16.mxu1 %v358_v0  ;;  %v347_v1 = vld [vmem:[%s442_s1] sm:$0xff]   ;;  %301 = vmatprep.subr.bf16.mxu0 %v358_v0  ;;  %v348_v2 = vld [vmem:[%s442_s1 + $0x8] sm:$0xff]   ;;  %v349_v3 = vld [vmem:[%s442_s1 + $0x10] sm:$0xff]  }
   0x2   :  { %321 = vmatprep.mubr.msk.bf16.mxu1 %vm359_vm0, %v358_v0  ;;  %317 = vmatprep.mubr.msk.bf16.mxu0 %vm359_vm0, %v358_v0  ;;  %v350_v4 = vld [vmem:[%s442_s1 + $0x18] sm:$0xff]   ;;  %v351_v5 = vld [vmem:[%s442_s1 + $0x20] sm:$0xff]   ;;  %v352_v6 = vld [vmem:[%s442_s1 + $0x28] sm:$0xff]  }
   0x3   :  { %337 = vmatpush3.bf16.msra.mxu1 %v347_v1  ;;  %302 = vmatpush3.bf16.msra.mxu0 %v347_v1  ;;  %v353_v7 = vld [vmem:[%s442_s1 + $0x30] sm:$0xff]   ;;  %v354_v8 = vld [vmem:[%s442_s1 + $0x38] sm:$0xff]   ;;  %v355_v9 = vld [vmem:[%s443_s0 + $0x8] sm:$0xff]  }
   0x4   :  { %330 = vmatprep.subr.bf16.mxu1 %v358_v0  ;;  %303 = vmatprep.subr.bf16.mxu0 %v358_v0  ;;  %v356_v10 = vld [vmem:[%s443_s0] sm:$0xff]   ;;  %v357_v11 = vld [vmem:[%s443_s0 + $0x10] ss:$0 sps:$4 sm:$0xff]   ;;  %v288_v13 = vld [vmem:[%s444_s3 + $0x8] sm:$0xff]  }
   0x5   :  { %v271_v12 = vld [vmem:[%s444_s3] sm:$0xff]   ;;  %v276_v17 = vunpack.c.l.bf16 %v288_v13  ;;  %v277_v21 = vunpack.c.h.bf16 %v288_v13  ;;  %v207_v32 = vld [vmem:[%s444_s3 + $0x10] sm:$0xf] }
   0x6   :  { %v259_v14 = vld [vmem:[%s445_s2] ss:$0 sm:$0xff]  ;;  %v272_v15 = vunpack.c.l.bf16 %v271_v12  ;;  %v273_v24 = vunpack.c.h.bf16 %v271_v12  ;;  %v212_v38 = vunpack.c.l.bf16 %v207_v32 }
   0x7   :  { %338 = vmatpush3.bf16.msra.mxu1 %v348_v2  ;;  %304 = vmatpush3.bf16.msra.mxu0 %v348_v2 }
   0x8   :  { %331 = vmatprep.subr.bf16.mxu1 %v358_v0  ;;  %305 = vmatprep.subr.bf16.mxu0 %v358_v0 }
   0xb   :  { %339 = vmatpush3.bf16.msra.mxu1 %v349_v3  ;;  %306 = vmatpush3.bf16.msra.mxu0 %v349_v3 }
   0xc   :  { %332 = vmatprep.subr.bf16.mxu1 %v358_v0  ;;  %307 = vmatprep.subr.bf16.mxu0 %v358_v0 }
   0xf   :  { %340 = vmatpush3.bf16.msra.mxu1 %v350_v4  ;;  %308 = vmatpush3.bf16.msra.mxu0 %v350_v4 }
  0x10   :  { %333 = vmatprep.subr.bf16.mxu1 %v358_v0  ;;  %309 = vmatprep.subr.bf16.mxu0 %v358_v0 }
  0x13   :  { %341 = vmatpush3.bf16.msra.mxu1 %v351_v5  ;;  %310 = vmatpush3.bf16.msra.mxu0 %v351_v5 }
  0x14   :  { %334 = vmatprep.subr.bf16.mxu1 %v358_v0  ;;  %311 = vmatprep.subr.bf16.mxu0 %v358_v0 }
  0x17   :  { %342 = vmatpush3.bf16.msra.mxu1 %v352_v6  ;;  %312 = vmatpush3.bf16.msra.mxu0 %v352_v6 }
  0x18   :  { %335 = vmatprep.subr.bf16.mxu1 %v358_v0  ;;  %313 = vmatprep.subr.bf16.mxu0 %v358_v0 }
  0x1b   :  { %343 = vmatpush3.bf16.msra.mxu1 %v353_v7  ;;  %314 = vmatpush3.bf16.msra.mxu0 %v353_v7 }
  0x1c   :  { %336 = vmatprep.subr.bf16.mxu1 %v358_v0  ;;  %315 = vmatprep.subr.bf16.mxu0 %v358_v0 }
  0x1f   :  { %344 = vmatpush3.bf16.msra.mxu1 %v354_v8  ;;  %316 = vmatpush3.bf16.msra.mxu0 %v354_v8 }
  0x22   :  { %322 = vmatmul.mubr.bf16.vlgmr.msra.gmra.mrb[0].mxu1 %v355_v9  ;;  %318 = vmatmul.mubr.bf16.vlgmr.msra.gmra.mrb[0].mxu0 %v356_v10 }
  0x23   :  { %325 = vmatprep.mubr.msk.bf16.mxu1 %vm359_vm0, %v358_v0 }
  0x2a   :  { %326 = vmatmul.mubr.bf16.gmra.mrb[4].mxu1 %v357_v11 }
  0xf5   :  { %v159_v16 = vpop.f32.mrb[0].mxu1  ;;  %v151_v18 = vpop.f32.mrb[0].mxu0 }
  0xf6   :  { %v200_v19 = vadd.f32 %v259_v14, %v159_v16  ;;  %v323_v20 = vpop.f32.mrb[1].mxu1  ;;  %v198_v22 = vadd.f32 %v259_v14, %v151_v18  ;;  %v319_v23 = vpop.f32.mrb[1].mxu0 }
  0xf7   :  { %v162_v25 = vpop.f32.mrb[2].mxu1  ;;  %v154_v26 = vpop.f32.mrb[2].mxu0 }
  0xf8   :  { %v201_v27 = vadd.f32 %v259_v14, %v162_v25  ;;  %v213_v28 = vadd.f32 %v272_v15, %v198_v22  ;;  %v324_v29 = vpop.f32.mrb[3].mxu1  ;;  %v199_v30 = vadd.f32 %v259_v14, %v154_v26  ;;  %v320_v31 = vpop.f32.mrb[3].mxu0  ;;  %v215_v33 = vadd.f32 %v276_v17, %v200_v19 }
  0xfa   :  { %v216_v34 = vadd.f32 %v277_v21, %v201_v27  ;;  %v214_v35 = vadd.f32 %v273_v24, %v199_v30 }
  0xfc   :  { %v286_v36 = vpack.c.bf16 %v216_v34, %v215_v33  ;;  %v281_v37 = vpack.c.bf16 %v214_v35, %v213_v28 }
  0xfd   :  { %v167_v39 = vpop.f32.mrb[4].mxu1 }
  0xfe   :  { %289 = vst [vmem:[%s446_s4 + $0x8] sm:$0xff] %v286_v36   ;;  %282 = vst [vmem:[%s446_s4] sm:$0xff] %v281_v37   ;;  %v202_v40 = vadd.f32 %v259_v14, %v167_v39  ;;  %v327_v41 = vpop.f32.mrb[5].mxu1 }
  0xff   :  { %v170_v42 = vpop.f32.mrb[6].mxu1 }
 0x100   :  { %v217_v43 = vadd.f32 %v212_v38, %v202_v40  ;;  %v328_v44 = vpop.f32.mrb[7].mxu1 }
 0x102   :  { %v269_v45 = vpack.c.bf16 %v217_v43, %v217_v43 }
 0x104   :  { %243 = vst [vmem:[%s446_s4 + $0x10] sm:$0xf] %v269_v45 }

// kernel: clip_classifier_forward.20
= control target key start
LH: loop header
LB: loop body
LE: loop exit
PB: predicated region body
PF: predicated region fallthrough
CT: control target
= control target key end

     0   :  { %s902_s1 = inlined_call_operand.vmem [shape: bf16[512,128], index: 1, kind: input, shape index: {}]   ;;  %s903_s0 = inlined_call_operand.vmem [shape: bf16[40,512], index: 0, kind: input, shape index: {}]   ;;  %s904_s2 = inlined_call_operand.vmem [shape: f32[1,128], index: 2, kind: input, shape index: {}]   ;;  %s905_s3 = inlined_call_operand.vmem [shape: bf16[40,128], index: 3, kind: input, shape index: {}]   ;;  %s906_s4 = inlined_call_operand.vmem [shape: bf16[40,128], index: 4, kind: output, shape index: {}]  }
   0x1   :  { %v682_v0 = vld [vmem:[%s902_s1 + $0x40] sm:$0xff]   ;;  %v686_v4 = vld [vmem:[%s902_s1 + $0x48] sm:$0xff]   ;;  %v690_v8 = vld [vmem:[%s902_s1 + $0x50] sm:$0xff]  }
   0x2   :  { %v683_v1 = vld [vmem:[%s902_s1 + $0xc0] sm:$0xff]   ;;  %614 = vmatprep.subr.bf16.mxu0 %v682_v0  ;;  %v687_v5 = vld [vmem:[%s902_s1 + $0xc8] sm:$0xff]   ;;  %v691_v9 = vld [vmem:[%s902_s1 + $0xd0] sm:$0xff]  }
   0x3   :  { %v684_v2 = vld [vmem:[%s902_s1] sm:$0xff]   ;;  %648 = vmatprep.subr.bf16.mxu1 %v683_v1  ;;  %v688_v6 = vld [vmem:[%s902_s1 + $0x8] sm:$0xff]   ;;  %v692_v10 = vld [vmem:[%s902_s1 + $0x10] sm:$0xff]  }
   0x4   :  { %v685_v3 = vld [vmem:[%s902_s1 + $0x80] sm:$0xff]   ;;  %615 = vmatpush3.bf16.msra.mxu0 %v684_v2  ;;  %v689_v7 = vld [vmem:[%s902_s1 + $0x88] sm:$0xff]   ;;  %v693_v11 = vld [vmem:[%s902_s1 + $0x90] sm:$0xff]  }
   0x5   :  { %649 = vmatpush3.bf16.msra.mxu1 %v685_v3  ;;  %616 = vmatprep.subr.bf16.mxu0 %v686_v4  ;;  %v694_v12 = vld [vmem:[%s902_s1 + $0x58] sm:$0xff]   ;;  %v698_v16 = vld [vmem:[%s902_s1 + $0x60] sm:$0xff]   ;;  %v702_v20 = vld [vmem:[%s902_s1 + $0x68] sm:$0xff]  }
   0x6   :  { %650 = vmatprep.subr.bf16.mxu1 %v687_v5  ;;  %v695_v13 = vld [vmem:[%s902_s1 + $0xd8] sm:$0xff]   ;;  %v699_v17 = vld [vmem:[%s902_s1 + $0xe0] sm:$0xff]   ;;  %v703_v21 = vld [vmem:[%s902_s1 + $0xe8] sm:$0xff]  }
   0x7   :  { %v696_v14 = vld [vmem:[%s902_s1 + $0x18] sm:$0xff]   ;;  %v700_v18 = vld [vmem:[%s902_s1 + $0x20] sm:$0xff]   ;;  %v704_v22 = vld [vmem:[%s902_s1 + $0x28] sm:$0xff]  }
   0x8   :  { %617 = vmatpush3.bf16.msra.mxu0 %v688_v6  ;;  %v697_v15 = vld [vmem:[%s902_s1 + $0x98] sm:$0xff]   ;;  %v701_v19 = vld [vmem:[%s902_s1 + $0xa0] sm:$0xff]   ;;  %v705_v23 = vld [vmem:[%s902_s1 + $0xa8] sm:$0xff]  }
   0x9   :  { %651 = vmatpush3.bf16.msra.mxu1 %v689_v7  ;;  %618 = vmatprep.subr.bf16.mxu0 %v690_v8  ;;  %v706_v24 = vld [vmem:[%s902_s1 + $0x70] sm:$0xff]   ;;  %v710_v28 = vld [vmem:[%s902_s1 + $0x78] sm:$0xff]   ;;  %v35_v38 = vld [vmem:[%s903_s0 + $0x40] sm:$0xff] }
   0xa   :  { %652 = vmatprep.subr.bf16.mxu1 %v691_v9  ;;  %v707_v25 = vld [vmem:[%s902_s1 + $0xf0] sm:$0xff]   ;;  %v711_v29 = vld [vmem:[%s902_s1 + $0xf8] sm:$0xff]   ;;  %v36_v39 = vld [vmem:[%s903_s0 + $0x48] sm:$0xff]  ;;  %v548_v42 = vcombine.high %v35_v38, %v35_v38  ;;  %v547_v44 = vcombine.low %v35_v38, %v35_v38 }
   0xb   :  { %v708_v26 = vld [vmem:[%s902_s1 + $0x30] sm:$0xff]   ;;  %v712_v30 = vld [vmem:[%s902_s1 + $0x38] sm:$0xff]   ;;  %v550_v43 = vcombine.high %v36_v39, %v36_v39  ;;  %v549_v45 = vcombine.low %v36_v39, %v36_v39  ;;  %v583_v55 = vld [vmem:[%s904_s2] ss:$0 sm:$0xff] }
   0xc   :  { %619 = vmatpush3.bf16.msra.mxu0 %v692_v10  ;;  %v709_v27 = vld [vmem:[%s902_s1 + $0xb0] sm:$0xff]   ;;  %v713_v31 = vld [vmem:[%s902_s1 + $0xb8] sm:$0xff]   ;;  %v595_v56 = vld [vmem:[%s905_s3] sm:$0xff]  }
   0xd   :  { %653 = vmatpush3.bf16.msra.mxu1 %v693_v11  ;;  %620 = vmatprep.subr.bf16.mxu0 %v694_v12  ;;  %v714_v32 = vld [vmem:[%s903_s0] ss:$16 sps:$4 sm:$0xff]   ;;  %v716_v33 = vld [vmem:[%s903_s0 + $0x4] ss:$16 sps:$4 sm:$0xff]   ;;  %v717_v34 = vld [vmem:[%s903_s0 + $0x8] ss:$16 sps:$4 sm:$0xff]   ;;  %v596_v62 = vunpack.c.l.bf16 %v595_v56  ;;  %v597_v0 = vunpack.c.h.bf16 %v595_v56 }
   0xe   :  { %654 = vmatprep.subr.bf16.mxu1 %v695_v13  ;;  %v719_v35 = vld [vmem:[%s903_s0 + $0xc] ss:$16 sps:$4 sm:$0xff]   ;;  %384 = vmatprep.mubr.bf16.mxu0 %v716_v33  ;;  %v720_v36 = vld [vmem:[%s903_s0 + $0x24] ss:$16 sps:$4 sm:$0xff]   ;;  %v724_v40 = vld [vmem:[%s903_s0 + $0x20] ss:$16 sps:$4 sm:$0xff]  }
   0xf   :  { %440 = vmatprep.mubr.bf16.mxu1 %v719_v35  ;;  %v722_v37 = vld [vmem:[%s903_s0 + $0x2c] ss:$16 sps:$4 sm:$0xff]   ;;  %v725_v41 = vld [vmem:[%s903_s0 + $0x28] ss:$16 sps:$4 sm:$0xff]  }
  0x10   :  { %621 = vmatpush3.bf16.msra.mxu0 %v696_v14  ;;  %v612_v13 = vld [vmem:[%s905_s3 + $0x8] sm:$0xff]  }
  0x11   :  { %655 = vmatpush3.bf16.msra.mxu1 %v697_v15  ;;  %622 = vmatprep.subr.bf16.mxu0 %v698_v16 }
  0x12   :  { %656 = vmatprep.subr.bf16.mxu1 %v699_v17 }
  0x14   :  { %623 = vmatpush3.bf16.msra.mxu0 %v700_v18 }
  0x15   :  { %657 = vmatpush3.bf16.msra.mxu1 %v701_v19  ;;  %624 = vmatprep.subr.bf16.mxu0 %v702_v20  ;;  %v600_v20 = vunpack.c.l.bf16 %v612_v13 }
  0x16   :  { %658 = vmatprep.subr.bf16.mxu1 %v703_v21 }
  0x18   :  { %625 = vmatpush3.bf16.msra.mxu0 %v704_v22  ;;  %v601_v22 = vunpack.c.h.bf16 %v612_v13 }
  0x19   :  { %659 = vmatpush3.bf16.msra.mxu1 %v705_v23  ;;  %626 = vmatprep.subr.bf16.mxu0 %v706_v24 }
  0x1a   :  { %660 = vmatprep.subr.bf16.mxu1 %v707_v25 }
  0x1c   :  { %627 = vmatpush3.bf16.msra.mxu0 %v708_v26 }
  0x1d   :  { %661 = vmatpush3.bf16.msra.mxu1 %v709_v27  ;;  %628 = vmatprep.subr.bf16.mxu0 %v710_v28 }
  0x1e   :  { %662 = vmatprep.subr.bf16.mxu1 %v711_v29  ;;  %v498_v29 = vld [vmem:[%s905_s3 + $0x10] sm:$0xf] }
  0x1f   :  { %v503_v39 = vunpack.c.l.bf16 %v498_v29 }
  0x20   :  { %629 = vmatpush3.bf16.msra.mxu0 %v712_v30 }
  0x21   :  { %663 = vmatpush3.bf16.msra.mxu1 %v713_v31 }
  0x23   :  { %385 = vmatmul.mubr.bf16.vlgmr.msra.gmra.mrb[0].mxu0 %v714_v32 }
  0x24   :  { %441 = vmatmul.mubr.bf16.vlgmr.msra.gmra.mrb[0].mxu1 %v717_v34  ;;  %392 = vmatprep.mubr.bf16.mxu0 %v720_v36 }
  0x25   :  { %448 = vmatprep.mubr.bf16.mxu1 %v722_v37 }
  0x2b   :  { %393 = vmatmul.mubr.bf16.gmra.mrb[4].mxu0 %v724_v40 }
  0x2c   :  { %449 = vmatmul.mubr.bf16.gmra.mrb[4].mxu1 %v725_v41  ;;  %400 = vmatprep.mubr.bf16.mxu0 %v548_v42 }
  0x2d   :  { %456 = vmatprep.mubr.bf16.mxu1 %v550_v43 }
  0x33   :  { %401 = vmatmul.mubr.bf16.gmra.mrb[8].mxu0 %v547_v44 }
  0x34   :  { %457 = vmatmul.mubr.bf16.gmra.mrb[8].mxu1 %v549_v45 }
  0xf6   :  { %v630_v46 = vpop.f32.mrb[0].mxu0 }
  0xf7   :  { %v664_v47 = vpop.f32.mrb[0].mxu1  ;;  %v631_v48 = vpop.f32.mrb[1].mxu0 }
  0xf8   :  { %v632_v49 = vadd.f32 %v631_v48, %v630_v46  ;;  %v665_v50 = vpop.f32.mrb[1].mxu1  ;;  %v633_v51 = vpop.f32.mrb[2].mxu0 }
  0xf9   :  { %v666_v52 = vadd.f32 %v665_v50, %v664_v47  ;;  %v667_v53 = vpop.f32.mrb[2].mxu1  ;;  %v634_v54 = vpop.f32.mrb[3].mxu0 }
  0xfa   :  { %v635_v57 = vadd.f32 %v634_v54, %v633_v51  ;;  %v668_v58 = vpop.f32.mrb[3].mxu1 }
  0xfb   :  { %v443_v59 = vadd.f32 %v666_v52, %v632_v49  ;;  %v669_v60 = vadd.f32 %v668_v58, %v667_v53 }
  0xfd   :  { %v489_v61 = vadd.f32 %v583_v55, %v443_v59  ;;  %v446_v63 = vadd.f32 %v669_v60, %v635_v57 }
  0xfe   :  { %v636_v1 = vpop.f32.mrb[4].mxu0 }
  0xff   :  { %v490_v2 = vadd.f32 %v583_v55, %v446_v63  ;;  %v670_v3 = vpop.f32.mrb[4].mxu1  ;;  %v637_v4 = vpop.f32.mrb[5].mxu0  ;;  %v504_v8 = vadd.f32 %v596_v62, %v489_v61 }
 0x100   :  { %v638_v5 = vadd.f32 %v637_v4, %v636_v1  ;;  %v671_v6 = vpop.f32.mrb[5].mxu1  ;;  %v639_v7 = vpop.f32.mrb[6].mxu0 }
 0x101   :  { %v505_v9 = vadd.f32 %v597_v0, %v490_v2  ;;  %v672_v10 = vadd.f32 %v671_v6, %v670_v3  ;;  %v673_v11 = vpop.f32.mrb[6].mxu1  ;;  %v640_v12 = vpop.f32.mrb[7].mxu0 }
 0x102   :  { %v641_v14 = vadd.f32 %v640_v12, %v639_v7  ;;  %v674_v15 = vpop.f32.mrb[7].mxu1 }
 0x103   :  { %v605_v16 = vpack.c.bf16 %v505_v9, %v504_v8  ;;  %v451_v17 = vadd.f32 %v672_v10, %v638_v5  ;;  %v675_v18 = vadd.f32 %v674_v15, %v673_v11 }
 0x105   :  { %606 = vst [vmem:[%s906_s4] sm:$0xff] %v605_v16   ;;  %v491_v19 = vadd.f32 %v583_v55, %v451_v17  ;;  %v454_v21 = vadd.f32 %v675_v18, %v641_v14 }
 0x106   :  { %v642_v23 = vpop.f32.mrb[8].mxu0 }
 0x107   :  { %v492_v24 = vadd.f32 %v583_v55, %v454_v21  ;;  %v676_v25 = vpop.f32.mrb[8].mxu1  ;;  %v643_v26 = vpop.f32.mrb[9].mxu0  ;;  %v506_v31 = vadd.f32 %v600_v20, %v491_v19 }
 0x108   :  { %v644_v27 = vadd.f32 %v643_v26, %v642_v23  ;;  %v677_v28 = vpop.f32.mrb[9].mxu1  ;;  %v645_v30 = vpop.f32.mrb[10].mxu0 }
 0x109   :  { %v507_v32 = vadd.f32 %v601_v22, %v492_v24  ;;  %v678_v33 = vadd.f32 %v677_v28, %v676_v25  ;;  %v679_v34 = vpop.f32.mrb[10].mxu1  ;;  %v646_v35 = vpop.f32.mrb[11].mxu0 }
 0x10a   :  { %v680_v36 = vpop.f32.mrb[11].mxu1 }
 0x10b   :  { %v610_v37 = vpack.c.bf16 %v507_v32, %v506_v31  ;;  %v459_v38 = vadd.f32 %v678_v33, %v644_v27 }
 0x10d   :  { %613 = vst [vmem:[%s906_s4 + $0x8] sm:$0xff] %v610_v37   ;;  %v493_v40 = vadd.f32 %v583_v55, %v459_v38 }
 0x10f   :  { %v508_v41 = vadd.f32 %v503_v39, %v493_v40 }
 0x111   :  { %v593_v42 = vpack.c.bf16 %v508_v41, %v508_v41 }
 0x113   :  { %534 = vst [vmem:[%s906_s4 + $0x10] sm:$0xf] %v593_v42 }

// kernel: clip_classifier_forward.19
= control target key start
LH: loop header
LB: loop body
LE: loop exit
PB: predicated region body
PF: predicated region fallthrough
CT: control target
= control target key end

     0   :  { %v1112_v60 = vmov 0   ;;  %s1426_s0 = inlined_call_operand.vmem [shape: bf16[40,128], index: 0, kind: input, shape index: {}]   ;;  %s1427_s1 = inlined_call_operand.vmem [shape: bf16[128,512], index: 1, kind: input, shape index: {}]   ;;  %s1428_s3 = inlined_call_operand.vmem [shape: f32[1,128], index: 3, kind: input, shape index: {}]   ;;  %s1429_s4 = inlined_call_operand.vmem [shape: f32[1,128], index: 4, kind: input, shape index: {}]   ;;  %s1430_s2 = inlined_call_operand.vmem [shape: f32[1,512], index: 2, kind: input, shape index: {}]   ;;  %s1431_s5 = inlined_call_operand.vmem [shape: bf16[40,512], index: 5, kind: output, shape index: {}]  }
   0x1   :  { %v951_v0 = vld [vmem:[%s1426_s0] sm:$0xff]   ;;  %v968_v1 = vld [vmem:[%s1426_s0 + $0x8] sm:$0xff]   ;;  %v53_v6 = vld [vmem:[%s1426_s0 + $0x10] sm:$0xf]  ;;  %430 = vmatprep.mubr.bf16.mxu0 %v1112_v60  ;;  %491 = vmatprep.mubr.bf16.mxu1 %v1112_v60 }
   0x2   :  { %v952_v2 = vunpack.c.l.bf16 %v951_v0  ;;  %v956_v3 = vunpack.c.l.bf16 %v968_v1  ;;  %v953_v4 = vunpack.c.h.bf16 %v951_v0  ;;  %v957_v5 = vunpack.c.h.bf16 %v968_v1  ;;  %v971_v28 = vld [vmem:[%s1427_s1 + $0x4] ss:$16 sps:$4 sm:$0xff]   ;;  %v973_v29 = vld [vmem:[%s1427_s1 + $0xc] ss:$16 sps:$4 sm:$0xff]   ;;  %v975_v30 = vld [vmem:[%s1427_s1] ss:$16 sps:$4 sm:$0xff]  }
   0x3   :  { %v58_v7 = vunpack.c.l.bf16 %v53_v6  ;;  %398 = vmatprep.subr.bf16.mxu0 %v971_v28  ;;  %v976_v31 = vld [vmem:[%s1427_s1 + $0x8] ss:$16 sps:$4 sm:$0xff]   ;;  %459 = vmatprep.subr.bf16.mxu1 %v973_v29  ;;  %v977_v32 = vld [vmem:[%s1427_s1 + $0x24] ss:$16 sps:$4 sm:$0xff]   ;;  %v979_v33 = vld [vmem:[%s1427_s1 + $0x2c] ss:$16 sps:$4 sm:$0xff]  }
   0x4   :  { %59 = vadd.xlane.f32.xlu0 %v952_v2  ;;  %63 = vadd.xlane.f32.xlu1 %v956_v3  ;;  %v981_v34 = vld [vmem:[%s1427_s1 + $0x20] ss:$16 sps:$4 sm:$0xff]   ;;  %v982_v35 = vld [vmem:[%s1427_s1 + $0x28] ss:$16 sps:$4 sm:$0xff]   ;;  %v983_v36 = vld [vmem:[%s1427_s1 + $0x44] ss:$16 sps:$4 sm:$0xff]  }
   0x5   :  { %399 = vmatpush1.bf16.msra.mxu0 %v975_v30  ;;  %460 = vmatpush1.bf16.msra.mxu1 %v976_v31  ;;  %v985_v37 = vld [vmem:[%s1427_s1 + $0x4c] ss:$16 sps:$4 sm:$0xff]   ;;  %v987_v38 = vld [vmem:[%s1427_s1 + $0x40] ss:$16 sps:$4 sm:$0xff]   ;;  %v988_v39 = vld [vmem:[%s1427_s1 + $0x48] ss:$16 sps:$4 sm:$0xff]  }
   0x6   :  { %400 = vmatprep.subr.bf16.mxu0 %v977_v32  ;;  %461 = vmatprep.subr.bf16.mxu1 %v979_v33  ;;  %v989_v40 = vld [vmem:[%s1427_s1 + $0x64] ss:$16 sps:$4 sm:$0xff]   ;;  %v991_v41 = vld [vmem:[%s1427_s1 + $0x6c] ss:$16 sps:$4 sm:$0xff]   ;;  %v993_v42 = vld [vmem:[%s1427_s1 + $0x60] ss:$16 sps:$4 sm:$0xff]  }
   0x7   :  { %v994_v43 = vld [vmem:[%s1427_s1 + $0x68] ss:$16 sps:$4 sm:$0xff]   ;;  %v995_v44 = vld [vmem:[%s1427_s1 + $0x84] ss:$16 sps:$4 sm:$0xff]   ;;  %v997_v45 = vld [vmem:[%s1427_s1 + $0x8c] ss:$16 sps:$4 sm:$0xff]  }
   0x8   :  { %61 = vadd.xlane.f32.xlu0 %v953_v4  ;;  %65 = vadd.xlane.f32.xlu1 %v957_v5  ;;  %v999_v46 = vld [vmem:[%s1427_s1 + $0x80] ss:$16 sps:$4 sm:$0xff]   ;;  %v1000_v47 = vld [vmem:[%s1427_s1 + $0x88] ss:$16 sps:$4 sm:$0xff]   ;;  %v1001_v48 = vld [vmem:[%s1427_s1 + $0xa4] ss:$16 sps:$4 sm:$0xff]  }
   0x9   :  { %401 = vmatpush1.bf16.msra.mxu0 %v981_v34  ;;  %462 = vmatpush1.bf16.msra.mxu1 %v982_v35  ;;  %v1003_v49 = vld [vmem:[%s1427_s1 + $0xac] ss:$16 sps:$4 sm:$0xff]   ;;  %v1005_v50 = vld [vmem:[%s1427_s1 + $0xa0] ss:$16 sps:$4 sm:$0xff]   ;;  %v1006_v51 = vld [vmem:[%s1427_s1 + $0xa8] ss:$16 sps:$4 sm:$0xff]  }
   0xa   :  { %402 = vmatprep.subr.bf16.mxu0 %v983_v36  ;;  %463 = vmatprep.subr.bf16.mxu1 %v985_v37  ;;  %v1007_v52 = vld [vmem:[%s1427_s1 + $0xc4] ss:$16 sps:$4 sm:$0xff]   ;;  %v1009_v53 = vld [vmem:[%s1427_s1 + $0xcc] ss:$16 sps:$4 sm:$0xff]   ;;  %v1011_v54 = vld [vmem:[%s1427_s1 + $0xc0] ss:$16 sps:$4 sm:$0xff]  }
   0xb   :  { %v1012_v55 = vld [vmem:[%s1427_s1 + $0xc8] ss:$16 sps:$4 sm:$0xff]   ;;  %v1013_v56 = vld [vmem:[%s1427_s1 + $0xe4] ss:$16 sps:$4 sm:$0xff]   ;;  %v1015_v57 = vld [vmem:[%s1427_s1 + $0xec] ss:$16 sps:$4 sm:$0xff]  }
   0xc   :  { %67 = vadd.xlane.f32.xlu0 %v58_v7  ;;  %v1017_v58 = vld [vmem:[%s1427_s1 + $0xe0] ss:$16 sps:$4 sm:$0xff]   ;;  %v1018_v59 = vld [vmem:[%s1427_s1 + $0xe8] ss:$16 sps:$4 sm:$0xff]  }
   0xd   :  { %403 = vmatpush1.bf16.msra.mxu0 %v987_v38  ;;  %464 = vmatpush1.bf16.msra.mxu1 %v988_v39 }
   0xe   :  { %404 = vmatprep.subr.bf16.mxu0 %v989_v40  ;;  %465 = vmatprep.subr.bf16.mxu1 %v991_v41  ;;  %v585_v40 = vlaneseq }
  0x10   :  { %v586_v41 = vshrl.u32 %v585_v40, 7 }
  0x11   :  { %405 = vmatpush1.bf16.msra.mxu0 %v993_v42  ;;  %466 = vmatpush1.bf16.msra.mxu1 %v994_v43 }
  0x12   :  { %406 = vmatprep.subr.bf16.mxu0 %v995_v44  ;;  %467 = vmatprep.subr.bf16.mxu1 %v997_v45  ;;  %v587_v42 = vsub.s32 0, %v586_v41  ;;  %v595_v43 = vsub.s32 2, %v586_v41  ;;  %v583_v44 = vld [vmem:[%s1430_s2] sm:$0xf]  ;;  %v591_v45 = vsub.s32 1, %v586_v41 }
  0x15   :  { %407 = vmatpush1.bf16.msra.mxu0 %v999_v46  ;;  %468 = vmatpush1.bf16.msra.mxu1 %v1000_v47  ;;  %v599_v46 = vsub.s32 3, %v586_v41  ;;  %v1288_v47 = vrot.slane %v583_v44, %v587_v42 }
  0x16   :  { %408 = vmatprep.subr.bf16.mxu0 %v1001_v48  ;;  %469 = vmatprep.subr.bf16.mxu1 %v1003_v49  ;;  %v1290_v48 = vrot.slane %v583_v44, %v595_v43  ;;  %v1292_v49 = vrot.slane %v583_v44, %v591_v45 }
  0x19   :  { %409 = vmatpush1.bf16.msra.mxu0 %v1005_v50  ;;  %470 = vmatpush1.bf16.msra.mxu1 %v1006_v51  ;;  %v1294_v50 = vrot.slane %v583_v44, %v599_v46 }
  0x1a   :  { %410 = vmatprep.subr.bf16.mxu0 %v1007_v52  ;;  %471 = vmatprep.subr.bf16.mxu1 %v1009_v53 }
  0x1d   :  { %411 = vmatpush1.bf16.msra.mxu0 %v1011_v54  ;;  %472 = vmatpush1.bf16.msra.mxu1 %v1012_v55 }
  0x1e   :  { %412 = vmatprep.subr.bf16.mxu0 %v1013_v56  ;;  %473 = vmatprep.subr.bf16.mxu1 %v1015_v57 }
  0x21   :  { %413 = vmatpush1.bf16.msra.mxu0 %v1017_v58  ;;  %474 = vmatpush1.bf16.msra.mxu1 %v1018_v59 }
  0x91   :  { %v60_v8 = vpop.xlane.xlu0 %59  ;;  %v64_v9 = vpop.xlane.xlu1 %63 }
  0x92   :  { %v70_v10 = vmul.f32 0.0078125, %v60_v8  ;;  %v72_v11 = vmul.f32 0.0078125, %v64_v9 }
  0x94   :  { %v1152_v12 = vsub.f32 %v952_v2, %v70_v10  ;;  %v1154_v13 = vsub.f32 %v956_v3, %v72_v11 }
  0x95   :  { %v62_v14 = vpop.xlane.xlu0 %61  ;;  %v66_v15 = vpop.xlane.xlu1 %65 }
  0x96   :  { %v71_v16 = vmul.f32 0.0078125, %v62_v14  ;;  %v80_v17 = vmul.f32 %v1152_v12, %v1152_v12  ;;  %v73_v18 = vmul.f32 0.0078125, %v66_v15  ;;  %v82_v21 = vmul.f32 %v1154_v13, %v1154_v13 }
  0x98   :  { %v1158_v19 = vsub.f32 %v953_v4, %v71_v16  ;;  %85 = vadd.xlane.f32.xlu1 %v80_v17  ;;  %v1160_v20 = vsub.f32 %v957_v5, %v73_v18  ;;  %v863_v16 = vld [vmem:[%s1428_s3] ss:$0 sm:$0xff] }
  0x99   :  { %v68_v22 = vpop.xlane.xlu0 %67 }
  0x9a   :  { %v74_v23 = vmul.f32 0.0078125, %v68_v22  ;;  %v81_v24 = vmul.f32 %v1158_v19, %v1158_v19  ;;  %v83_v26 = vmul.f32 %v1160_v20, %v1160_v20 }
  0x9c   :  { %v1166_v25 = vsub.f32 %v58_v7, %v74_v23  ;;  %89 = vadd.xlane.f32.xlu1 %v82_v21  ;;  %87 = vadd.xlane.f32.xlu0 %v81_v24  ;;  %v864_v24 = vld [vmem:[%s1429_s4] ss:$0 sm:$0xff] }
  0x9e   :  { %v84_v27 = vmul.f32 %v1166_v25, %v1166_v25 }
  0xa0   :  { %91 = vadd.xlane.f32.xlu0 %v83_v26  ;;  %93 = vadd.xlane.f32.xlu1 %v84_v27 }
 0x125   :  { %v86_v61 = vpop.xlane.xlu1 %85 }
 0x126   :  { %v95_v62 = vmul.f32 0.0078125, %v86_v61 }
 0x128   :  { %v100_v63 = vadd.f32 1e-05, %v95_v62 }
 0x129   :  { %v90_v0 = vpop.xlane.xlu1 %89  ;;  %v88_v1 = vpop.xlane.xlu0 %87 }
 0x12a   :  { %1022 = vrsqrt.f32 %v100_v63  ;;  %v97_v2 = vmul.f32 0.0078125, %v90_v0  ;;  %v96_v3 = vmul.f32 0.0078125, %v88_v1 }
 0x12c   :  { %v102_v4 = vadd.f32 1e-05, %v97_v2  ;;  %v101_v5 = vadd.f32 1e-05, %v96_v3 }
 0x12d   :  { %v94_v6 = vpop.xlane.xlu1 %93  ;;  %v92_v7 = vpop.xlane.xlu0 %91 }
 0x12e   :  { %1024 = vrsqrt.f32 %v102_v4  ;;  %v99_v8 = vmul.f32 0.0078125, %v94_v6  ;;  %v98_v9 = vmul.f32 0.0078125, %v92_v7 }
 0x12f   :  { %1026 = vrsqrt.f32 %v101_v5 }
 0x130   :  { %v104_v10 = vadd.f32 1e-05, %v99_v8  ;;  %v103_v11 = vadd.f32 1e-05, %v98_v9 }
 0x132   :  { %1028 = vrsqrt.f32 %v104_v10 }
 0x133   :  { %1030 = vrsqrt.f32 %v103_v11 }
 0x134   :  { %v1023_v14 = vpop.eup %1022 }
 0x135   :  { %v110_v15 = vmul.f32 %v1023_v14, %v1152_v12 }
 0x137   :  { %v122_v21 = vmul.f32 %v863_v16, %v110_v15 }
 0x138   :  { %v1025_v17 = vpop.eup %1024 }
 0x139   :  { %v1027_v18 = vpop.eup %1026  ;;  %v112_v22 = vmul.f32 %v1025_v17, %v1154_v13  ;;  %v134_v29 = vadd.f32 %v864_v24, %v122_v21 }
 0x13a   :  { %v111_v23 = vmul.f32 %v1027_v18, %v1158_v19 }
 0x13b   :  { %v124_v30 = vmul.f32 %v863_v16, %v112_v22 }
 0x13c   :  { %v1029_v26 = vpop.eup %1028  ;;  %v123_v27 = vmul.f32 %v863_v16, %v111_v23 }
 0x13d   :  { %v1031_v28 = vpop.eup %1030  ;;  %v114_v12 = vmul.f32 %v1029_v26, %v1166_v25  ;;  %v136_v36 = vadd.f32 %v864_v24, %v124_v30 }
 0x13e   :  { %v135_v31 = vadd.f32 %v864_v24, %v123_v27  ;;  %v113_v32 = vmul.f32 %v1031_v28, %v1160_v20 }
 0x13f   :  { %v126_v33 = vmul.f32 %v863_v16, %v114_v12 }
 0x140   :  { %v961_v34 = vpack.c.bf16 %v135_v31, %v134_v29  ;;  %v125_v35 = vmul.f32 %v863_v16, %v113_v32 }
 0x141   :  { %v138_v13 = vadd.f32 %v864_v24, %v126_v33 }
 0x142   :  { %962 = vst [vmem:[#allocation3] sm:$0xff] %v961_v34   ;;  %v137_v19 = vadd.f32 %v864_v24, %v125_v35 }
 0x143   :  { %v939_v37 = vpack.c.bf16 %v138_v13, %v138_v13 }
 0x144   :  { %v966_v38 = vpack.c.bf16 %v137_v19, %v136_v36 }
 0x145   :  { %164 = vst [vmem:[#allocation3 + $0x10] sm:$0xf] %v939_v37 }
 0x146   :  { %969 = vst [vmem:[#allocation3 + $0x8] sm:$0xff] %v966_v38  }
 0x149   :  { %v1019_v39 = vld [vmem:[#allocation3] sm:$0xff]  }
 0x14a   :  { %431 = vmatmul.mubr.bf16.vlgmr.msra.gmra.mrb[0].mxu0 %v1019_v39  ;;  %492 = vmatmul.mubr.bf16.vlgmr.msra.gmra.mrb[0].mxu1 %v1019_v39 }
 0x14b   :  { %440 = vmatprep.mubr.bf16.mxu0 %v1112_v60  ;;  %501 = vmatprep.mubr.bf16.mxu1 %v1112_v60 }
 0x14c   :  { %v1021_v20 = vld [vmem:[#allocation3 + $0x10] ss:$0 sps:$4 sm:$0xff]  }
 0x14d   :  { %v1020_v25 = vld [vmem:[#allocation3 + $0x8] sm:$0xff]  }
 0x152   :  { %441 = vmatmul.mubr.bf16.gmra.mrb[4].mxu0 %v1020_v25  ;;  %502 = vmatmul.mubr.bf16.gmra.mrb[4].mxu1 %v1020_v25 }
 0x153   :  { %450 = vmatprep.mubr.bf16.mxu0 %v1112_v60  ;;  %511 = vmatprep.mubr.bf16.mxu1 %v1112_v60 }
 0x15a   :  { %451 = vmatmul.mubr.bf16.gmra.mrb[8].mxu0 %v1021_v20  ;;  %512 = vmatmul.mubr.bf16.gmra.mrb[8].mxu1 %v1021_v20 }
 0x21d   :  { %v432_v51 = vpop.f32.mrb[0].mxu0  ;;  %v493_v52 = vpop.f32.mrb[0].mxu1 }
 0x21e   :  { %v1297_v53 = vadd.f32 %v1288_v47, %v432_v51  ;;  %v1300_v54 = vadd.f32 %v1290_v48, %v493_v52  ;;  %v434_v55 = vpop.f32.mrb[1].mxu0  ;;  %v495_v56 = vpop.f32.mrb[1].mxu1 }
 0x21f   :  { %v1303_v57 = vadd.f32 %v1292_v49, %v434_v55  ;;  %v1306_v58 = vadd.f32 %v1294_v50, %v495_v56  ;;  %v436_v59 = vpop.f32.mrb[2].mxu0  ;;  %v497_v60 = vpop.f32.mrb[2].mxu1 }
 0x220   :  { %v905_v61 = vmul.f32 -1.702, %v1297_v53  ;;  %v907_v62 = vmul.f32 -1.702, %v1300_v54  ;;  %v1311_v63 = vadd.f32 %v1288_v47, %v436_v59  ;;  %v1314_v0 = vadd.f32 %v1290_v48, %v497_v60  ;;  %v438_v1 = vpop.f32.mrb[3].mxu0  ;;  %v499_v2 = vpop.f32.mrb[3].mxu1 }
 0x221   :  { %v906_v3 = vmul.f32 -1.702, %v1303_v57  ;;  %v908_v4 = vmul.f32 -1.702, %v1306_v58  ;;  %v1319_v5 = vadd.f32 %v1292_v49, %v438_v1  ;;  %v1322_v6 = vadd.f32 %v1294_v50, %v499_v2 }
 0x222   :  { %v665_v7 = vmul.f32 1.442695, %v905_v61  ;;  %v669_v8 = vmul.f32 1.442695, %v907_v62  ;;  %v909_v9 = vmul.f32 -1.702, %v1311_v63 }
 0x223   :  { %v667_v10 = vmul.f32 1.442695, %v906_v3  ;;  %v671_v11 = vmul.f32 1.442695, %v908_v4  ;;  %v911_v14 = vmul.f32 -1.702, %v1314_v0 }
 0x224   :  { %1032 = vpow2.f32 %v665_v7  ;;  %v673_v15 = vmul.f32 1.442695, %v909_v9  ;;  %v910_v16 = vmul.f32 -1.702, %v1319_v5  ;;  %v912_v17 = vmul.f32 -1.702, %v1322_v6 }
 0x225   :  { %1034 = vpow2.f32 %v669_v8  ;;  %v677_v18 = vmul.f32 1.442695, %v911_v14  ;;  %v442_v21 = vpop.f32.mrb[4].mxu0  ;;  %v503_v22 = vpop.f32.mrb[4].mxu1 }
 0x226   :  { %1036 = vpow2.f32 %v667_v10  ;;  %v675_v23 = vmul.f32 1.442695, %v910_v16  ;;  %v679_v24 = vmul.f32 1.442695, %v912_v17  ;;  %v1329_v26 = vadd.f32 %v1288_v47, %v442_v21  ;;  %v444_v27 = vpop.f32.mrb[5].mxu0  ;;  %v505_v28 = vpop.f32.mrb[5].mxu1 }
 0x227   :  { %1038 = vpow2.f32 %v671_v11  ;;  %v1332_v12 = vadd.f32 %v1290_v48, %v503_v22  ;;  %v1335_v29 = vadd.f32 %v1292_v49, %v444_v27  ;;  %v1338_v30 = vadd.f32 %v1294_v50, %v505_v28  ;;  %v446_v31 = vpop.f32.mrb[6].mxu0  ;;  %v507_v32 = vpop.f32.mrb[6].mxu1 }
 0x228   :  { %1040 = vpow2.f32 %v673_v15  ;;  %v913_v33 = vmul.f32 -1.702, %v1329_v26  ;;  %v1342_v34 = vadd.f32 %v1288_v47, %v446_v31  ;;  %v448_v35 = vpop.f32.mrb[7].mxu0  ;;  %v509_v13 = vpop.f32.mrb[7].mxu1  ;;  %v1349_v7 = vadd.f32 %v1290_v48, %v507_v32 }
 0x229   :  { %1042 = vpow2.f32 %v677_v18  ;;  %v915_v36 = vmul.f32 -1.702, %v1332_v12  ;;  %v914_v19 = vmul.f32 -1.702, %v1335_v29  ;;  %v916_v37 = vmul.f32 -1.702, %v1338_v30 }
 0x22a   :  { %1044 = vpow2.f32 %v675_v23  ;;  %v681_v38 = vmul.f32 1.442695, %v913_v33  ;;  %v917_v39 = vmul.f32 -1.702, %v1342_v34  ;;  %v1352_v10 = vadd.f32 %v1292_v49, %v448_v35 }
 0x22b   :  { %1046 = vpow2.f32 %v679_v24  ;;  %v685_v25 = vmul.f32 1.442695, %v915_v36  ;;  %v683_v20 = vmul.f32 1.442695, %v914_v19  ;;  %v687_v40 = vmul.f32 1.442695, %v916_v37 }
 0x22c   :  { %1048 = vpow2.f32 %v681_v38  ;;  %v689_v41 = vmul.f32 1.442695, %v917_v39  ;;  %v1355_v15 = vadd.f32 %v1294_v50, %v509_v13  ;;  %v919_v23 = vmul.f32 -1.702, %v1349_v7 }
 0x22d   :  { %1050 = vpow2.f32 %v685_v25  ;;  %v452_v42 = vpop.f32.mrb[8].mxu0  ;;  %v513_v43 = vpop.f32.mrb[8].mxu1  ;;  %v918_v31 = vmul.f32 -1.702, %v1352_v10 }
 0x22e   :  { %v1033_v44 = vpop.eup %1032  ;;  %1052 = vpow2.f32 %v683_v20  ;;  %v454_v45 = vpop.f32.mrb[9].mxu0  ;;  %v1358_v18 = vadd.f32 %v1288_v47, %v452_v42  ;;  %v1362_v24 = vadd.f32 %v1290_v48, %v513_v43  ;;  %v920_v35 = vmul.f32 -1.702, %v1355_v15 }
 0x22f   :  { %v515_v46 = vpop.f32.mrb[9].mxu1  ;;  %v1035_v51 = vpop.eup %1034  ;;  %v705_v52 = vadd.f32 1.0, %v1033_v44  ;;  %1054 = vpow2.f32 %v687_v40  ;;  %v1366_v32 = vadd.f32 %v1292_v49, %v454_v45  ;;  %v693_v39 = vmul.f32 1.442695, %v919_v23 }
 0x230   :  { %v456_v55 = vpop.f32.mrb[10].mxu0  ;;  %v517_v56 = vpop.f32.mrb[10].mxu1  ;;  %v707_v60 = vadd.f32 1.0, %v1035_v51  ;;  %1056 = vpow2.f32 %v689_v41  ;;  %v1370_v13 = vadd.f32 %v1294_v50, %v515_v46  ;;  %v921_v19 = vmul.f32 -1.702, %v1358_v18 }
 0x231   :  { %v1037_v59 = vpop.eup %1036  ;;  %v457_v61 = vpop.f32.mrb[11].mxu0  ;;  %1058 = vrcp.f32 %v705_v52  ;;  %v923_v49 = vmul.f32 -1.702, %v1362_v24  ;;  %v691_v20 = vmul.f32 1.442695, %v918_v31 }
 0x232   :  { %v1039_v62 = vpop.eup %1038  ;;  %v706_v1 = vadd.f32 1.0, %v1037_v59  ;;  %v518_v2 = vpop.f32.mrb[11].mxu1  ;;  %1060 = vrcp.f32 %v707_v60  ;;  %v922_v40 = vmul.f32 -1.702, %v1366_v32  ;;  %v695_v42 = vmul.f32 1.442695, %v920_v35 }
 0x233   :  { %v1041_v3 = vpop.eup %1040  ;;  %v708_v4 = vadd.f32 1.0, %v1039_v62  ;;  %v924_v43 = vmul.f32 -1.702, %v1370_v13  ;;  %v697_v46 = vmul.f32 1.442695, %v921_v19 }
 0x234   :  { %v1043_v8 = vpop.eup %1042  ;;  %1062 = vrcp.f32 %v706_v1  ;;  %v709_v9 = vadd.f32 1.0, %v1041_v3  ;;  %v701_v55 = vmul.f32 1.442695, %v923_v49  ;;  %v699_v60 = vmul.f32 1.442695, %v922_v40 }
 0x235   :  { %v1045_v11 = vpop.eup %1044  ;;  %1064 = vrcp.f32 %v708_v4  ;;  %v711_v14 = vadd.f32 1.0, %v1043_v8  ;;  %v703_v1 = vmul.f32 1.442695, %v924_v43 }
 0x236   :  { %v1047_v16 = vpop.eup %1046  ;;  %1066 = vrcp.f32 %v709_v9  ;;  %v710_v17 = vadd.f32 1.0, %v1045_v11 }
 0x237   :  { %v1049_v21 = vpop.eup %1048  ;;  %1068 = vrcp.f32 %v711_v14  ;;  %v712_v22 = vadd.f32 1.0, %v1047_v16 }
 0x238   :  { %v1051_v27 = vpop.eup %1050  ;;  %1070 = vrcp.f32 %v710_v17  ;;  %v713_v28 = vadd.f32 1.0, %v1049_v21 }
 0x239   :  { %v1053_v33 = vpop.eup %1052  ;;  %1072 = vrcp.f32 %v712_v22  ;;  %v715_v47 = vadd.f32 1.0, %v1051_v27 }
 0x23a   :  { %v1055_v36 = vpop.eup %1054  ;;  %1074 = vrcp.f32 %v713_v28  ;;  %v714_v48 = vadd.f32 1.0, %v1053_v33 }
 0x23b   :  { %v1057_v37 = vpop.eup %1056  ;;  %1076 = vrcp.f32 %v715_v47  ;;  %v716_v38 = vadd.f32 1.0, %v1055_v36 }
 0x23c   :  { %v1059_v25 = vpop.eup %1058  ;;  %1078 = vrcp.f32 %v714_v48  ;;  %v717_v11 = vadd.f32 1.0, %v1057_v37 }
 0x23d   :  { %v1061_v41 = vpop.eup %1060  ;;  %v765_v50 = vmul.f32 %v1059_v25, %v1297_v53  ;;  %1080 = vrcp.f32 %v716_v38 }
 0x23e   :  { %v1063_v44 = vpop.eup %1062  ;;  %v767_v45 = vmul.f32 %v1061_v41, %v1300_v54  ;;  %1082 = vpow2.f32 %v693_v39 }
 0x23f   :  { %v1065_v51 = vpop.eup %1064  ;;  %v766_v52 = vmul.f32 %v1063_v44, %v1303_v57  ;;  %1084 = vpow2.f32 %v691_v20 }
 0x240   :  { %v1067_v56 = vpop.eup %1066  ;;  %v768_v59 = vmul.f32 %v1065_v51, %v1306_v58  ;;  %1086 = vpow2.f32 %v695_v42 }
 0x241   :  { %v1069_v61 = vpop.eup %1068  ;;  %v940_v53 = vpack.c.bf16 %v766_v52, %v765_v50  ;;  %v769_v62 = vmul.f32 %v1067_v56, %v1311_v63  ;;  %1088 = vpow2.f32 %v697_v46 }
 0x242   :  { %v1071_v2 = vpop.eup %1070  ;;  %v941_v3 = vpack.c.bf16 %v768_v59, %v767_v45  ;;  %v771_v54 = vmul.f32 %v1069_v61, %v1314_v0  ;;  %1090 = vpow2.f32 %v701_v55 }
 0x243   :  { %v1073_v4 = vpop.eup %1072  ;;  %849 = vst [vmem:[%s1431_s5] sm:$0xff] %v940_v53  ;;  %v770_v57 = vmul.f32 %v1071_v2, %v1319_v5  ;;  %1092 = vpow2.f32 %v699_v60 }
 0x244   :  { %v1075_v58 = vpop.eup %1074  ;;  %850 = vst [vmem:[%s1431_s5 + $0x8] sm:$0xff] %v941_v3  ;;  %v772_v63 = vmul.f32 %v1073_v4, %v1322_v6  ;;  %1094 = vpow2.f32 %v703_v1 }
 0x245   :  { %v1077_v8 = vpop.eup %1076  ;;  %v942_v9 = vpack.c.bf16 %v770_v57, %v769_v62  ;;  %v773_v0 = vmul.f32 %v1075_v58, %v1329_v26  ;;  %1096 = vrcp.f32 %v717_v11 }
 0x246   :  { %v1079_v14 = vpop.eup %1078  ;;  %v943_v16 = vpack.c.bf16 %v772_v63, %v771_v54  ;;  %v775_v17 = vmul.f32 %v1077_v8, %v1332_v12 }
 0x247   :  { %v1081_v5 = vpop.eup %1080  ;;  %851 = vst [vmem:[%s1431_s5 + $0x10] sm:$0xff] %v942_v9  ;;  %v774_v21 = vmul.f32 %v1079_v14, %v1335_v29 }
 0x248   :  { %852 = vst [vmem:[%s1431_s5 + $0x18] sm:$0xff] %v943_v16  ;;  %v776_v6 = vmul.f32 %v1081_v5, %v1338_v30  ;;  %v1083_v26 = vpop.eup %1082 }
 0x249   :  { %v944_v22 = vpack.c.bf16 %v774_v21, %v773_v0  ;;  %v1085_v23 = vpop.eup %1084  ;;  %v719_v28 = vadd.f32 1.0, %v1083_v26 }
 0x24a   :  { %v945_v27 = vpack.c.bf16 %v776_v6, %v775_v17  ;;  %v1087_v12 = vpop.eup %1086  ;;  %v718_v31 = vadd.f32 1.0, %v1085_v23 }
 0x24b   :  { %853 = vst [vmem:[%s1431_s5 + $0x20] sm:$0xff] %v944_v22  ;;  %v1089_v33 = vpop.eup %1088  ;;  %1098 = vrcp.f32 %v719_v28  ;;  %v720_v29 = vadd.f32 1.0, %v1087_v12 }
 0x24c   :  { %854 = vst [vmem:[%s1431_s5 + $0x28] sm:$0xff] %v945_v27  ;;  %v1091_v30 = vpop.eup %1090  ;;  %1100 = vrcp.f32 %v718_v31  ;;  %v721_v47 = vadd.f32 1.0, %v1089_v33 }
 0x24d   :  { %v1093_v35 = vpop.eup %1092  ;;  %1102 = vrcp.f32 %v720_v29  ;;  %v723_v36 = vadd.f32 1.0, %v1091_v30 }
 0x24e   :  { %v1095_v48 = vpop.eup %1094  ;;  %1104 = vrcp.f32 %v721_v47  ;;  %v722_v19 = vadd.f32 1.0, %v1093_v35 }
 0x24f   :  { %1106 = vrcp.f32 %v723_v36  ;;  %v724_v37 = vadd.f32 1.0, %v1095_v48  ;;  %v1097_v38 = vpop.eup %1096 }
 0x250   :  { %1108 = vrcp.f32 %v722_v19  ;;  %v777_v49 = vmul.f32 %v1097_v38, %v1342_v34 }
 0x251   :  { %1110 = vrcp.f32 %v724_v37 }
 0x255   :  { %v1099_v39 = vpop.eup %1098 }
 0x256   :  { %v1101_v25 = vpop.eup %1100  ;;  %v779_v20 = vmul.f32 %v1099_v39, %v1349_v7 }
 0x257   :  { %v1103_v40 = vpop.eup %1102  ;;  %v778_v41 = vmul.f32 %v1101_v25, %v1352_v10 }
 0x258   :  { %v1105_v50 = vpop.eup %1104  ;;  %v780_v42 = vmul.f32 %v1103_v40, %v1355_v15 }
 0x259   :  { %v1107_v43 = vpop.eup %1106  ;;  %v946_v44 = vpack.c.bf16 %v778_v41, %v777_v49  ;;  %v781_v45 = vmul.f32 %v1105_v50, %v1358_v18 }
 0x25a   :  { %v1109_v46 = vpop.eup %1108  ;;  %v947_v51 = vpack.c.bf16 %v780_v42, %v779_v20  ;;  %v783_v52 = vmul.f32 %v1107_v43, %v1362_v24 }
 0x25b   :  { %v1111_v55 = vpop.eup %1110  ;;  %855 = vst [vmem:[%s1431_s5 + $0x30] sm:$0xff] %v946_v44  ;;  %v782_v34 = vmul.f32 %v1109_v46, %v1366_v32 }
 0x25c   :  { %856 = vst [vmem:[%s1431_s5 + $0x38] sm:$0xff] %v947_v51  ;;  %v784_v7 = vmul.f32 %v1111_v55, %v1370_v13 }
 0x25d   :  { %v948_v10 = vpack.c.bf16 %v782_v34, %v781_v45 }
 0x25e   :  { %v949_v15 = vpack.c.bf16 %v784_v7, %v783_v52 }
 0x25f   :  { %857 = vst [vmem:[%s1431_s5 + $0x40] sm:$0xff] %v948_v10 }
 0x260   :  { %858 = vst [vmem:[%s1431_s5 + $0x48] sm:$0xff] %v949_v15 }

// kernel: clip_classifier_forward.26
= control target key start
LH: loop header
LB: loop body
LE: loop exit
PB: predicated region body
PF: predicated region fallthrough
CT: control target
= control target key end

     0   :  { %vm20_vm0 = vcmask 1041408   ;;  %v220_v3 = vmov 0.0   ;;  %vm221_vm1 = vmmov 0   ;;  %s286_s0 = inlined_call_operand.vmem [shape: bf16[2,128], index: 0, kind: input, shape index: {}]   ;;  %s287_s3 = inlined_call_operand.vmem [shape: bf16[128,128], index: 3, kind: input, shape index: {}]   ;;  %s288_s1 = inlined_call_operand.vmem [shape: f32[1,128], index: 1, kind: input, shape index: {}]   ;;  %s289_s2 = inlined_call_operand.vmem [shape: f32[1,128], index: 2, kind: input, shape index: {}]   ;;  %s290_s4 = inlined_call_operand.vmem [shape: f32[2,128], index: 4, kind: output, shape index: {}]  }
   0x1   :  { %v18_v0 = vld [vmem:[%s286_s0] sm:$0x1]  ;;  %186 = vmatprep.subr.bf16.mxu0 %v220_v3  ;;  %v209_v5 = vld [vmem:[%s287_s3 + $0x8] sm:$0xff]   ;;  %v210_v11 = vld [vmem:[%s287_s3 + $0x10] sm:$0xff]   ;;  %202 = vmatprep.mubr.msk.bf16.mxu0 %vm221_vm1, %v220_v3 }
   0x2   :  { %v19_v1 = vunpack.c.l.bf16 %v18_v0  ;;  %v208_v4 = vld [vmem:[%s287_s3] sm:$0xff]   ;;  %v211_v12 = vld [vmem:[%s287_s3 + $0x18] sm:$0xff]   ;;  %v213_v14 = vld [vmem:[%s287_s3 + $0x28] sm:$0xff]  }
   0x3   :  { %187 = vmatpush3.bf16.msra.mxu0 %v208_v4  ;;  %v212_v13 = vld [vmem:[%s287_s3 + $0x20] sm:$0xff]   ;;  %v214_v15 = vld [vmem:[%s287_s3 + $0x30] sm:$0xff]   ;;  %v215_v16 = vld [vmem:[%s287_s3 + $0x38] sm:$0xff]  }
   0x4   :  { %v21_v2 = vsel %vm20_vm0, %v19_v1, 0.0  ;;  %188 = vmatprep.subr.bf16.mxu0 %v220_v3  ;;  %v167_v21 = vld [vmem:[%s288_s1] ss:$0 sm:$0xff] }
   0x5   :  { %22 = vadd.xlane.f32.xlu0 %v21_v2  ;;  %v168_v23 = vld [vmem:[%s289_s2] ss:$0 sm:$0xff] }
   0x7   :  { %189 = vmatpush3.bf16.msra.mxu0 %v209_v5 }
   0x8   :  { %190 = vmatprep.subr.bf16.mxu0 %v220_v3 }
   0xb   :  { %191 = vmatpush3.bf16.msra.mxu0 %v210_v11 }
   0xc   :  { %192 = vmatprep.subr.bf16.mxu0 %v220_v3 }
   0xf   :  { %193 = vmatpush3.bf16.msra.mxu0 %v211_v12 }
  0x10   :  { %194 = vmatprep.subr.bf16.mxu0 %v220_v3 }
  0x13   :  { %195 = vmatpush3.bf16.msra.mxu0 %v212_v13 }
  0x14   :  { %196 = vmatprep.subr.bf16.mxu0 %v220_v3 }
  0x17   :  { %197 = vmatpush3.bf16.msra.mxu0 %v213_v14 }
  0x18   :  { %198 = vmatprep.subr.bf16.mxu0 %v220_v3 }
  0x1b   :  { %199 = vmatpush3.bf16.msra.mxu0 %v214_v15 }
  0x1c   :  { %200 = vmatprep.subr.bf16.mxu0 %v220_v3 }
  0x1f   :  { %201 = vmatpush3.bf16.msra.mxu0 %v215_v16 }
  0x92   :  { %v23_v6 = vpop.xlane.xlu0 %22 }
  0x93   :  { %v25_v7 = vmul.f32 0.0078125, %v23_v6 }
  0x95   :  { %v26_v8 = vsub.f32 %v19_v1, %v25_v7 }
  0x97   :  { %v27_v9 = vmul.f32 %v26_v8, %v26_v8 }
  0x99   :  { %v28_v10 = vsel %vm20_vm0, %v27_v9, 0.0 }
  0x9a   :  { %29 = vadd.xlane.f32.xlu0 %v28_v10 }
 0x127   :  { %v30_v17 = vpop.xlane.xlu0 %29 }
 0x128   :  { %v31_v18 = vmul.f32 0.0078125, %v30_v17 }
 0x12a   :  { %v32_v19 = vadd.f32 1e-05, %v31_v18 }
 0x12c   :  { %216 = vrsqrt.f32 %v32_v19 }
 0x136   :  { %v217_v20 = vpop.eup %216 }
 0x137   :  { %v34_v22 = vmul.f32 %v217_v20, %v26_v8 }
 0x139   :  { %v42_v24 = vmul.f32 %v167_v21, %v34_v22 }
 0x13b   :  { %v50_v25 = vadd.f32 %v168_v23, %v42_v24 }
 0x13d   :  { %v51_v26 = vpack.c.bf16 %v50_v25, %v50_v25 }
 0x13f   :  { %203 = vmatmul.mubr.bf16.vlgmr.msra.gmra.mrb[0].mxu0 %v51_v26 }
 0x212   :  { %v150_v27 = vpop.f32.mrb[0].mxu0 }
 0x213   :  { %v204_v28 = vpop.f32.mrb[1].mxu0  ;;  %v156_v29 = vmul.f32 %v150_v27, %v150_v27 }
 0x214   :  { %v153_v30 = vpop.f32.mrb[2].mxu0 }
 0x215   :  { %v205_v31 = vpop.f32.mrb[3].mxu0  ;;  %v157_v32 = vsel %vm20_vm0, %v156_v29, 0.0 }
 0x216   :  { %158 = vadd.xlane.f32.xlu1 %v157_v32 }
 0x2a3   :  { %v159_v33 = vpop.xlane.xlu1 %158 }
 0x2a4   :  { %218 = vrsqrt.f32 %v159_v33 }
 0x2ae   :  { %v219_v34 = vpop.eup %218 }
 0x2af   :  { %v161_v35 = vmul.f32 %v219_v34, %v150_v27 }
 0x2b1   :  { %162 = vst [vmem:[%s290_s4] sm:$0x3] %v161_v35 }

// kernel: clip_classifier_forward.27
= control target key start
LH: loop header
LB: loop body
LE: loop exit
PB: predicated region body
PF: predicated region fallthrough
CT: control target
= control target key end

     0   :  { %vm16_vm0 = vcmask 64512   ;;  %v183_v0 = vmov 0.0   ;;  %vm184_vm1 = vmmov 0   ;;  %s233_s1 = inlined_call_operand.vmem [shape: bf16[128,8], index: 1, kind: input, shape index: {}]   ;;  %s234_s0 = inlined_call_operand.vmem [shape: bf16[8,128], index: 0, kind: input, shape index: {}]   ;;  %s235_s2 = inlined_call_operand.vmem [shape: f32[8,8], index: 2, kind: output, shape index: {}]  }
   0x1   :  { %153 = vmatprep.subr.bf16.mxu0 %v183_v0  ;;  %v175_v1 = vld [vmem:[%s233_s1] sm:$0xff]   ;;  %169 = vmatprep.mubr.msk.bf16.mxu0 %vm184_vm1, %v183_v0  ;;  %17 = vst.msk [vmem:[#allocation2] sm:$0xff] %vm16_vm0, %v183_v0  ;;  %v176_v2 = vld [vmem:[%s233_s1 + $0x8] sm:$0xff]   ;;  %v177_v3 = vld [vmem:[%s233_s1 + $0x10] sm:$0xff]  }
   0x2   :  { %154 = vmatpush3.bf16.msra.mxu0 %v175_v1  ;;  %v178_v4 = vld [vmem:[%s233_s1 + $0x18] sm:$0xff]   ;;  %v179_v5 = vld [vmem:[%s233_s1 + $0x20] sm:$0xff]   ;;  %v180_v6 = vld [vmem:[%s233_s1 + $0x28] sm:$0xff]  }
   0x3   :  { %155 = vmatprep.subr.bf16.mxu0 %v183_v0  ;;  %v181_v7 = vld [vmem:[%s233_s1 + $0x30] sm:$0xff]   ;;  %v182_v8 = vld [vmem:[%s233_s1 + $0x38] sm:$0xff]   ;;  %v18_v9 = vld [vmem:[%s234_s0] sm:$0xf] }
   0x6   :  { %156 = vmatpush3.bf16.msra.mxu0 %v176_v2 }
   0x7   :  { %157 = vmatprep.subr.bf16.mxu0 %v183_v0 }
   0x8   :  { %v19_v10 = vld [vmem:[#allocation2] sm:$0xff] }
   0xa   :  { %158 = vmatpush3.bf16.msra.mxu0 %v177_v3 }
   0xb   :  { %159 = vmatprep.subr.bf16.mxu0 %v183_v0 }
   0xe   :  { %160 = vmatpush3.bf16.msra.mxu0 %v178_v4 }
   0xf   :  { %161 = vmatprep.subr.bf16.mxu0 %v183_v0 }
  0x12   :  { %162 = vmatpush3.bf16.msra.mxu0 %v179_v5 }
  0x13   :  { %163 = vmatprep.subr.bf16.mxu0 %v183_v0 }
  0x16   :  { %164 = vmatpush3.bf16.msra.mxu0 %v180_v6 }
  0x17   :  { %165 = vmatprep.subr.bf16.mxu0 %v183_v0 }
  0x1a   :  { %166 = vmatpush3.bf16.msra.mxu0 %v181_v7 }
  0x1b   :  { %167 = vmatprep.subr.bf16.mxu0 %v183_v0 }
  0x1e   :  { %168 = vmatpush3.bf16.msra.mxu0 %v182_v8 }
  0x21   :  { %170 = vmatmul.mubr.bf16.vlgmr.msra.gmra.mrb[0].mxu0 %v18_v9 }
  0xf4   :  { %v118_v11 = vpop.f32.mrb[0].mxu0 }
  0xf5   :  { %v124_v12 = vadd.f32 %v118_v11, %v19_v10  ;;  %v171_v13 = vpop.f32.mrb[1].mxu0 }
  0xf6   :  { %v121_v14 = vpop.f32.mrb[2].mxu0 }
  0xf7   :  { %126 = vst.msk [vmem:[#allocation2] sm:$0xff] %vm16_vm0, %v124_v12  ;;  %v172_v15 = vpop.f32.mrb[3].mxu0 }
  0xfe   :  { %v130_v16 = vld [vmem:[#allocation2] sm:$0xff] }
  0xff   :  { %131 = vst.msk [vmem:[%s235_s2] sm:$0xff] %vm16_vm0, %v130_v16 }

</bundles_post_ra>
